<compile_context>
chip_gen: v7x
topology: tpu7x:2x2x1
jax: 0.10.0
libtpu: 0.0.40
codegen_flags: <defaults>
</compile_context>

<pallas_src>
import functools
import math
import random

import jax
import jax.numpy as jnp
from jax.experimental import pallas as pl
from jax.experimental.pallas import tpu as pltpu

NEG_INF = -1e30


# --------------------------- parameter construction ------------------------ #

def init_params(key, input_dim, output_dim, emb_dim, hid_dim, n_layers, vpad):
    s = 1.0 / math.sqrt(hid_dim)
    keys = iter(jax.random.split(key, 4 + 8 * n_layers))

    def u(shape, scale):
        return jax.random.uniform(next(keys), shape, jnp.float32, -scale, scale)

    params = {"enc_emb": u((input_dim, emb_dim), 0.1).astype(jnp.bfloat16)}

    # Decoder embedding padded to vpad rows (padded rows zero, never selected).
    dec_emb = jnp.zeros((vpad, emb_dim), jnp.float32)
    dec_emb = dec_emb.at[:output_dim].set(u((output_dim, emb_dim), 0.1))
    params["dec_emb"] = dec_emb.astype(jnp.bfloat16)

    # Output projection padded to vpad lanes with ZERO weights/bias in padded
    # lanes; padded lanes are masked to -1e30 only inside the in-kernel argmax.
    ow = jnp.zeros((hid_dim, vpad), jnp.float32)
    ow = ow.at[:, :output_dim].set(u((hid_dim, output_dim), s))
    params["dec_out_w"] = ow.astype(jnp.bfloat16)
    ob = jnp.zeros((1, vpad), jnp.float32)
    params["dec_out_b"] = ob.at[:, :output_dim].set(u((1, output_dim), s))

    for name in ("enc_lstm", "dec_lstm"):
        layers = []
        for l in range(n_layers):
            in_dim = emb_dim if l == 0 else hid_dim
            w_ih = u((in_dim, 4 * hid_dim), s).astype(jnp.bfloat16)   # weight_ih_l{k}.T
            w_hh = u((hid_dim, 4 * hid_dim), s).astype(jnp.bfloat16)  # weight_hh_l{k}.T
            bias = u((1, 4 * hid_dim), s) + u((1, 4 * hid_dim), s)    # b_ih + b_hh (f32)
            layers.append((w_ih, w_hh, bias))
        params[name] = layers
    return params


# ----------------------------- shared cell math ----------------------------- #

def _lstm_stack_step(x, hs, cs, wih_refs, whh_refs, b_refs, g_mask, H):
    """One timestep through the stacked LSTM; returns new (hs, cs) value lists."""
    inp = x
    new_hs, new_cs = [], []
    for l in range(len(hs)):
        gates = (jnp.dot(inp.astype(jnp.bfloat16), wih_refs[l][...],
                         preferred_element_type=jnp.float32)
                 + jnp.dot(hs[l].astype(jnp.bfloat16), whh_refs[l][...],
                           preferred_element_type=jnp.float32)
                 + b_refs[l][...])
        # Single-tanh gate trick: sigmoid(x) = 0.5*(1 + tanh(x/2)).
        # Gate order is i, f, g, o; only g uses tanh directly.
        z = jnp.where(g_mask, gates, 0.5 * gates)
        tz = jnp.tanh(z)
        act = jnp.where(g_mask, tz, 0.5 * tz + 0.5)
        i_g = act[:, 0 * H:1 * H]
        f_g = act[:, 1 * H:2 * H]
        g_g = act[:, 2 * H:3 * H]
        o_g = act[:, 3 * H:4 * H]
        c_new = f_g * cs[l] + i_g * g_g
        h_new = o_g * jnp.tanh(c_new)
        new_hs.append(h_new)
        new_cs.append(c_new)
        inp = h_new
    return new_hs, new_cs


# ------------------------------ fused kernel -------------------------------- #

def _make_seq2seq_kernel(S, T, B, H, Vp, n_layers, output_dim):
    def kernel(*refs):
        tf_ref, src_ref, trg_ref = refs[0], refs[1], refs[2]
        p = 3
        enc_wih = refs[p:p + n_layers]; p += n_layers
        enc_whh = refs[p:p + n_layers]; p += n_layers
        enc_b = refs[p:p + n_layers]; p += n_layers
        dec_wih = refs[p:p + n_layers]; p += n_layers
        dec_whh = refs[p:p + n_layers]; p += n_layers
        dec_b = refs[p:p + n_layers]; p += n_layers
        emb_ref, ow_ref, ob_ref = refs[p], refs[p + 1], refs[p + 2]
        p += 3
        out_ref = refs[p]          # (T, B, Vp) f32 output, fully VMEM-resident
        tok_ref = refs[p + 1]      # (B, Vp) f32 scratch: current input one-hot

        lane4 = jax.lax.broadcasted_iota(jnp.int32, (B, 4 * H), 1)
        g_mask = (lane4 >= 2 * H) & (lane4 < 3 * H)
        lane_v = jax.lax.broadcasted_iota(jnp.int32, (B, Vp), 1)
        vocab_mask = lane_v < output_dim

        # ----------------------------- encoder ----------------------------- #
        # TODO(synk): inter-layer LSTM dropout is training-only in PyTorch;
        # inference semantics (no dropout) implemented here.
        hs = [jnp.zeros((B, H), jnp.float32) for _ in range(n_layers)]
        cs = [jnp.zeros((B, H), jnp.float32) for _ in range(n_layers)]
        for s in range(S):
            hs, cs = _lstm_stack_step(src_ref[s], hs, cs,
                                      enc_wih, enc_whh, enc_b, g_mask, H)

        # ----------------------------- decoder ----------------------------- #
        out_ref[0] = jnp.zeros((B, Vp), jnp.float32)           # outputs[0] = 0
        # Initial input token = trg[0], one-hot built in-kernel from int ids.
        tok_ref[...] = (lane_v == trg_ref[0]).astype(jnp.float32)

        for i in range(1, T):
            # Embedding gather as one-hot (B,Vp) @ (Vp,E) on the MXU.
            x = jnp.dot(tok_ref[...].astype(jnp.bfloat16), emb_ref[...],
                        preferred_element_type=jnp.float32)
            hs, cs = _lstm_stack_step(x, hs, cs,
                                      dec_wih, dec_whh, dec_b, g_mask, H)
            logits = jnp.dot(hs[-1].astype(jnp.bfloat16), ow_ref[...],
                             preferred_element_type=jnp.float32) + ob_ref[...]
            out_ref[i] = logits                                # lane-dense store

            if i < T - 1:                                      # last step: no next token
                tf = tf_ref[i]                                 # SMEM scalar coin flip

                @pl.when(tf > 0)                               # teacher forcing
                def _():
                    tok_ref[...] = (lane_v == trg_ref[i]).astype(jnp.float32)

                @pl.when(tf == 0)                              # greedy argmax
                def _():
                    masked = jnp.where(vocab_mask, logits, NEG_INF)
                    m = jnp.max(masked, axis=1, keepdims=True)
                    idx = jnp.min(jnp.where(masked == m, lane_v, Vp),
                                  axis=1, keepdims=True)       # first-max tie-break
                    tok_ref[...] = (lane_v == idx).astype(jnp.float32)

    return kernel


# ------------------------------ model forward ------------------------------ #

@functools.partial(jax.jit,
                   static_argnames=("n_layers", "hid_dim", "output_dim"))
def seq2seq_forward(params, src, trg, tf_mask, n_layers, hid_dim, output_dim):
    """src: (S,B) int32, trg: (T,B) int32, tf_mask: (T,) int32 -> (T,B,vocab) f32."""
    S, B = src.shape
    T, _ = trg.shape
    H = hid_dim
    Vp = params["dec_out_w"].shape[1]

    src_emb = jnp.take(params["enc_emb"], src, axis=0)         # (S, B, E) bf16
    trg_ids = trg.reshape(T, B, 1)                             # batch on sublanes

    enc_wih = [w for (w, _, _) in params["enc_lstm"]]
    enc_whh = [w for (_, w, _) in params["enc_lstm"]]
    enc_b = [b for (_, _, b) in params["enc_lstm"]]
    dec_wih = [w for (w, _, _) in params["dec_lstm"]]
    dec_whh = [w for (_, w, _) in params["dec_lstm"]]
    dec_b = [b for (_, _, b) in params["dec_lstm"]]

    inputs = ([tf_mask, src_emb, trg_ids]
              + enc_wih + enc_whh + enc_b
              + dec_wih + dec_whh + dec_b
              + [params["dec_emb"], params["dec_out_w"], params["dec_out_b"]])

    smem = pl.BlockSpec(memory_space=pltpu.MemorySpace.SMEM)
    vmem = pl.BlockSpec(memory_space=pltpu.MemorySpace.VMEM)

    kernel = _make_seq2seq_kernel(S, T, B, H, Vp, n_layers, output_dim)
    out = pl.pallas_call(
        kernel,
        out_shape=jax.ShapeDtypeStruct((T, B, Vp), jnp.float32),
        in_specs=[smem] + [vmem] * (len(inputs) - 1),
        out_specs=vmem,
        scratch_shapes=[pltpu.VMEM((B, Vp), jnp.float32)],
    )(*inputs)

    return out[:, :, :output_dim]                              # strip vocab padding


# ----------------------------------- main ---------------------------------- #

if __name__ == "__main__":
    random.seed(0)  # deterministic teacher-forcing coin flips

    INPUT_DIM = 32    # source vocab
    OUTPUT_DIM = 32   # target vocab
    EMB_DIM = 16
    HID_DIM = 32
    N_LAYERS = 2
    SRC_LEN = 8
    TRG_LEN = 8
    BATCH = 8
    VPAD = ((OUTPUT_DIM + 127) // 128) * 128   # lane-dense padded vocab

    key = jax.random.PRNGKey(0)
    k_par, k_src, k_trg = jax.random.split(key, 3)

    params = init_params(k_par, INPUT_DIM, OUTPUT_DIM, EMB_DIM, HID_DIM,
                         N_LAYERS, VPAD)
    src = jax.random.randint(k_src, (SRC_LEN, BATCH), 0, INPUT_DIM, jnp.int32)
    trg = jax.random.randint(k_trg, (TRG_LEN, BATCH), 0, OUTPUT_DIM, jnp.int32)

    # Host-side teacher-forcing coin flips (same semantics as random.random()
    # in the PyTorch loop); element 0 is unused since decoding starts at step 1.
    ratio = 0.5
    tf_mask = jnp.array(
        [0] + [1 if random.random() < ratio else 0 for _ in range(TRG_LEN - 1)],
        dtype=jnp.int32)

    outputs = seq2seq_forward(params, src, trg, tf_mask,
                              n_layers=N_LAYERS, hid_dim=HID_DIM,
                              output_dim=OUTPUT_DIM)
    outputs = jax.block_until_ready(outputs)

    assert outputs.shape == (TRG_LEN, BATCH, OUTPUT_DIM), outputs.shape
    assert outputs.dtype == jnp.float32
    assert bool(jnp.all(outputs[0] == 0.0))  # first timestep stays zero
    assert bool(jnp.all(jnp.isfinite(outputs)))
    print("KERNEL_OK")
</pallas_src>

<mosaic_0001>
module attributes {stable_mosaic.version = 11 : i64} {
  func.func @kernel(%arg0: memref<8xi32, #tpu.memory_space<smem>>, %arg1: memref<8x8x16xbf16, #tpu.memory_space<vmem>>, %arg2: memref<8x8x1xi32, #tpu.memory_space<vmem>>, %arg3: memref<16x128xbf16, #tpu.memory_space<vmem>>, %arg4: memref<32x128xbf16, #tpu.memory_space<vmem>>, %arg5: memref<32x128xbf16, #tpu.memory_space<vmem>>, %arg6: memref<32x128xbf16, #tpu.memory_space<vmem>>, %arg7: memref<1x128xf32, #tpu.memory_space<vmem>>, %arg8: memref<1x128xf32, #tpu.memory_space<vmem>>, %arg9: memref<16x128xbf16, #tpu.memory_space<vmem>>, %arg10: memref<32x128xbf16, #tpu.memory_space<vmem>>, %arg11: memref<32x128xbf16, #tpu.memory_space<vmem>>, %arg12: memref<32x128xbf16, #tpu.memory_space<vmem>>, %arg13: memref<1x128xf32, #tpu.memory_space<vmem>>, %arg14: memref<1x128xf32, #tpu.memory_space<vmem>>, %arg15: memref<128x16xbf16, #tpu.memory_space<vmem>>, %arg16: memref<32x128xbf16, #tpu.memory_space<vmem>>, %arg17: memref<1x128xf32, #tpu.memory_space<vmem>>, %arg18: memref<8x8x128xf32, #tpu.memory_space<vmem>>, %arg19: memref<8x128xf32, #tpu.memory_space<vmem>>) attributes {dimension_semantics = [], scalar_prefetch = 0 : i64, scratch_operands = 1 : i64, tpu.core_type = #tpu.core_type<tc>} {
    %0 = tpu.iota {dimensions = array<i32: 1>} : vector<8x128xi32>
    %c64_i32 = arith.constant 64 : i32
    %1 = vector.broadcast %c64_i32 : i32 to vector<8x128xi32>
    %2 = arith.cmpi sge, %0, %1 : vector<8x128xi32>
    %c96_i32 = arith.constant 96 : i32
    %3 = vector.broadcast %c96_i32 : i32 to vector<8x128xi32>
    %4 = arith.cmpi slt, %0, %3 : vector<8x128xi32>
    %5 = arith.andi %2, %4 : vector<8x128xi1>
    %6 = tpu.iota {dimensions = array<i32: 1>} : vector<8x128xi32>
    %c32_i32 = arith.constant 32 : i32
    %7 = vector.broadcast %c32_i32 : i32 to vector<8x128xi32>
    %8 = arith.cmpi slt, %6, %7 : vector<8x128xi32>
    %cst = arith.constant 0.000000e+00 : f32
    %9 = vector.broadcast %cst : f32 to vector<8x32xf32>
    %cst_0 = arith.constant 0.000000e+00 : f32
    %10 = vector.broadcast %cst_0 : f32 to vector<8x32xf32>
    %cst_1 = arith.constant 0.000000e+00 : f32
    %11 = vector.broadcast %cst_1 : f32 to vector<8x32xf32>
    %cst_2 = arith.constant 0.000000e+00 : f32
    %12 = vector.broadcast %cst_2 : f32 to vector<8x32xf32>
    %c0 = arith.constant 0 : index
    %c0_3 = arith.constant 0 : index
    %c0_4 = arith.constant 0 : index
    %13 = vector.load %arg1[%c0, %c0_3, %c0_4] : memref<8x8x16xbf16, #tpu.memory_space<vmem>>, vector<1x8x16xbf16>
    %14 = vector.shape_cast %13 : vector<1x8x16xbf16> to vector<8x16xbf16>
    %c0_5 = arith.constant 0 : index
    %c0_6 = arith.constant 0 : index
    %15 = vector.load %arg3[%c0_5, %c0_6] : memref<16x128xbf16, #tpu.memory_space<vmem>>, vector<16x128xbf16>
    %cst_7 = arith.constant dense<0.000000e+00> : vector<8x128xf32>
    %16 = tpu.matmul %14, %15, %cst_7 {dimension_numbers = #tpu.dot_dimension_numbers<[1], [0], [0], [1], [0, 0, 1, 1], [], []>} : vector<8x16xbf16>, vector<16x128xbf16>, vector<8x128xf32> -> vector<8x128xf32>
    %17 = arith.truncf %9 : vector<8x32xf32> to vector<8x32xbf16>
    %c0_8 = arith.constant 0 : index
    %c0_9 = arith.constant 0 : index
    %18 = vector.load %arg5[%c0_8, %c0_9] : memref<32x128xbf16, #tpu.memory_space<vmem>>, vector<32x128xbf16>
    %cst_10 = arith.constant dense<0.000000e+00> : vector<8x128xf32>
    %19 = tpu.matmul %17, %18, %cst_10 {dimension_numbers = #tpu.dot_dimension_numbers<[1], [0], [0], [1], [0, 0, 1, 1], [], []>} : vector<8x32xbf16>, vector<32x128xbf16>, vector<8x128xf32> -> vector<8x128xf32>
    %20 = arith.addf %16, %19 : vector<8x128xf32>
    %c0_11 = arith.constant 0 : index
    %c0_12 = arith.constant 0 : index
    %21 = vector.load %arg7[%c0_11, %c0_12] : memref<1x128xf32, #tpu.memory_space<vmem>>, vector<1x128xf32>
    %22 = vector.broadcast %21 : vector<1x128xf32> to vector<8x128xf32>
    %23 = arith.addf %20, %22 : vector<8x128xf32>
    %cst_13 = arith.constant 5.000000e-01 : f32
    %24 = vector.broadcast %cst_13 : f32 to vector<8x128xf32>
    %25 = arith.mulf %24, %23 : vector<8x128xf32>
    %26 = arith.select %5, %23, %25 : vector<8x128xi1>, vector<8x128xf32>
    %27 = math.tanh %26 : vector<8x128xf32>
    %cst_14 = arith.constant 5.000000e-01 : f32
    %28 = vector.broadcast %cst_14 : f32 to vector<8x128xf32>
    %29 = arith.mulf %28, %27 : vector<8x128xf32>
    %cst_15 = arith.constant 5.000000e-01 : f32
    %30 = vector.broadcast %cst_15 : f32 to vector<8x128xf32>
    %31 = arith.addf %29, %30 : vector<8x128xf32>
    %32 = arith.select %5, %27, %31 : vector<8x128xi1>, vector<8x128xf32>
    %33 = vector.extract_strided_slice %32 {offsets = [0, 0], sizes = [8, 32], strides = [1, 1]} : vector<8x128xf32> to vector<8x32xf32>
    %34 = vector.extract_strided_slice %32 {offsets = [0, 32], sizes = [8, 32], strides = [1, 1]} : vector<8x128xf32> to vector<8x32xf32>
    %35 = vector.extract_strided_slice %32 {offsets = [0, 64], sizes = [8, 32], strides = [1, 1]} : vector<8x128xf32> to vector<8x32xf32>
    %36 = vector.extract_strided_slice %32 {offsets = [0, 96], sizes = [8, 32], strides = [1, 1]} : vector<8x128xf32> to vector<8x32xf32>
    %37 = arith.mulf %34, %11 : vector<8x32xf32>
    %38 = arith.mulf %33, %35 : vector<8x32xf32>
    %39 = arith.addf %37, %38 : vector<8x32xf32>
    %40 = math.tanh %39 : vector<8x32xf32>
    %41 = arith.mulf %36, %40 : vector<8x32xf32>
    %42 = arith.truncf %41 : vector<8x32xf32> to vector<8x32xbf16>
    %c0_16 = arith.constant 0 : index
    %c0_17 = arith.constant 0 : index
    %43 = vector.load %arg4[%c0_16, %c0_17] : memref<32x128xbf16, #tpu.memory_space<vmem>>, vector<32x128xbf16>
    %cst_18 = arith.constant dense<0.000000e+00> : vector<8x128xf32>
    %44 = tpu.matmul %42, %43, %cst_18 {dimension_numbers = #tpu.dot_dimension_numbers<[1], [0], [0], [1], [0, 0, 1, 1], [], []>} : vector<8x32xbf16>, vector<32x128xbf16>, vector<8x128xf32> -> vector<8x128xf32>
    %45 = arith.truncf %10 : vector<8x32xf32> to vector<8x32xbf16>
    %c0_19 = arith.constant 0 : index
    %c0_20 = arith.constant 0 : index
    %46 = vector.load %arg6[%c0_19, %c0_20] : memref<32x128xbf16, #tpu.memory_space<vmem>>, vector<32x128xbf16>
    %cst_21 = arith.constant dense<0.000000e+00> : vector<8x128xf32>
    %47 = tpu.matmul %45, %46, %cst_21 {dimension_numbers = #tpu.dot_dimension_numbers<[1], [0], [0], [1], [0, 0, 1, 1], [], []>} : vector<8x32xbf16>, vector<32x128xbf16>, vector<8x128xf32> -> vector<8x128xf32>
    %48 = arith.addf %44, %47 : vector<8x128xf32>
    %c0_22 = arith.constant 0 : index
    %c0_23 = arith.constant 0 : index
    %49 = vector.load %arg8[%c0_22, %c0_23] : memref<1x128xf32, #tpu.memory_space<vmem>>, vector<1x128xf32>
    %50 = vector.broadcast %49 : vector<1x128xf32> to vector<8x128xf32>
    %51 = arith.addf %48, %50 : vector<8x128xf32>
    %cst_24 = arith.constant 5.000000e-01 : f32
    %52 = vector.broadcast %cst_24 : f32 to vector<8x128xf32>
    %53 = arith.mulf %52, %51 : vector<8x128xf32>
    %54 = arith.select %5, %51, %53 : vector<8x128xi1>, vector<8x128xf32>
    %55 = math.tanh %54 : vector<8x128xf32>
    %cst_25 = arith.constant 5.000000e-01 : f32
    %56 = vector.broadcast %cst_25 : f32 to vector<8x128xf32>
    %57 = arith.mulf %56, %55 : vector<8x128xf32>
    %cst_26 = arith.constant 5.000000e-01 : f32
    %58 = vector.broadcast %cst_26 : f32 to vector<8x128xf32>
    %59 = arith.addf %57, %58 : vector<8x128xf32>
    %60 = arith.select %5, %55, %59 : vector<8x128xi1>, vector<8x128xf32>
    %61 = vector.extract_strided_slice %60 {offsets = [0, 0], sizes = [8, 32], strides = [1, 1]} : vector<8x128xf32> to vector<8x32xf32>
    %62 = vector.extract_strided_slice %60 {offsets = [0, 32], sizes = [8, 32], strides = [1, 1]} : vector<8x128xf32> to vector<8x32xf32>
    %63 = vector.extract_strided_slice %60 {offsets = [0, 64], sizes = [8, 32], strides = [1, 1]} : vector<8x128xf32> to vector<8x32xf32>
    %64 = vector.extract_strided_slice %60 {offsets = [0, 96], sizes = [8, 32], strides = [1, 1]} : vector<8x128xf32> to vector<8x32xf32>
    %65 = arith.mulf %62, %12 : vector<8x32xf32>
    %66 = arith.mulf %61, %63 : vector<8x32xf32>
    %67 = arith.addf %65, %66 : vector<8x32xf32>
    %68 = math.tanh %67 : vector<8x32xf32>
    %69 = arith.mulf %64, %68 : vector<8x32xf32>
    %c1 = arith.constant 1 : index
    %c0_27 = arith.constant 0 : index
    %c0_28 = arith.constant 0 : index
    %70 = vector.load %arg1[%c1, %c0_27, %c0_28] : memref<8x8x16xbf16, #tpu.memory_space<vmem>>, vector<1x8x16xbf16>
    %71 = vector.shape_cast %70 : vector<1x8x16xbf16> to vector<8x16xbf16>
    %c0_29 = arith.constant 0 : index
    %c0_30 = arith.constant 0 : index
    %72 = vector.load %arg3[%c0_29, %c0_30] : memref<16x128xbf16, #tpu.memory_space<vmem>>, vector<16x128xbf16>
    %cst_31 = arith.constant dense<0.000000e+00> : vector<8x128xf32>
    %73 = tpu.matmul %71, %72, %cst_31 {dimension_numbers = #tpu.dot_dimension_numbers<[1], [0], [0], [1], [0, 0, 1, 1], [], []>} : vector<8x16xbf16>, vector<16x128xbf16>, vector<8x128xf32> -> vector<8x128xf32>
    %74 = arith.truncf %41 : vector<8x32xf32> to vector<8x32xbf16>
    %c0_32 = arith.constant 0 : index
    %c0_33 = arith.constant 0 : index
    %75 = vector.load %arg5[%c0_32, %c0_33] : memref<32x128xbf16, #tpu.memory_space<vmem>>, vector<32x128xbf16>
    %cst_34 = arith.constant dense<0.000000e+00> : vector<8x128xf32>
    %76 = tpu.matmul %74, %75, %cst_34 {dimension_numbers = #tpu.dot_dimension_numbers<[1], [0], [0], [1], [0, 0, 1, 1], [], []>} : vector<8x32xbf16>, vector<32x128xbf16>, vector<8x128xf32> -> vector<8x128xf32>
    %77 = arith.addf %73, %76 : vector<8x128xf32>
    %c0_35 = arith.constant 0 : index
    %c0_36 = arith.constant 0 : index
    %78 = vector.load %arg7[%c0_35, %c0_36] : memref<1x128xf32, #tpu.memory_space<vmem>>, vector<1x128xf32>
    %79 = vector.broadcast %78 : vector<1x128xf32> to vector<8x128xf32>
    %80 = arith.addf %77, %79 : vector<8x128xf32>
    %cst_37 = arith.constant 5.000000e-01 : f32
    %81 = vector.broadcast %cst_37 : f32 to vector<8x128xf32>
    %82 = arith.mulf %81, %80 : vector<8x128xf32>
    %83 = arith.select %5, %80, %82 : vector<8x128xi1>, vector<8x128xf32>
    %84 = math.tanh %83 : vector<8x128xf32>
    %cst_38 = arith.constant 5.000000e-01 : f32
    %85 = vector.broadcast %cst_38 : f32 to vector<8x128xf32>
    %86 = arith.mulf %85, %84 : vector<8x128xf32>
    %cst_39 = arith.constant 5.000000e-01 : f32
    %87 = vector.broadcast %cst_39 : f32 to vector<8x128xf32>
    %88 = arith.addf %86, %87 : vector<8x128xf32>
    %89 = arith.select %5, %84, %88 : vector<8x128xi1>, vector<8x128xf32>
    %90 = vector.extract_strided_slice %89 {offsets = [0, 0], sizes = [8, 32], strides = [1, 1]} : vector<8x128xf32> to vector<8x32xf32>
    %91 = vector.extract_strided_slice %89 {offsets = [0, 32], sizes = [8, 32], strides = [1, 1]} : vector<8x128xf32> to vector<8x32xf32>
    %92 = vector.extract_strided_slice %89 {offsets = [0, 64], sizes = [8, 32], strides = [1, 1]} : vector<8x128xf32> to vector<8x32xf32>
    %93 = vector.extract_strided_slice %89 {offsets = [0, 96], sizes = [8, 32], strides = [1, 1]} : vector<8x128xf32> to vector<8x32xf32>
    %94 = arith.mulf %91, %39 : vector<8x32xf32>
    %95 = arith.mulf %90, %92 : vector<8x32xf32>
    %96 = arith.addf %94, %95 : vector<8x32xf32>
    %97 = math.tanh %96 : vector<8x32xf32>
    %98 = arith.mulf %93, %97 : vector<8x32xf32>
    %99 = arith.truncf %98 : vector<8x32xf32> to vector<8x32xbf16>
    %c0_40 = arith.constant 0 : index
    %c0_41 = arith.constant 0 : index
    %100 = vector.load %arg4[%c0_40, %c0_41] : memref<32x128xbf16, #tpu.memory_space<vmem>>, vector<32x128xbf16>
    %cst_42 = arith.constant dense<0.000000e+00> : vector<8x128xf32>
    %101 = tpu.matmul %99, %100, %cst_42 {dimension_numbers = #tpu.dot_dimension_numbers<[1], [0], [0], [1], [0, 0, 1, 1], [], []>} : vector<8x32xbf16>, vector<32x128xbf16>, vector<8x128xf32> -> vector<8x128xf32>
    %102 = arith.truncf %69 : vector<8x32xf32> to vector<8x32xbf16>
    %c0_43 = arith.constant 0 : index
    %c0_44 = arith.constant 0 : index
    %103 = vector.load %arg6[%c0_43, %c0_44] : memref<32x128xbf16, #tpu.memory_space<vmem>>, vector<32x128xbf16>
    %cst_45 = arith.constant dense<0.000000e+00> : vector<8x128xf32>
    %104 = tpu.matmul %102, %103, %cst_45 {dimension_numbers = #tpu.dot_dimension_numbers<[1], [0], [0], [1], [0, 0, 1, 1], [], []>} : vector<8x32xbf16>, vector<32x128xbf16>, vector<8x128xf32> -> vector<8x128xf32>
    %105 = arith.addf %101, %104 : vector<8x128xf32>
    %c0_46 = arith.constant 0 : index
    %c0_47 = arith.constant 0 : index
    %106 = vector.load %arg8[%c0_46, %c0_47] : memref<1x128xf32, #tpu.memory_space<vmem>>, vector<1x128xf32>
    %107 = vector.broadcast %106 : vector<1x128xf32> to vector<8x128xf32>
    %108 = arith.addf %105, %107 : vector<8x128xf32>
    %cst_48 = arith.constant 5.000000e-01 : f32
    %109 = vector.broadcast %cst_48 : f32 to vector<8x128xf32>
    %110 = arith.mulf %109, %108 : vector<8x128xf32>
    %111 = arith.select %5, %108, %110 : vector<8x128xi1>, vector<8x128xf32>
    %112 = math.tanh %111 : vector<8x128xf32>
    %cst_49 = arith.constant 5.000000e-01 : f32
    %113 = vector.broadcast %cst_49 : f32 to vector<8x128xf32>
    %114 = arith.mulf %113, %112 : vector<8x128xf32>
    %cst_50 = arith.constant 5.000000e-01 : f32
    %115 = vector.broadcast %cst_50 : f32 to vector<8x128xf32>
    %116 = arith.addf %114, %115 : vector<8x128xf32>
    %117 = arith.select %5, %112, %116 : vector<8x128xi1>, vector<8x128xf32>
    %118 = vector.extract_strided_slice %117 {offsets = [0, 0], sizes = [8, 32], strides = [1, 1]} : vector<8x128xf32> to vector<8x32xf32>
    %119 = vector.extract_strided_slice %117 {offsets = [0, 32], sizes = [8, 32], strides = [1, 1]} : vector<8x128xf32> to vector<8x32xf32>
    %120 = vector.extract_strided_slice %117 {offsets = [0, 64], sizes = [8, 32], strides = [1, 1]} : vector<8x128xf32> to vector<8x32xf32>
    %121 = vector.extract_strided_slice %117 {offsets = [0, 96], sizes = [8, 32], strides = [1, 1]} : vector<8x128xf32> to vector<8x32xf32>
    %122 = arith.mulf %119, %67 : vector<8x32xf32>
    %123 = arith.mulf %118, %120 : vector<8x32xf32>
    %124 = arith.addf %122, %123 : vector<8x32xf32>
    %125 = math.tanh %124 : vector<8x32xf32>
    %126 = arith.mulf %121, %125 : vector<8x32xf32>
    %c2 = arith.constant 2 : index
    %c0_51 = arith.constant 0 : index
    %c0_52 = arith.constant 0 : index
    %127 = vector.load %arg1[%c2, %c0_51, %c0_52] : memref<8x8x16xbf16, #tpu.memory_space<vmem>>, vector<1x8x16xbf16>
    %128 = vector.shape_cast %127 : vector<1x8x16xbf16> to vector<8x16xbf16>
    %c0_53 = arith.constant 0 : index
    %c0_54 = arith.constant 0 : index
    %129 = vector.load %arg3[%c0_53, %c0_54] : memref<16x128xbf16, #tpu.memory_space<vmem>>, vector<16x128xbf16>
    %cst_55 = arith.constant dense<0.000000e+00> : vector<8x128xf32>
    %130 = tpu.matmul %128, %129, %cst_55 {dimension_numbers = #tpu.dot_dimension_numbers<[1], [0], [0], [1], [0, 0, 1, 1], [], []>} : vector<8x16xbf16>, vector<16x128xbf16>, vector<8x128xf32> -> vector<8x128xf32>
    %131 = arith.truncf %98 : vector<8x32xf32> to vector<8x32xbf16>
    %c0_56 = arith.constant 0 : index
    %c0_57 = arith.constant 0 : index
    %132 = vector.load %arg5[%c0_56, %c0_57] : memref<32x128xbf16, #tpu.memory_space<vmem>>, vector<32x128xbf16>
    %cst_58 = arith.constant dense<0.000000e+00> : vector<8x128xf32>
    %133 = tpu.matmul %131, %132, %cst_58 {dimension_numbers = #tpu.dot_dimension_numbers<[1], [0], [0], [1], [0, 0, 1, 1], [], []>} : vector<8x32xbf16>, vector<32x128xbf16>, vector<8x128xf32> -> vector<8x128xf32>
    %134 = arith.addf %130, %133 : vector<8x128xf32>
    %c0_59 = arith.constant 0 : index
    %c0_60 = arith.constant 0 : index
    %135 = vector.load %arg7[%c0_59, %c0_60] : memref<1x128xf32, #tpu.memory_space<vmem>>, vector<1x128xf32>
    %136 = vector.broadcast %135 : vector<1x128xf32> to vector<8x128xf32>
    %137 = arith.addf %134, %136 : vector<8x128xf32>
    %cst_61 = arith.constant 5.000000e-01 : f32
    %138 = vector.broadcast %cst_61 : f32 to vector<8x128xf32>
    %139 = arith.mulf %138, %137 : vector<8x128xf32>
    %140 = arith.select %5, %137, %139 : vector<8x128xi1>, vector<8x128xf32>
    %141 = math.tanh %140 : vector<8x128xf32>
    %cst_62 = arith.constant 5.000000e-01 : f32
    %142 = vector.broadcast %cst_62 : f32 to vector<8x128xf32>
    %143 = arith.mulf %142, %141 : vector<8x128xf32>
    %cst_63 = arith.constant 5.000000e-01 : f32
    %144 = vector.broadcast %cst_63 : f32 to vector<8x128xf32>
    %145 = arith.addf %143, %144 : vector<8x128xf32>
    %146 = arith.select %5, %141, %145 : vector<8x128xi1>, vector<8x128xf32>
    %147 = vector.extract_strided_slice %146 {offsets = [0, 0], sizes = [8, 32], strides = [1, 1]} : vector<8x128xf32> to vector<8x32xf32>
    %148 = vector.extract_strided_slice %146 {offsets = [0, 32], sizes = [8, 32], strides = [1, 1]} : vector<8x128xf32> to vector<8x32xf32>
    %149 = vector.extract_strided_slice %146 {offsets = [0, 64], sizes = [8, 32], strides = [1, 1]} : vector<8x128xf32> to vector<8x32xf32>
    %150 = vector.extract_strided_slice %146 {offsets = [0, 96], sizes = [8, 32], strides = [1, 1]} : vector<8x128xf32> to vector<8x32xf32>
    %151 = arith.mulf %148, %96 : vector<8x32xf32>
    %152 = arith.mulf %147, %149 : vector<8x32xf32>
    %153 = arith.addf %151, %152 : vector<8x32xf32>
    %154 = math.tanh %153 : vector<8x32xf32>
    %155 = arith.mulf %150, %154 : vector<8x32xf32>
    %156 = arith.truncf %155 : vector<8x32xf32> to vector<8x32xbf16>
    %c0_64 = arith.constant 0 : index
    %c0_65 = arith.constant 0 : index
    %157 = vector.load %arg4[%c0_64, %c0_65] : memref<32x128xbf16, #tpu.memory_space<vmem>>, vector<32x128xbf16>
    %cst_66 = arith.constant dense<0.000000e+00> : vector<8x128xf32>
    %158 = tpu.matmul %156, %157, %cst_66 {dimension_numbers = #tpu.dot_dimension_numbers<[1], [0], [0], [1], [0, 0, 1, 1], [], []>} : vector<8x32xbf16>, vector<32x128xbf16>, vector<8x128xf32> -> vector<8x128xf32>
    %159 = arith.truncf %126 : vector<8x32xf32> to vector<8x32xbf16>
    %c0_67 = arith.constant 0 : index
    %c0_68 = arith.constant 0 : index
    %160 = vector.load %arg6[%c0_67, %c0_68] : memref<32x128xbf16, #tpu.memory_space<vmem>>, vector<32x128xbf16>
    %cst_69 = arith.constant dense<0.000000e+00> : vector<8x128xf32>
    %161 = tpu.matmul %159, %160, %cst_69 {dimension_numbers = #tpu.dot_dimension_numbers<[1], [0], [0], [1], [0, 0, 1, 1], [], []>} : vector<8x32xbf16>, vector<32x128xbf16>, vector<8x128xf32> -> vector<8x128xf32>
    %162 = arith.addf %158, %161 : vector<8x128xf32>
    %c0_70 = arith.constant 0 : index
    %c0_71 = arith.constant 0 : index
    %163 = vector.load %arg8[%c0_70, %c0_71] : memref<1x128xf32, #tpu.memory_space<vmem>>, vector<1x128xf32>
    %164 = vector.broadcast %163 : vector<1x128xf32> to vector<8x128xf32>
    %165 = arith.addf %162, %164 : vector<8x128xf32>
    %cst_72 = arith.constant 5.000000e-01 : f32
    %166 = vector.broadcast %cst_72 : f32 to vector<8x128xf32>
    %167 = arith.mulf %166, %165 : vector<8x128xf32>
    %168 = arith.select %5, %165, %167 : vector<8x128xi1>, vector<8x128xf32>
    %169 = math.tanh %168 : vector<8x128xf32>
    %cst_73 = arith.constant 5.000000e-01 : f32
    %170 = vector.broadcast %cst_73 : f32 to vector<8x128xf32>
    %171 = arith.mulf %170, %169 : vector<8x128xf32>
    %cst_74 = arith.constant 5.000000e-01 : f32
    %172 = vector.broadcast %cst_74 : f32 to vector<8x128xf32>
    %173 = arith.addf %171, %172 : vector<8x128xf32>
    %174 = arith.select %5, %169, %173 : vector<8x128xi1>, vector<8x128xf32>
    %175 = vector.extract_strided_slice %174 {offsets = [0, 0], sizes = [8, 32], strides = [1, 1]} : vector<8x128xf32> to vector<8x32xf32>
    %176 = vector.extract_strided_slice %174 {offsets = [0, 32], sizes = [8, 32], strides = [1, 1]} : vector<8x128xf32> to vector<8x32xf32>
    %177 = vector.extract_strided_slice %174 {offsets = [0, 64], sizes = [8, 32], strides = [1, 1]} : vector<8x128xf32> to vector<8x32xf32>
    %178 = vector.extract_strided_slice %174 {offsets = [0, 96], sizes = [8, 32], strides = [1, 1]} : vector<8x128xf32> to vector<8x32xf32>
    %179 = arith.mulf %176, %124 : vector<8x32xf32>
    %180 = arith.mulf %175, %177 : vector<8x32xf32>
    %181 = arith.addf %179, %180 : vector<8x32xf32>
    %182 = math.tanh %181 : vector<8x32xf32>
    %183 = arith.mulf %178, %182 : vector<8x32xf32>
    %c3 = arith.constant 3 : index
    %c0_75 = arith.constant 0 : index
    %c0_76 = arith.constant 0 : index
    %184 = vector.load %arg1[%c3, %c0_75, %c0_76] : memref<8x8x16xbf16, #tpu.memory_space<vmem>>, vector<1x8x16xbf16>
    %185 = vector.shape_cast %184 : vector<1x8x16xbf16> to vector<8x16xbf16>
    %c0_77 = arith.constant 0 : index
    %c0_78 = arith.constant 0 : index
    %186 = vector.load %arg3[%c0_77, %c0_78] : memref<16x128xbf16, #tpu.memory_space<vmem>>, vector<16x128xbf16>
    %cst_79 = arith.constant dense<0.000000e+00> : vector<8x128xf32>
    %187 = tpu.matmul %185, %186, %cst_79 {dimension_numbers = #tpu.dot_dimension_numbers<[1], [0], [0], [1], [0, 0, 1, 1], [], []>} : vector<8x16xbf16>, vector<16x128xbf16>, vector<8x128xf32> -> vector<8x128xf32>
    %188 = arith.truncf %155 : vector<8x32xf32> to vector<8x32xbf16>
    %c0_80 = arith.constant 0 : index
    %c0_81 = arith.constant 0 : index
    %189 = vector.load %arg5[%c0_80, %c0_81] : memref<32x128xbf16, #tpu.memory_space<vmem>>, vector<32x128xbf16>
    %cst_82 = arith.constant dense<0.000000e+00> : vector<8x128xf32>
    %190 = tpu.matmul %188, %189, %cst_82 {dimension_numbers = #tpu.dot_dimension_numbers<[1], [0], [0], [1], [0, 0, 1, 1], [], []>} : vector<8x32xbf16>, vector<32x128xbf16>, vector<8x128xf32> -> vector<8x128xf32>
    %191 = arith.addf %187, %190 : vector<8x128xf32>
    %c0_83 = arith.constant 0 : index
    %c0_84 = arith.constant 0 : index
    %192 = vector.load %arg7[%c0_83, %c0_84] : memref<1x128xf32, #tpu.memory_space<vmem>>, vector<1x128xf32>
    %193 = vector.broadcast %192 : vector<1x128xf32> to vector<8x128xf32>
    %194 = arith.addf %191, %193 : vector<8x128xf32>
    %cst_85 = arith.constant 5.000000e-01 : f32
    %195 = vector.broadcast %cst_85 : f32 to vector<8x128xf32>
    %196 = arith.mulf %195, %194 : vector<8x128xf32>
    %197 = arith.select %5, %194, %196 : vector<8x128xi1>, vector<8x128xf32>
    %198 = math.tanh %197 : vector<8x128xf32>
    %cst_86 = arith.constant 5.000000e-01 : f32
    %199 = vector.broadcast %cst_86 : f32 to vector<8x128xf32>
    %200 = arith.mulf %199, %198 : vector<8x128xf32>
    %cst_87 = arith.constant 5.000000e-01 : f32
    %201 = vector.broadcast %cst_87 : f32 to vector<8x128xf32>
    %202 = arith.addf %200, %201 : vector<8x128xf32>
    %203 = arith.select %5, %198, %202 : vector<8x128xi1>, vector<8x128xf32>
    %204 = vector.extract_strided_slice %203 {offsets = [0, 0], sizes = [8, 32], strides = [1, 1]} : vector<8x128xf32> to vector<8x32xf32>
    %205 = vector.extract_strided_slice %203 {offsets = [0, 32], sizes = [8, 32], strides = [1, 1]} : vector<8x128xf32> to vector<8x32xf32>
    %206 = vector.extract_strided_slice %203 {offsets = [0, 64], sizes = [8, 32], strides = [1, 1]} : vector<8x128xf32> to vector<8x32xf32>
    %207 = vector.extract_strided_slice %203 {offsets = [0, 96], sizes = [8, 32], strides = [1, 1]} : vector<8x128xf32> to vector<8x32xf32>
    %208 = arith.mulf %205, %153 : vector<8x32xf32>
    %209 = arith.mulf %204, %206 : vector<8x32xf32>
    %210 = arith.addf %208, %209 : vector<8x32xf32>
    %211 = math.tanh %210 : vector<8x32xf32>
    %212 = arith.mulf %207, %211 : vector<8x32xf32>
    %213 = arith.truncf %212 : vector<8x32xf32> to vector<8x32xbf16>
    %c0_88 = arith.constant 0 : index
    %c0_89 = arith.constant 0 : index
    %214 = vector.load %arg4[%c0_88, %c0_89] : memref<32x128xbf16, #tpu.memory_space<vmem>>, vector<32x128xbf16>
    %cst_90 = arith.constant dense<0.000000e+00> : vector<8x128xf32>
    %215 = tpu.matmul %213, %214, %cst_90 {dimension_numbers = #tpu.dot_dimension_numbers<[1], [0], [0], [1], [0, 0, 1, 1], [], []>} : vector<8x32xbf16>, vector<32x128xbf16>, vector<8x128xf32> -> vector<8x128xf32>
    %216 = arith.truncf %183 : vector<8x32xf32> to vector<8x32xbf16>
    %c0_91 = arith.constant 0 : index
    %c0_92 = arith.constant 0 : index
    %217 = vector.load %arg6[%c0_91, %c0_92] : memref<32x128xbf16, #tpu.memory_space<vmem>>, vector<32x128xbf16>
    %cst_93 = arith.constant dense<0.000000e+00> : vector<8x128xf32>
    %218 = tpu.matmul %216, %217, %cst_93 {dimension_numbers = #tpu.dot_dimension_numbers<[1], [0], [0], [1], [0, 0, 1, 1], [], []>} : vector<8x32xbf16>, vector<32x128xbf16>, vector<8x128xf32> -> vector<8x128xf32>
    %219 = arith.addf %215, %218 : vector<8x128xf32>
    %c0_94 = arith.constant 0 : index
    %c0_95 = arith.constant 0 : index
    %220 = vector.load %arg8[%c0_94, %c0_95] : memref<1x128xf32, #tpu.memory_space<vmem>>, vector<1x128xf32>
    %221 = vector.broadcast %220 : vector<1x128xf32> to vector<8x128xf32>
    %222 = arith.addf %219, %221 : vector<8x128xf32>
    %cst_96 = arith.constant 5.000000e-01 : f32
    %223 = vector.broadcast %cst_96 : f32 to vector<8x128xf32>
    %224 = arith.mulf %223, %222 : vector<8x128xf32>
    %225 = arith.select %5, %222, %224 : vector<8x128xi1>, vector<8x128xf32>
    %226 = math.tanh %225 : vector<8x128xf32>
    %cst_97 = arith.constant 5.000000e-01 : f32
    %227 = vector.broadcast %cst_97 : f32 to vector<8x128xf32>
    %228 = arith.mulf %227, %226 : vector<8x128xf32>
    %cst_98 = arith.constant 5.000000e-01 : f32
    %229 = vector.broadcast %cst_98 : f32 to vector<8x128xf32>
    %230 = arith.addf %228, %229 : vector<8x128xf32>
    %231 = arith.select %5, %226, %230 : vector<8x128xi1>, vector<8x128xf32>
    %232 = vector.extract_strided_slice %231 {offsets = [0, 0], sizes = [8, 32], strides = [1, 1]} : vector<8x128xf32> to vector<8x32xf32>
    %233 = vector.extract_strided_slice %231 {offsets = [0, 32], sizes = [8, 32], strides = [1, 1]} : vector<8x128xf32> to vector<8x32xf32>
    %234 = vector.extract_strided_slice %231 {offsets = [0, 64], sizes = [8, 32], strides = [1, 1]} : vector<8x128xf32> to vector<8x32xf32>
    %235 = vector.extract_strided_slice %231 {offsets = [0, 96], sizes = [8, 32], strides = [1, 1]} : vector<8x128xf32> to vector<8x32xf32>
    %236 = arith.mulf %233, %181 : vector<8x32xf32>
    %237 = arith.mulf %232, %234 : vector<8x32xf32>
    %238 = arith.addf %236, %237 : vector<8x32xf32>
    %239 = math.tanh %238 : vector<8x32xf32>
    %240 = arith.mulf %235, %239 : vector<8x32xf32>
    %c4 = arith.constant 4 : index
    %c0_99 = arith.constant 0 : index
    %c0_100 = arith.constant 0 : index
    %241 = vector.load %arg1[%c4, %c0_99, %c0_100] : memref<8x8x16xbf16, #tpu.memory_space<vmem>>, vector<1x8x16xbf16>
    %242 = vector.shape_cast %241 : vector<1x8x16xbf16> to vector<8x16xbf16>
    %c0_101 = arith.constant 0 : index
    %c0_102 = arith.constant 0 : index
    %243 = vector.load %arg3[%c0_101, %c0_102] : memref<16x128xbf16, #tpu.memory_space<vmem>>, vector<16x128xbf16>
    %cst_103 = arith.constant dense<0.000000e+00> : vector<8x128xf32>
    %244 = tpu.matmul %242, %243, %cst_103 {dimension_numbers = #tpu.dot_dimension_numbers<[1], [0], [0], [1], [0, 0, 1, 1], [], []>} : vector<8x16xbf16>, vector<16x128xbf16>, vector<8x128xf32> -> vector<8x128xf32>
    %245 = arith.truncf %212 : vector<8x32xf32> to vector<8x32xbf16>
    %c0_104 = arith.constant 0 : index
    %c0_105 = arith.constant 0 : index
    %246 = vector.load %arg5[%c0_104, %c0_105] : memref<32x128xbf16, #tpu.memory_space<vmem>>, vector<32x128xbf16>
    %cst_106 = arith.constant dense<0.000000e+00> : vector<8x128xf32>
    %247 = tpu.matmul %245, %246, %cst_106 {dimension_numbers = #tpu.dot_dimension_numbers<[1], [0], [0], [1], [0, 0, 1, 1], [], []>} : vector<8x32xbf16>, vector<32x128xbf16>, vector<8x128xf32> -> vector<8x128xf32>
    %248 = arith.addf %244, %247 : vector<8x128xf32>
    %c0_107 = arith.constant 0 : index
    %c0_108 = arith.constant 0 : index
    %249 = vector.load %arg7[%c0_107, %c0_108] : memref<1x128xf32, #tpu.memory_space<vmem>>, vector<1x128xf32>
    %250 = vector.broadcast %249 : vector<1x128xf32> to vector<8x128xf32>
    %251 = arith.addf %248, %250 : vector<8x128xf32>
    %cst_109 = arith.constant 5.000000e-01 : f32
    %252 = vector.broadcast %cst_109 : f32 to vector<8x128xf32>
    %253 = arith.mulf %252, %251 : vector<8x128xf32>
    %254 = arith.select %5, %251, %253 : vector<8x128xi1>, vector<8x128xf32>
    %255 = math.tanh %254 : vector<8x128xf32>
    %cst_110 = arith.constant 5.000000e-01 : f32
    %256 = vector.broadcast %cst_110 : f32 to vector<8x128xf32>
    %257 = arith.mulf %256, %255 : vector<8x128xf32>
    %cst_111 = arith.constant 5.000000e-01 : f32
    %258 = vector.broadcast %cst_111 : f32 to vector<8x128xf32>
    %259 = arith.addf %257, %258 : vector<8x128xf32>
    %260 = arith.select %5, %255, %259 : vector<8x128xi1>, vector<8x128xf32>
    %261 = vector.extract_strided_slice %260 {offsets = [0, 0], sizes = [8, 32], strides = [1, 1]} : vector<8x128xf32> to vector<8x32xf32>
    %262 = vector.extract_strided_slice %260 {offsets = [0, 32], sizes = [8, 32], strides = [1, 1]} : vector<8x128xf32> to vector<8x32xf32>
    %263 = vector.extract_strided_slice %260 {offsets = [0, 64], sizes = [8, 32], strides = [1, 1]} : vector<8x128xf32> to vector<8x32xf32>
    %264 = vector.extract_strided_slice %260 {offsets = [0, 96], sizes = [8, 32], strides = [1, 1]} : vector<8x128xf32> to vector<8x32xf32>
    %265 = arith.mulf %262, %210 : vector<8x32xf32>
    %266 = arith.mulf %261, %263 : vector<8x32xf32>
    %267 = arith.addf %265, %266 : vector<8x32xf32>
    %268 = math.tanh %267 : vector<8x32xf32>
    %269 = arith.mulf %264, %268 : vector<8x32xf32>
    %270 = arith.truncf %269 : vector<8x32xf32> to vector<8x32xbf16>
    %c0_112 = arith.constant 0 : index
    %c0_113 = arith.constant 0 : index
    %271 = vector.load %arg4[%c0_112, %c0_113] : memref<32x128xbf16, #tpu.memory_space<vmem>>, vector<32x128xbf16>
    %cst_114 = arith.constant dense<0.000000e+00> : vector<8x128xf32>
    %272 = tpu.matmul %270, %271, %cst_114 {dimension_numbers = #tpu.dot_dimension_numbers<[1], [0], [0], [1], [0, 0, 1, 1], [], []>} : vector<8x32xbf16>, vector<32x128xbf16>, vector<8x128xf32> -> vector<8x128xf32>
    %273 = arith.truncf %240 : vector<8x32xf32> to vector<8x32xbf16>
    %c0_115 = arith.constant 0 : index
    %c0_116 = arith.constant 0 : index
    %274 = vector.load %arg6[%c0_115, %c0_116] : memref<32x128xbf16, #tpu.memory_space<vmem>>, vector<32x128xbf16>
    %cst_117 = arith.constant dense<0.000000e+00> : vector<8x128xf32>
    %275 = tpu.matmul %273, %274, %cst_117 {dimension_numbers = #tpu.dot_dimension_numbers<[1], [0], [0], [1], [0, 0, 1, 1], [], []>} : vector<8x32xbf16>, vector<32x128xbf16>, vector<8x128xf32> -> vector<8x128xf32>
    %276 = arith.addf %272, %275 : vector<8x128xf32>
    %c0_118 = arith.constant 0 : index
    %c0_119 = arith.constant 0 : index
    %277 = vector.load %arg8[%c0_118, %c0_119] : memref<1x128xf32, #tpu.memory_space<vmem>>, vector<1x128xf32>
    %278 = vector.broadcast %277 : vector<1x128xf32> to vector<8x128xf32>
    %279 = arith.addf %276, %278 : vector<8x128xf32>
    %cst_120 = arith.constant 5.000000e-01 : f32
    %280 = vector.broadcast %cst_120 : f32 to vector<8x128xf32>
    %281 = arith.mulf %280, %279 : vector<8x128xf32>
    %282 = arith.select %5, %279, %281 : vector<8x128xi1>, vector<8x128xf32>
    %283 = math.tanh %282 : vector<8x128xf32>
    %cst_121 = arith.constant 5.000000e-01 : f32
    %284 = vector.broadcast %cst_121 : f32 to vector<8x128xf32>
    %285 = arith.mulf %284, %283 : vector<8x128xf32>
    %cst_122 = arith.constant 5.000000e-01 : f32
    %286 = vector.broadcast %cst_122 : f32 to vector<8x128xf32>
    %287 = arith.addf %285, %286 : vector<8x128xf32>
    %288 = arith.select %5, %283, %287 : vector<8x128xi1>, vector<8x128xf32>
    %289 = vector.extract_strided_slice %288 {offsets = [0, 0], sizes = [8, 32], strides = [1, 1]} : vector<8x128xf32> to vector<8x32xf32>
    %290 = vector.extract_strided_slice %288 {offsets = [0, 32], sizes = [8, 32], strides = [1, 1]} : vector<8x128xf32> to vector<8x32xf32>
    %291 = vector.extract_strided_slice %288 {offsets = [0, 64], sizes = [8, 32], strides = [1, 1]} : vector<8x128xf32> to vector<8x32xf32>
    %292 = vector.extract_strided_slice %288 {offsets = [0, 96], sizes = [8, 32], strides = [1, 1]} : vector<8x128xf32> to vector<8x32xf32>
    %293 = arith.mulf %290, %238 : vector<8x32xf32>
    %294 = arith.mulf %289, %291 : vector<8x32xf32>
    %295 = arith.addf %293, %294 : vector<8x32xf32>
    %296 = math.tanh %295 : vector<8x32xf32>
    %297 = arith.mulf %292, %296 : vector<8x32xf32>
    %c5 = arith.constant 5 : index
    %c0_123 = arith.constant 0 : index
    %c0_124 = arith.constant 0 : index
    %298 = vector.load %arg1[%c5, %c0_123, %c0_124] : memref<8x8x16xbf16, #tpu.memory_space<vmem>>, vector<1x8x16xbf16>
    %299 = vector.shape_cast %298 : vector<1x8x16xbf16> to vector<8x16xbf16>
    %c0_125 = arith.constant 0 : index
    %c0_126 = arith.constant 0 : index
    %300 = vector.load %arg3[%c0_125, %c0_126] : memref<16x128xbf16, #tpu.memory_space<vmem>>, vector<16x128xbf16>
    %cst_127 = arith.constant dense<0.000000e+00> : vector<8x128xf32>
    %301 = tpu.matmul %299, %300, %cst_127 {dimension_numbers = #tpu.dot_dimension_numbers<[1], [0], [0], [1], [0, 0, 1, 1], [], []>} : vector<8x16xbf16>, vector<16x128xbf16>, vector<8x128xf32> -> vector<8x128xf32>
    %302 = arith.truncf %269 : vector<8x32xf32> to vector<8x32xbf16>
    %c0_128 = arith.constant 0 : index
    %c0_129 = arith.constant 0 : index
    %303 = vector.load %arg5[%c0_128, %c0_129] : memref<32x128xbf16, #tpu.memory_space<vmem>>, vector<32x128xbf16>
    %cst_130 = arith.constant dense<0.000000e+00> : vector<8x128xf32>
    %304 = tpu.matmul %302, %303, %cst_130 {dimension_numbers = #tpu.dot_dimension_numbers<[1], [0], [0], [1], [0, 0, 1, 1], [], []>} : vector<8x32xbf16>, vector<32x128xbf16>, vector<8x128xf32> -> vector<8x128xf32>
    %305 = arith.addf %301, %304 : vector<8x128xf32>
    %c0_131 = arith.constant 0 : index
    %c0_132 = arith.constant 0 : index
    %306 = vector.load %arg7[%c0_131, %c0_132] : memref<1x128xf32, #tpu.memory_space<vmem>>, vector<1x128xf32>
    %307 = vector.broadcast %306 : vector<1x128xf32> to vector<8x128xf32>
    %308 = arith.addf %305, %307 : vector<8x128xf32>
    %cst_133 = arith.constant 5.000000e-01 : f32
    %309 = vector.broadcast %cst_133 : f32 to vector<8x128xf32>
    %310 = arith.mulf %309, %308 : vector<8x128xf32>
    %311 = arith.select %5, %308, %310 : vector<8x128xi1>, vector<8x128xf32>
    %312 = math.tanh %311 : vector<8x128xf32>
    %cst_134 = arith.constant 5.000000e-01 : f32
    %313 = vector.broadcast %cst_134 : f32 to vector<8x128xf32>
    %314 = arith.mulf %313, %312 : vector<8x128xf32>
    %cst_135 = arith.constant 5.000000e-01 : f32
    %315 = vector.broadcast %cst_135 : f32 to vector<8x128xf32>
    %316 = arith.addf %314, %315 : vector<8x128xf32>
    %317 = arith.select %5, %312, %316 : vector<8x128xi1>, vector<8x128xf32>
    %318 = vector.extract_strided_slice %317 {offsets = [0, 0], sizes = [8, 32], strides = [1, 1]} : vector<8x128xf32> to vector<8x32xf32>
    %319 = vector.extract_strided_slice %317 {offsets = [0, 32], sizes = [8, 32], strides = [1, 1]} : vector<8x128xf32> to vector<8x32xf32>
    %320 = vector.extract_strided_slice %317 {offsets = [0, 64], sizes = [8, 32], strides = [1, 1]} : vector<8x128xf32> to vector<8x32xf32>
    %321 = vector.extract_strided_slice %317 {offsets = [0, 96], sizes = [8, 32], strides = [1, 1]} : vector<8x128xf32> to vector<8x32xf32>
    %322 = arith.mulf %319, %267 : vector<8x32xf32>
    %323 = arith.mulf %318, %320 : vector<8x32xf32>
    %324 = arith.addf %322, %323 : vector<8x32xf32>
    %325 = math.tanh %324 : vector<8x32xf32>
    %326 = arith.mulf %321, %325 : vector<8x32xf32>
    %327 = arith.truncf %326 : vector<8x32xf32> to vector<8x32xbf16>
    %c0_136 = arith.constant 0 : index
    %c0_137 = arith.constant 0 : index
    %328 = vector.load %arg4[%c0_136, %c0_137] : memref<32x128xbf16, #tpu.memory_space<vmem>>, vector<32x128xbf16>
    %cst_138 = arith.constant dense<0.000000e+00> : vector<8x128xf32>
    %329 = tpu.matmul %327, %328, %cst_138 {dimension_numbers = #tpu.dot_dimension_numbers<[1], [0], [0], [1], [0, 0, 1, 1], [], []>} : vector<8x32xbf16>, vector<32x128xbf16>, vector<8x128xf32> -> vector<8x128xf32>
    %330 = arith.truncf %297 : vector<8x32xf32> to vector<8x32xbf16>
    %c0_139 = arith.constant 0 : index
    %c0_140 = arith.constant 0 : index
    %331 = vector.load %arg6[%c0_139, %c0_140] : memref<32x128xbf16, #tpu.memory_space<vmem>>, vector<32x128xbf16>
    %cst_141 = arith.constant dense<0.000000e+00> : vector<8x128xf32>
    %332 = tpu.matmul %330, %331, %cst_141 {dimension_numbers = #tpu.dot_dimension_numbers<[1], [0], [0], [1], [0, 0, 1, 1], [], []>} : vector<8x32xbf16>, vector<32x128xbf16>, vector<8x128xf32> -> vector<8x128xf32>
    %333 = arith.addf %329, %332 : vector<8x128xf32>
    %c0_142 = arith.constant 0 : index
    %c0_143 = arith.constant 0 : index
    %334 = vector.load %arg8[%c0_142, %c0_143] : memref<1x128xf32, #tpu.memory_space<vmem>>, vector<1x128xf32>
    %335 = vector.broadcast %334 : vector<1x128xf32> to vector<8x128xf32>
    %336 = arith.addf %333, %335 : vector<8x128xf32>
    %cst_144 = arith.constant 5.000000e-01 : f32
    %337 = vector.broadcast %cst_144 : f32 to vector<8x128xf32>
    %338 = arith.mulf %337, %336 : vector<8x128xf32>
    %339 = arith.select %5, %336, %338 : vector<8x128xi1>, vector<8x128xf32>
    %340 = math.tanh %339 : vector<8x128xf32>
    %cst_145 = arith.constant 5.000000e-01 : f32
    %341 = vector.broadcast %cst_145 : f32 to vector<8x128xf32>
    %342 = arith.mulf %341, %340 : vector<8x128xf32>
    %cst_146 = arith.constant 5.000000e-01 : f32
    %343 = vector.broadcast %cst_146 : f32 to vector<8x128xf32>
    %344 = arith.addf %342, %343 : vector<8x128xf32>
    %345 = arith.select %5, %340, %344 : vector<8x128xi1>, vector<8x128xf32>
    %346 = vector.extract_strided_slice %345 {offsets = [0, 0], sizes = [8, 32], strides = [1, 1]} : vector<8x128xf32> to vector<8x32xf32>
    %347 = vector.extract_strided_slice %345 {offsets = [0, 32], sizes = [8, 32], strides = [1, 1]} : vector<8x128xf32> to vector<8x32xf32>
    %348 = vector.extract_strided_slice %345 {offsets = [0, 64], sizes = [8, 32], strides = [1, 1]} : vector<8x128xf32> to vector<8x32xf32>
    %349 = vector.extract_strided_slice %345 {offsets = [0, 96], sizes = [8, 32], strides = [1, 1]} : vector<8x128xf32> to vector<8x32xf32>
    %350 = arith.mulf %347, %295 : vector<8x32xf32>
    %351 = arith.mulf %346, %348 : vector<8x32xf32>
    %352 = arith.addf %350, %351 : vector<8x32xf32>
    %353 = math.tanh %352 : vector<8x32xf32>
    %354 = arith.mulf %349, %353 : vector<8x32xf32>
    %c6 = arith.constant 6 : index
    %c0_147 = arith.constant 0 : index
    %c0_148 = arith.constant 0 : index
    %355 = vector.load %arg1[%c6, %c0_147, %c0_148] : memref<8x8x16xbf16, #tpu.memory_space<vmem>>, vector<1x8x16xbf16>
    %356 = vector.shape_cast %355 : vector<1x8x16xbf16> to vector<8x16xbf16>
    %c0_149 = arith.constant 0 : index
    %c0_150 = arith.constant 0 : index
    %357 = vector.load %arg3[%c0_149, %c0_150] : memref<16x128xbf16, #tpu.memory_space<vmem>>, vector<16x128xbf16>
    %cst_151 = arith.constant dense<0.000000e+00> : vector<8x128xf32>
    %358 = tpu.matmul %356, %357, %cst_151 {dimension_numbers = #tpu.dot_dimension_numbers<[1], [0], [0], [1], [0, 0, 1, 1], [], []>} : vector<8x16xbf16>, vector<16x128xbf16>, vector<8x128xf32> -> vector<8x128xf32>
    %359 = arith.truncf %326 : vector<8x32xf32> to vector<8x32xbf16>
    %c0_152 = arith.constant 0 : index
    %c0_153 = arith.constant 0 : index
    %360 = vector.load %arg5[%c0_152, %c0_153] : memref<32x128xbf16, #tpu.memory_space<vmem>>, vector<32x128xbf16>
    %cst_154 = arith.constant dense<0.000000e+00> : vector<8x128xf32>
    %361 = tpu.matmul %359, %360, %cst_154 {dimension_numbers = #tpu.dot_dimension_numbers<[1], [0], [0], [1], [0, 0, 1, 1], [], []>} : vector<8x32xbf16>, vector<32x128xbf16>, vector<8x128xf32> -> vector<8x128xf32>
    %362 = arith.addf %358, %361 : vector<8x128xf32>
    %c0_155 = arith.constant 0 : index
    %c0_156 = arith.constant 0 : index
    %363 = vector.load %arg7[%c0_155, %c0_156] : memref<1x128xf32, #tpu.memory_space<vmem>>, vector<1x128xf32>
    %364 = vector.broadcast %363 : vector<1x128xf32> to vector<8x128xf32>
    %365 = arith.addf %362, %364 : vector<8x128xf32>
    %cst_157 = arith.constant 5.000000e-01 : f32
    %366 = vector.broadcast %cst_157 : f32 to vector<8x128xf32>
    %367 = arith.mulf %366, %365 : vector<8x128xf32>
    %368 = arith.select %5, %365, %367 : vector<8x128xi1>, vector<8x128xf32>
    %369 = math.tanh %368 : vector<8x128xf32>
    %cst_158 = arith.constant 5.000000e-01 : f32
    %370 = vector.broadcast %cst_158 : f32 to vector<8x128xf32>
    %371 = arith.mulf %370, %369 : vector<8x128xf32>
    %cst_159 = arith.constant 5.000000e-01 : f32
    %372 = vector.broadcast %cst_159 : f32 to vector<8x128xf32>
    %373 = arith.addf %371, %372 : vector<8x128xf32>
    %374 = arith.select %5, %369, %373 : vector<8x128xi1>, vector<8x128xf32>
    %375 = vector.extract_strided_slice %374 {offsets = [0, 0], sizes = [8, 32], strides = [1, 1]} : vector<8x128xf32> to vector<8x32xf32>
    %376 = vector.extract_strided_slice %374 {offsets = [0, 32], sizes = [8, 32], strides = [1, 1]} : vector<8x128xf32> to vector<8x32xf32>
    %377 = vector.extract_strided_slice %374 {offsets = [0, 64], sizes = [8, 32], strides = [1, 1]} : vector<8x128xf32> to vector<8x32xf32>
    %378 = vector.extract_strided_slice %374 {offsets = [0, 96], sizes = [8, 32], strides = [1, 1]} : vector<8x128xf32> to vector<8x32xf32>
    %379 = arith.mulf %376, %324 : vector<8x32xf32>
    %380 = arith.mulf %375, %377 : vector<8x32xf32>
    %381 = arith.addf %379, %380 : vector<8x32xf32>
    %382 = math.tanh %381 : vector<8x32xf32>
    %383 = arith.mulf %378, %382 : vector<8x32xf32>
    %384 = arith.truncf %383 : vector<8x32xf32> to vector<8x32xbf16>
    %c0_160 = arith.constant 0 : index
    %c0_161 = arith.constant 0 : index
    %385 = vector.load %arg4[%c0_160, %c0_161] : memref<32x128xbf16, #tpu.memory_space<vmem>>, vector<32x128xbf16>
    %cst_162 = arith.constant dense<0.000000e+00> : vector<8x128xf32>
    %386 = tpu.matmul %384, %385, %cst_162 {dimension_numbers = #tpu.dot_dimension_numbers<[1], [0], [0], [1], [0, 0, 1, 1], [], []>} : vector<8x32xbf16>, vector<32x128xbf16>, vector<8x128xf32> -> vector<8x128xf32>
    %387 = arith.truncf %354 : vector<8x32xf32> to vector<8x32xbf16>
    %c0_163 = arith.constant 0 : index
    %c0_164 = arith.constant 0 : index
    %388 = vector.load %arg6[%c0_163, %c0_164] : memref<32x128xbf16, #tpu.memory_space<vmem>>, vector<32x128xbf16>
    %cst_165 = arith.constant dense<0.000000e+00> : vector<8x128xf32>
    %389 = tpu.matmul %387, %388, %cst_165 {dimension_numbers = #tpu.dot_dimension_numbers<[1], [0], [0], [1], [0, 0, 1, 1], [], []>} : vector<8x32xbf16>, vector<32x128xbf16>, vector<8x128xf32> -> vector<8x128xf32>
    %390 = arith.addf %386, %389 : vector<8x128xf32>
    %c0_166 = arith.constant 0 : index
    %c0_167 = arith.constant 0 : index
    %391 = vector.load %arg8[%c0_166, %c0_167] : memref<1x128xf32, #tpu.memory_space<vmem>>, vector<1x128xf32>
    %392 = vector.broadcast %391 : vector<1x128xf32> to vector<8x128xf32>
    %393 = arith.addf %390, %392 : vector<8x128xf32>
    %cst_168 = arith.constant 5.000000e-01 : f32
    %394 = vector.broadcast %cst_168 : f32 to vector<8x128xf32>
    %395 = arith.mulf %394, %393 : vector<8x128xf32>
    %396 = arith.select %5, %393, %395 : vector<8x128xi1>, vector<8x128xf32>
    %397 = math.tanh %396 : vector<8x128xf32>
    %cst_169 = arith.constant 5.000000e-01 : f32
    %398 = vector.broadcast %cst_169 : f32 to vector<8x128xf32>
    %399 = arith.mulf %398, %397 : vector<8x128xf32>
    %cst_170 = arith.constant 5.000000e-01 : f32
    %400 = vector.broadcast %cst_170 : f32 to vector<8x128xf32>
    %401 = arith.addf %399, %400 : vector<8x128xf32>
    %402 = arith.select %5, %397, %401 : vector<8x128xi1>, vector<8x128xf32>
    %403 = vector.extract_strided_slice %402 {offsets = [0, 0], sizes = [8, 32], strides = [1, 1]} : vector<8x128xf32> to vector<8x32xf32>
    %404 = vector.extract_strided_slice %402 {offsets = [0, 32], sizes = [8, 32], strides = [1, 1]} : vector<8x128xf32> to vector<8x32xf32>
    %405 = vector.extract_strided_slice %402 {offsets = [0, 64], sizes = [8, 32], strides = [1, 1]} : vector<8x128xf32> to vector<8x32xf32>
    %406 = vector.extract_strided_slice %402 {offsets = [0, 96], sizes = [8, 32], strides = [1, 1]} : vector<8x128xf32> to vector<8x32xf32>
    %407 = arith.mulf %404, %352 : vector<8x32xf32>
    %408 = arith.mulf %403, %405 : vector<8x32xf32>
    %409 = arith.addf %407, %408 : vector<8x32xf32>
    %410 = math.tanh %409 : vector<8x32xf32>
    %411 = arith.mulf %406, %410 : vector<8x32xf32>
    %c7 = arith.constant 7 : index
    %c0_171 = arith.constant 0 : index
    %c0_172 = arith.constant 0 : index
    %412 = vector.load %arg1[%c7, %c0_171, %c0_172] : memref<8x8x16xbf16, #tpu.memory_space<vmem>>, vector<1x8x16xbf16>
    %413 = vector.shape_cast %412 : vector<1x8x16xbf16> to vector<8x16xbf16>
    %c0_173 = arith.constant 0 : index
    %c0_174 = arith.constant 0 : index
    %414 = vector.load %arg3[%c0_173, %c0_174] : memref<16x128xbf16, #tpu.memory_space<vmem>>, vector<16x128xbf16>
    %cst_175 = arith.constant dense<0.000000e+00> : vector<8x128xf32>
    %415 = tpu.matmul %413, %414, %cst_175 {dimension_numbers = #tpu.dot_dimension_numbers<[1], [0], [0], [1], [0, 0, 1, 1], [], []>} : vector<8x16xbf16>, vector<16x128xbf16>, vector<8x128xf32> -> vector<8x128xf32>
    %416 = arith.truncf %383 : vector<8x32xf32> to vector<8x32xbf16>
    %c0_176 = arith.constant 0 : index
    %c0_177 = arith.constant 0 : index
    %417 = vector.load %arg5[%c0_176, %c0_177] : memref<32x128xbf16, #tpu.memory_space<vmem>>, vector<32x128xbf16>
    %cst_178 = arith.constant dense<0.000000e+00> : vector<8x128xf32>
    %418 = tpu.matmul %416, %417, %cst_178 {dimension_numbers = #tpu.dot_dimension_numbers<[1], [0], [0], [1], [0, 0, 1, 1], [], []>} : vector<8x32xbf16>, vector<32x128xbf16>, vector<8x128xf32> -> vector<8x128xf32>
    %419 = arith.addf %415, %418 : vector<8x128xf32>
    %c0_179 = arith.constant 0 : index
    %c0_180 = arith.constant 0 : index
    %420 = vector.load %arg7[%c0_179, %c0_180] : memref<1x128xf32, #tpu.memory_space<vmem>>, vector<1x128xf32>
    %421 = vector.broadcast %420 : vector<1x128xf32> to vector<8x128xf32>
    %422 = arith.addf %419, %421 : vector<8x128xf32>
    %cst_181 = arith.constant 5.000000e-01 : f32
    %423 = vector.broadcast %cst_181 : f32 to vector<8x128xf32>
    %424 = arith.mulf %423, %422 : vector<8x128xf32>
    %425 = arith.select %5, %422, %424 : vector<8x128xi1>, vector<8x128xf32>
    %426 = math.tanh %425 : vector<8x128xf32>
    %cst_182 = arith.constant 5.000000e-01 : f32
    %427 = vector.broadcast %cst_182 : f32 to vector<8x128xf32>
    %428 = arith.mulf %427, %426 : vector<8x128xf32>
    %cst_183 = arith.constant 5.000000e-01 : f32
    %429 = vector.broadcast %cst_183 : f32 to vector<8x128xf32>
    %430 = arith.addf %428, %429 : vector<8x128xf32>
    %431 = arith.select %5, %426, %430 : vector<8x128xi1>, vector<8x128xf32>
    %432 = vector.extract_strided_slice %431 {offsets = [0, 0], sizes = [8, 32], strides = [1, 1]} : vector<8x128xf32> to vector<8x32xf32>
    %433 = vector.extract_strided_slice %431 {offsets = [0, 32], sizes = [8, 32], strides = [1, 1]} : vector<8x128xf32> to vector<8x32xf32>
    %434 = vector.extract_strided_slice %431 {offsets = [0, 64], sizes = [8, 32], strides = [1, 1]} : vector<8x128xf32> to vector<8x32xf32>
    %435 = vector.extract_strided_slice %431 {offsets = [0, 96], sizes = [8, 32], strides = [1, 1]} : vector<8x128xf32> to vector<8x32xf32>
    %436 = arith.mulf %433, %381 : vector<8x32xf32>
    %437 = arith.mulf %432, %434 : vector<8x32xf32>
    %438 = arith.addf %436, %437 : vector<8x32xf32>
    %439 = math.tanh %438 : vector<8x32xf32>
    %440 = arith.mulf %435, %439 : vector<8x32xf32>
    %441 = arith.truncf %440 : vector<8x32xf32> to vector<8x32xbf16>
    %c0_184 = arith.constant 0 : index
    %c0_185 = arith.constant 0 : index
    %442 = vector.load %arg4[%c0_184, %c0_185] : memref<32x128xbf16, #tpu.memory_space<vmem>>, vector<32x128xbf16>
    %cst_186 = arith.constant dense<0.000000e+00> : vector<8x128xf32>
    %443 = tpu.matmul %441, %442, %cst_186 {dimension_numbers = #tpu.dot_dimension_numbers<[1], [0], [0], [1], [0, 0, 1, 1], [], []>} : vector<8x32xbf16>, vector<32x128xbf16>, vector<8x128xf32> -> vector<8x128xf32>
    %444 = arith.truncf %411 : vector<8x32xf32> to vector<8x32xbf16>
    %c0_187 = arith.constant 0 : index
    %c0_188 = arith.constant 0 : index
    %445 = vector.load %arg6[%c0_187, %c0_188] : memref<32x128xbf16, #tpu.memory_space<vmem>>, vector<32x128xbf16>
    %cst_189 = arith.constant dense<0.000000e+00> : vector<8x128xf32>
    %446 = tpu.matmul %444, %445, %cst_189 {dimension_numbers = #tpu.dot_dimension_numbers<[1], [0], [0], [1], [0, 0, 1, 1], [], []>} : vector<8x32xbf16>, vector<32x128xbf16>, vector<8x128xf32> -> vector<8x128xf32>
    %447 = arith.addf %443, %446 : vector<8x128xf32>
    %c0_190 = arith.constant 0 : index
    %c0_191 = arith.constant 0 : index
    %448 = vector.load %arg8[%c0_190, %c0_191] : memref<1x128xf32, #tpu.memory_space<vmem>>, vector<1x128xf32>
    %449 = vector.broadcast %448 : vector<1x128xf32> to vector<8x128xf32>
    %450 = arith.addf %447, %449 : vector<8x128xf32>
    %cst_192 = arith.constant 5.000000e-01 : f32
    %451 = vector.broadcast %cst_192 : f32 to vector<8x128xf32>
    %452 = arith.mulf %451, %450 : vector<8x128xf32>
    %453 = arith.select %5, %450, %452 : vector<8x128xi1>, vector<8x128xf32>
    %454 = math.tanh %453 : vector<8x128xf32>
    %cst_193 = arith.constant 5.000000e-01 : f32
    %455 = vector.broadcast %cst_193 : f32 to vector<8x128xf32>
    %456 = arith.mulf %455, %454 : vector<8x128xf32>
    %cst_194 = arith.constant 5.000000e-01 : f32
    %457 = vector.broadcast %cst_194 : f32 to vector<8x128xf32>
    %458 = arith.addf %456, %457 : vector<8x128xf32>
    %459 = arith.select %5, %454, %458 : vector<8x128xi1>, vector<8x128xf32>
    %460 = vector.extract_strided_slice %459 {offsets = [0, 0], sizes = [8, 32], strides = [1, 1]} : vector<8x128xf32> to vector<8x32xf32>
    %461 = vector.extract_strided_slice %459 {offsets = [0, 32], sizes = [8, 32], strides = [1, 1]} : vector<8x128xf32> to vector<8x32xf32>
    %462 = vector.extract_strided_slice %459 {offsets = [0, 64], sizes = [8, 32], strides = [1, 1]} : vector<8x128xf32> to vector<8x32xf32>
    %463 = vector.extract_strided_slice %459 {offsets = [0, 96], sizes = [8, 32], strides = [1, 1]} : vector<8x128xf32> to vector<8x32xf32>
    %464 = arith.mulf %461, %409 : vector<8x32xf32>
    %465 = arith.mulf %460, %462 : vector<8x32xf32>
    %466 = arith.addf %464, %465 : vector<8x32xf32>
    %467 = math.tanh %466 : vector<8x32xf32>
    %468 = arith.mulf %463, %467 : vector<8x32xf32>
    %cst_195 = arith.constant 0.000000e+00 : f32
    %469 = vector.broadcast %cst_195 : f32 to vector<8x128xf32>
    %c0_196 = arith.constant 0 : index
    %c0_197 = arith.constant 0 : index
    %c0_198 = arith.constant 0 : index
    %470 = vector.load %arg18[%c0_196, %c0_197, %c0_198] : memref<8x8x128xf32, #tpu.memory_space<vmem>>, vector<1x8x128xf32>
    %471 = vector.shape_cast %470 : vector<1x8x128xf32> to vector<8x128xf32>
    %472 = vector.shape_cast %469 : vector<8x128xf32> to vector<1x8x128xf32>
    tpu.vector_store %arg18[%c0_196, %c0_197, %c0_198], %472 {strides = array<i32>} : memref<8x8x128xf32, #tpu.memory_space<vmem>>, vector<1x8x128xf32>,
    %c0_199 = arith.constant 0 : index
    %c0_200 = arith.constant 0 : index
    %c0_201 = arith.constant 0 : index
    %473 = vector.load %arg2[%c0_199, %c0_200, %c0_201] : memref<8x8x1xi32, #tpu.memory_space<vmem>>, vector<1x8x1xi32>
    %474 = vector.shape_cast %473 : vector<1x8x1xi32> to vector<8x1xi32>
    %475 = vector.broadcast %474 : vector<8x1xi32> to vector<8x128xi32>
    %476 = arith.cmpi eq, %6, %475 : vector<8x128xi32>
    %477 = arith.extui %476 : vector<8x128xi1> to vector<8x128xi32>
    %478 = arith.sitofp %477 : vector<8x128xi32> to vector<8x128xf32>
    %c0_202 = arith.constant 0 : index
    %c0_203 = arith.constant 0 : index
    %479 = vector.load %arg19[%c0_202, %c0_203] : memref<8x128xf32, #tpu.memory_space<vmem>>, vector<8x128xf32>
    tpu.vector_store %arg19[%c0_202, %c0_203], %478 {strides = array<i32>} : memref<8x128xf32, #tpu.memory_space<vmem>>, vector<8x128xf32>,
    %c0_204 = arith.constant 0 : index
    %c0_205 = arith.constant 0 : index
    %480 = vector.load %arg19[%c0_204, %c0_205] : memref<8x128xf32, #tpu.memory_space<vmem>>, vector<8x128xf32>
    %481 = arith.truncf %480 : vector<8x128xf32> to vector<8x128xbf16>
    %c0_206 = arith.constant 0 : index
    %c0_207 = arith.constant 0 : index
    %482 = vector.load %arg15[%c0_206, %c0_207] : memref<128x16xbf16, #tpu.memory_space<vmem>>, vector<128x16xbf16>
    %cst_208 = arith.constant dense<0.000000e+00> : vector<8x16xf32>
    %483 = tpu.matmul %481, %482, %cst_208 {dimension_numbers = #tpu.dot_dimension_numbers<[1], [0], [0], [1], [0, 0, 1, 1], [], []>} : vector<8x128xbf16>, vector<128x16xbf16>, vector<8x16xf32> -> vector<8x16xf32>
    %484 = arith.truncf %483 : vector<8x16xf32> to vector<8x16xbf16>
    %c0_209 = arith.constant 0 : index
    %c0_210 = arith.constant 0 : index
    %485 = vector.load %arg9[%c0_209, %c0_210] : memref<16x128xbf16, #tpu.memory_space<vmem>>, vector<16x128xbf16>
    %cst_211 = arith.constant dense<0.000000e+00> : vector<8x128xf32>
    %486 = tpu.matmul %484, %485, %cst_211 {dimension_numbers = #tpu.dot_dimension_numbers<[1], [0], [0], [1], [0, 0, 1, 1], [], []>} : vector<8x16xbf16>, vector<16x128xbf16>, vector<8x128xf32> -> vector<8x128xf32>
    %487 = arith.truncf %440 : vector<8x32xf32> to vector<8x32xbf16>
    %c0_212 = arith.constant 0 : index
    %c0_213 = arith.constant 0 : index
    %488 = vector.load %arg11[%c0_212, %c0_213] : memref<32x128xbf16, #tpu.memory_space<vmem>>, vector<32x128xbf16>
    %cst_214 = arith.constant dense<0.000000e+00> : vector<8x128xf32>
    %489 = tpu.matmul %487, %488, %cst_214 {dimension_numbers = #tpu.dot_dimension_numbers<[1], [0], [0], [1], [0, 0, 1, 1], [], []>} : vector<8x32xbf16>, vector<32x128xbf16>, vector<8x128xf32> -> vector<8x128xf32>
    %490 = arith.addf %486, %489 : vector<8x128xf32>
    %c0_215 = arith.constant 0 : index
    %c0_216 = arith.constant 0 : index
    %491 = vector.load %arg13[%c0_215, %c0_216] : memref<1x128xf32, #tpu.memory_space<vmem>>, vector<1x128xf32>
    %492 = vector.broadcast %491 : vector<1x128xf32> to vector<8x128xf32>
    %493 = arith.addf %490, %492 : vector<8x128xf32>
    %cst_217 = arith.constant 5.000000e-01 : f32
    %494 = vector.broadcast %cst_217 : f32 to vector<8x128xf32>
    %495 = arith.mulf %494, %493 : vector<8x128xf32>
    %496 = arith.select %5, %493, %495 : vector<8x128xi1>, vector<8x128xf32>
    %497 = math.tanh %496 : vector<8x128xf32>
    %cst_218 = arith.constant 5.000000e-01 : f32
    %498 = vector.broadcast %cst_218 : f32 to vector<8x128xf32>
    %499 = arith.mulf %498, %497 : vector<8x128xf32>
    %cst_219 = arith.constant 5.000000e-01 : f32
    %500 = vector.broadcast %cst_219 : f32 to vector<8x128xf32>
    %501 = arith.addf %499, %500 : vector<8x128xf32>
    %502 = arith.select %5, %497, %501 : vector<8x128xi1>, vector<8x128xf32>
    %503 = vector.extract_strided_slice %502 {offsets = [0, 0], sizes = [8, 32], strides = [1, 1]} : vector<8x128xf32> to vector<8x32xf32>
    %504 = vector.extract_strided_slice %502 {offsets = [0, 32], sizes = [8, 32], strides = [1, 1]} : vector<8x128xf32> to vector<8x32xf32>
    %505 = vector.extract_strided_slice %502 {offsets = [0, 64], sizes = [8, 32], strides = [1, 1]} : vector<8x128xf32> to vector<8x32xf32>
    %506 = vector.extract_strided_slice %502 {offsets = [0, 96], sizes = [8, 32], strides = [1, 1]} : vector<8x128xf32> to vector<8x32xf32>
    %507 = arith.mulf %504, %438 : vector<8x32xf32>
    %508 = arith.mulf %503, %505 : vector<8x32xf32>
    %509 = arith.addf %507, %508 : vector<8x32xf32>
    %510 = math.tanh %509 : vector<8x32xf32>
    %511 = arith.mulf %506, %510 : vector<8x32xf32>
    %512 = arith.truncf %511 : vector<8x32xf32> to vector<8x32xbf16>
    %c0_220 = arith.constant 0 : index
    %c0_221 = arith.constant 0 : index
    %513 = vector.load %arg10[%c0_220, %c0_221] : memref<32x128xbf16, #tpu.memory_space<vmem>>, vector<32x128xbf16>
    %cst_222 = arith.constant dense<0.000000e+00> : vector<8x128xf32>
    %514 = tpu.matmul %512, %513, %cst_222 {dimension_numbers = #tpu.dot_dimension_numbers<[1], [0], [0], [1], [0, 0, 1, 1], [], []>} : vector<8x32xbf16>, vector<32x128xbf16>, vector<8x128xf32> -> vector<8x128xf32>
    %515 = arith.truncf %468 : vector<8x32xf32> to vector<8x32xbf16>
    %c0_223 = arith.constant 0 : index
    %c0_224 = arith.constant 0 : index
    %516 = vector.load %arg12[%c0_223, %c0_224] : memref<32x128xbf16, #tpu.memory_space<vmem>>, vector<32x128xbf16>
    %cst_225 = arith.constant dense<0.000000e+00> : vector<8x128xf32>
    %517 = tpu.matmul %515, %516, %cst_225 {dimension_numbers = #tpu.dot_dimension_numbers<[1], [0], [0], [1], [0, 0, 1, 1], [], []>} : vector<8x32xbf16>, vector<32x128xbf16>, vector<8x128xf32> -> vector<8x128xf32>
    %518 = arith.addf %514, %517 : vector<8x128xf32>
    %c0_226 = arith.constant 0 : index
    %c0_227 = arith.constant 0 : index
    %519 = vector.load %arg14[%c0_226, %c0_227] : memref<1x128xf32, #tpu.memory_space<vmem>>, vector<1x128xf32>
    %520 = vector.broadcast %519 : vector<1x128xf32> to vector<8x128xf32>
    %521 = arith.addf %518, %520 : vector<8x128xf32>
    %cst_228 = arith.constant 5.000000e-01 : f32
    %522 = vector.broadcast %cst_228 : f32 to vector<8x128xf32>
    %523 = arith.mulf %522, %521 : vector<8x128xf32>
    %524 = arith.select %5, %521, %523 : vector<8x128xi1>, vector<8x128xf32>
    %525 = math.tanh %524 : vector<8x128xf32>
    %cst_229 = arith.constant 5.000000e-01 : f32
    %526 = vector.broadcast %cst_229 : f32 to vector<8x128xf32>
    %527 = arith.mulf %526, %525 : vector<8x128xf32>
    %cst_230 = arith.constant 5.000000e-01 : f32
    %528 = vector.broadcast %cst_230 : f32 to vector<8x128xf32>
    %529 = arith.addf %527, %528 : vector<8x128xf32>
    %530 = arith.select %5, %525, %529 : vector<8x128xi1>, vector<8x128xf32>
    %531 = vector.extract_strided_slice %530 {offsets = [0, 0], sizes = [8, 32], strides = [1, 1]} : vector<8x128xf32> to vector<8x32xf32>
    %532 = vector.extract_strided_slice %530 {offsets = [0, 32], sizes = [8, 32], strides = [1, 1]} : vector<8x128xf32> to vector<8x32xf32>
    %533 = vector.extract_strided_slice %530 {offsets = [0, 64], sizes = [8, 32], strides = [1, 1]} : vector<8x128xf32> to vector<8x32xf32>
    %534 = vector.extract_strided_slice %530 {offsets = [0, 96], sizes = [8, 32], strides = [1, 1]} : vector<8x128xf32> to vector<8x32xf32>
    %535 = arith.mulf %532, %466 : vector<8x32xf32>
    %536 = arith.mulf %531, %533 : vector<8x32xf32>
    %537 = arith.addf %535, %536 : vector<8x32xf32>
    %538 = math.tanh %537 : vector<8x32xf32>
    %539 = arith.mulf %534, %538 : vector<8x32xf32>
    %540 = arith.truncf %539 : vector<8x32xf32> to vector<8x32xbf16>
    %c0_231 = arith.constant 0 : index
    %c0_232 = arith.constant 0 : index
    %541 = vector.load %arg16[%c0_231, %c0_232] : memref<32x128xbf16, #tpu.memory_space<vmem>>, vector<32x128xbf16>
    %cst_233 = arith.constant dense<0.000000e+00> : vector<8x128xf32>
    %542 = tpu.matmul %540, %541, %cst_233 {dimension_numbers = #tpu.dot_dimension_numbers<[1], [0], [0], [1], [0, 0, 1, 1], [], []>} : vector<8x32xbf16>, vector<32x128xbf16>, vector<8x128xf32> -> vector<8x128xf32>
    %c0_234 = arith.constant 0 : index
    %c0_235 = arith.constant 0 : index
    %543 = vector.load %arg17[%c0_234, %c0_235] : memref<1x128xf32, #tpu.memory_space<vmem>>, vector<1x128xf32>
    %544 = vector.broadcast %543 : vector<1x128xf32> to vector<8x128xf32>
    %545 = arith.addf %542, %544 : vector<8x128xf32>
    %c1_236 = arith.constant 1 : index
    %c0_237 = arith.constant 0 : index
    %c0_238 = arith.constant 0 : index
    %546 = vector.load %arg18[%c1_236, %c0_237, %c0_238] : memref<8x8x128xf32, #tpu.memory_space<vmem>>, vector<1x8x128xf32>
    %547 = vector.shape_cast %546 : vector<1x8x128xf32> to vector<8x128xf32>
    %548 = vector.shape_cast %545 : vector<8x128xf32> to vector<1x8x128xf32>
    tpu.vector_store %arg18[%c1_236, %c0_237, %c0_238], %548 {strides = array<i32>} : memref<8x8x128xf32, #tpu.memory_space<vmem>>, vector<1x8x128xf32>,
    %c1_239 = arith.constant 1 : index
    %549 = memref.load %arg0[%c1_239] : memref<8xi32, #tpu.memory_space<smem>>
    %c0_i32 = arith.constant 0 : i32
    %550 = arith.cmpi sgt, %549, %c0_i32 : i32
    %551 = arith.extui %550 : i1 to i32
    %c0_i32_240 = arith.constant 0 : i32
    %552 = arith.cmpi ne, %551, %c0_i32_240 : i32
    scf.if %552 {
      %c1_478 = arith.constant 1 : index
      %c0_479 = arith.constant 0 : index
      %c0_480 = arith.constant 0 : index
      %1005 = vector.load %arg2[%c1_478, %c0_479, %c0_480] : memref<8x8x1xi32, #tpu.memory_space<vmem>>, vector<1x8x1xi32>
      %1006 = vector.shape_cast %1005 : vector<1x8x1xi32> to vector<8x1xi32>
      %1007 = vector.broadcast %1006 : vector<8x1xi32> to vector<8x128xi32>
      %1008 = arith.cmpi eq, %6, %1007 : vector<8x128xi32>
      %1009 = arith.extui %1008 : vector<8x128xi1> to vector<8x128xi32>
      %1010 = arith.sitofp %1009 : vector<8x128xi32> to vector<8x128xf32>
      %c0_481 = arith.constant 0 : index
      %c0_482 = arith.constant 0 : index
      %1011 = vector.load %arg19[%c0_481, %c0_482] : memref<8x128xf32, #tpu.memory_space<vmem>>, vector<8x128xf32>
      tpu.vector_store %arg19[%c0_481, %c0_482], %1010 {strides = array<i32>} : memref<8x128xf32, #tpu.memory_space<vmem>>, vector<8x128xf32>,
    } else {
    }
    %c0_i32_241 = arith.constant 0 : i32
    %553 = arith.cmpi eq, %549, %c0_i32_241 : i32
    %554 = arith.extui %553 : i1 to i32
    %c0_i32_242 = arith.constant 0 : i32
    %555 = arith.cmpi ne, %554, %c0_i32_242 : i32
    scf.if %555 {
      %cst_478 = arith.constant -1.000000e+30 : f32
      %1005 = vector.broadcast %cst_478 : f32 to vector<8x128xf32>
      %1006 = arith.select %8, %545, %1005 : vector<8x128xi1>, vector<8x128xf32>
      %cst_479 = arith.constant dense<0xFF800000> : vector<8xf32>
      %1007 = vector.multi_reduction <maximumf>, %1006, %cst_479 [1] : vector<8x128xf32> to vector<8xf32>
      %1008 = vector.shape_cast %1007 : vector<8xf32> to vector<8x1xf32>
      %1009 = vector.broadcast %1008 : vector<8x1xf32> to vector<8x128xf32>
      %1010 = arith.cmpf oeq, %1006, %1009 : vector<8x128xf32>
      %c128_i32 = arith.constant 128 : i32
      %1011 = vector.broadcast %c128_i32 : i32 to vector<8x128xi32>
      %1012 = arith.select %1010, %6, %1011 : vector<8x128xi1>, vector<8x128xi32>
      %cst_480 = arith.constant dense<2147483647> : vector<8xi32>
      %1013 = vector.multi_reduction <minsi>, %1012, %cst_480 [1] : vector<8x128xi32> to vector<8xi32>
      %1014 = vector.shape_cast %1013 : vector<8xi32> to vector<8x1xi32>
      %1015 = vector.broadcast %1014 : vector<8x1xi32> to vector<8x128xi32>
      %1016 = arith.cmpi eq, %6, %1015 : vector<8x128xi32>
      %1017 = arith.extui %1016 : vector<8x128xi1> to vector<8x128xi32>
      %1018 = arith.sitofp %1017 : vector<8x128xi32> to vector<8x128xf32>
      %c0_481 = arith.constant 0 : index
      %c0_482 = arith.constant 0 : index
      %1019 = vector.load %arg19[%c0_481, %c0_482] : memref<8x128xf32, #tpu.memory_space<vmem>>, vector<8x128xf32>
      tpu.vector_store %arg19[%c0_481, %c0_482], %1018 {strides = array<i32>} : memref<8x128xf32, #tpu.memory_space<vmem>>, vector<8x128xf32>,
    } else {
    }
    %c0_243 = arith.constant 0 : index
    %c0_244 = arith.constant 0 : index
    %556 = vector.load %arg19[%c0_243, %c0_244] : memref<8x128xf32, #tpu.memory_space<vmem>>, vector<8x128xf32>
    %557 = arith.truncf %556 : vector<8x128xf32> to vector<8x128xbf16>
    %c0_245 = arith.constant 0 : index
    %c0_246 = arith.constant 0 : index
    %558 = vector.load %arg15[%c0_245, %c0_246] : memref<128x16xbf16, #tpu.memory_space<vmem>>, vector<128x16xbf16>
    %cst_247 = arith.constant dense<0.000000e+00> : vector<8x16xf32>
    %559 = tpu.matmul %557, %558, %cst_247 {dimension_numbers = #tpu.dot_dimension_numbers<[1], [0], [0], [1], [0, 0, 1, 1], [], []>} : vector<8x128xbf16>, vector<128x16xbf16>, vector<8x16xf32> -> vector<8x16xf32>
    %560 = arith.truncf %559 : vector<8x16xf32> to vector<8x16xbf16>
    %c0_248 = arith.constant 0 : index
    %c0_249 = arith.constant 0 : index
    %561 = vector.load %arg9[%c0_248, %c0_249] : memref<16x128xbf16, #tpu.memory_space<vmem>>, vector<16x128xbf16>
    %cst_250 = arith.constant dense<0.000000e+00> : vector<8x128xf32>
    %562 = tpu.matmul %560, %561, %cst_250 {dimension_numbers = #tpu.dot_dimension_numbers<[1], [0], [0], [1], [0, 0, 1, 1], [], []>} : vector<8x16xbf16>, vector<16x128xbf16>, vector<8x128xf32> -> vector<8x128xf32>
    %563 = arith.truncf %511 : vector<8x32xf32> to vector<8x32xbf16>
    %c0_251 = arith.constant 0 : index
    %c0_252 = arith.constant 0 : index
    %564 = vector.load %arg11[%c0_251, %c0_252] : memref<32x128xbf16, #tpu.memory_space<vmem>>, vector<32x128xbf16>
    %cst_253 = arith.constant dense<0.000000e+00> : vector<8x128xf32>
    %565 = tpu.matmul %563, %564, %cst_253 {dimension_numbers = #tpu.dot_dimension_numbers<[1], [0], [0], [1], [0, 0, 1, 1], [], []>} : vector<8x32xbf16>, vector<32x128xbf16>, vector<8x128xf32> -> vector<8x128xf32>
    %566 = arith.addf %562, %565 : vector<8x128xf32>
    %c0_254 = arith.constant 0 : index
    %c0_255 = arith.constant 0 : index
    %567 = vector.load %arg13[%c0_254, %c0_255] : memref<1x128xf32, #tpu.memory_space<vmem>>, vector<1x128xf32>
    %568 = vector.broadcast %567 : vector<1x128xf32> to vector<8x128xf32>
    %569 = arith.addf %566, %568 : vector<8x128xf32>
    %cst_256 = arith.constant 5.000000e-01 : f32
    %570 = vector.broadcast %cst_256 : f32 to vector<8x128xf32>
    %571 = arith.mulf %570, %569 : vector<8x128xf32>
    %572 = arith.select %5, %569, %571 : vector<8x128xi1>, vector<8x128xf32>
    %573 = math.tanh %572 : vector<8x128xf32>
    %cst_257 = arith.constant 5.000000e-01 : f32
    %574 = vector.broadcast %cst_257 : f32 to vector<8x128xf32>
    %575 = arith.mulf %574, %573 : vector<8x128xf32>
    %cst_258 = arith.constant 5.000000e-01 : f32
    %576 = vector.broadcast %cst_258 : f32 to vector<8x128xf32>
    %577 = arith.addf %575, %576 : vector<8x128xf32>
    %578 = arith.select %5, %573, %577 : vector<8x128xi1>, vector<8x128xf32>
    %579 = vector.extract_strided_slice %578 {offsets = [0, 0], sizes = [8, 32], strides = [1, 1]} : vector<8x128xf32> to vector<8x32xf32>
    %580 = vector.extract_strided_slice %578 {offsets = [0, 32], sizes = [8, 32], strides = [1, 1]} : vector<8x128xf32> to vector<8x32xf32>
    %581 = vector.extract_strided_slice %578 {offsets = [0, 64], sizes = [8, 32], strides = [1, 1]} : vector<8x128xf32> to vector<8x32xf32>
    %582 = vector.extract_strided_slice %578 {offsets = [0, 96], sizes = [8, 32], strides = [1, 1]} : vector<8x128xf32> to vector<8x32xf32>
    %583 = arith.mulf %580, %509 : vector<8x32xf32>
    %584 = arith.mulf %579, %581 : vector<8x32xf32>
    %585 = arith.addf %583, %584 : vector<8x32xf32>
    %586 = math.tanh %585 : vector<8x32xf32>
    %587 = arith.mulf %582, %586 : vector<8x32xf32>
    %588 = arith.truncf %587 : vector<8x32xf32> to vector<8x32xbf16>
    %c0_259 = arith.constant 0 : index
    %c0_260 = arith.constant 0 : index
    %589 = vector.load %arg10[%c0_259, %c0_260] : memref<32x128xbf16, #tpu.memory_space<vmem>>, vector<32x128xbf16>
    %cst_261 = arith.constant dense<0.000000e+00> : vector<8x128xf32>
    %590 = tpu.matmul %588, %589, %cst_261 {dimension_numbers = #tpu.dot_dimension_numbers<[1], [0], [0], [1], [0, 0, 1, 1], [], []>} : vector<8x32xbf16>, vector<32x128xbf16>, vector<8x128xf32> -> vector<8x128xf32>
    %591 = arith.truncf %539 : vector<8x32xf32> to vector<8x32xbf16>
    %c0_262 = arith.constant 0 : index
    %c0_263 = arith.constant 0 : index
    %592 = vector.load %arg12[%c0_262, %c0_263] : memref<32x128xbf16, #tpu.memory_space<vmem>>, vector<32x128xbf16>
    %cst_264 = arith.constant dense<0.000000e+00> : vector<8x128xf32>
    %593 = tpu.matmul %591, %592, %cst_264 {dimension_numbers = #tpu.dot_dimension_numbers<[1], [0], [0], [1], [0, 0, 1, 1], [], []>} : vector<8x32xbf16>, vector<32x128xbf16>, vector<8x128xf32> -> vector<8x128xf32>
    %594 = arith.addf %590, %593 : vector<8x128xf32>
    %c0_265 = arith.constant 0 : index
    %c0_266 = arith.constant 0 : index
    %595 = vector.load %arg14[%c0_265, %c0_266] : memref<1x128xf32, #tpu.memory_space<vmem>>, vector<1x128xf32>
    %596 = vector.broadcast %595 : vector<1x128xf32> to vector<8x128xf32>
    %597 = arith.addf %594, %596 : vector<8x128xf32>
    %cst_267 = arith.constant 5.000000e-01 : f32
    %598 = vector.broadcast %cst_267 : f32 to vector<8x128xf32>
    %599 = arith.mulf %598, %597 : vector<8x128xf32>
    %600 = arith.select %5, %597, %599 : vector<8x128xi1>, vector<8x128xf32>
    %601 = math.tanh %600 : vector<8x128xf32>
    %cst_268 = arith.constant 5.000000e-01 : f32
    %602 = vector.broadcast %cst_268 : f32 to vector<8x128xf32>
    %603 = arith.mulf %602, %601 : vector<8x128xf32>
    %cst_269 = arith.constant 5.000000e-01 : f32
    %604 = vector.broadcast %cst_269 : f32 to vector<8x128xf32>
    %605 = arith.addf %603, %604 : vector<8x128xf32>
    %606 = arith.select %5, %601, %605 : vector<8x128xi1>, vector<8x128xf32>
    %607 = vector.extract_strided_slice %606 {offsets = [0, 0], sizes = [8, 32], strides = [1, 1]} : vector<8x128xf32> to vector<8x32xf32>
    %608 = vector.extract_strided_slice %606 {offsets = [0, 32], sizes = [8, 32], strides = [1, 1]} : vector<8x128xf32> to vector<8x32xf32>
    %609 = vector.extract_strided_slice %606 {offsets = [0, 64], sizes = [8, 32], strides = [1, 1]} : vector<8x128xf32> to vector<8x32xf32>
    %610 = vector.extract_strided_slice %606 {offsets = [0, 96], sizes = [8, 32], strides = [1, 1]} : vector<8x128xf32> to vector<8x32xf32>
    %611 = arith.mulf %608, %537 : vector<8x32xf32>
    %612 = arith.mulf %607, %609 : vector<8x32xf32>
    %613 = arith.addf %611, %612 : vector<8x32xf32>
    %614 = math.tanh %613 : vector<8x32xf32>
    %615 = arith.mulf %610, %614 : vector<8x32xf32>
    %616 = arith.truncf %615 : vector<8x32xf32> to vector<8x32xbf16>
    %c0_270 = arith.constant 0 : index
    %c0_271 = arith.constant 0 : index
    %617 = vector.load %arg16[%c0_270, %c0_271] : memref<32x128xbf16, #tpu.memory_space<vmem>>, vector<32x128xbf16>
    %cst_272 = arith.constant dense<0.000000e+00> : vector<8x128xf32>
    %618 = tpu.matmul %616, %617, %cst_272 {dimension_numbers = #tpu.dot_dimension_numbers<[1], [0], [0], [1], [0, 0, 1, 1], [], []>} : vector<8x32xbf16>, vector<32x128xbf16>, vector<8x128xf32> -> vector<8x128xf32>
    %c0_273 = arith.constant 0 : index
    %c0_274 = arith.constant 0 : index
    %619 = vector.load %arg17[%c0_273, %c0_274] : memref<1x128xf32, #tpu.memory_space<vmem>>, vector<1x128xf32>
    %620 = vector.broadcast %619 : vector<1x128xf32> to vector<8x128xf32>
    %621 = arith.addf %618, %620 : vector<8x128xf32>
    %c2_275 = arith.constant 2 : index
    %c0_276 = arith.constant 0 : index
    %c0_277 = arith.constant 0 : index
    %622 = vector.load %arg18[%c2_275, %c0_276, %c0_277] : memref<8x8x128xf32, #tpu.memory_space<vmem>>, vector<1x8x128xf32>
    %623 = vector.shape_cast %622 : vector<1x8x128xf32> to vector<8x128xf32>
    %624 = vector.shape_cast %621 : vector<8x128xf32> to vector<1x8x128xf32>
    tpu.vector_store %arg18[%c2_275, %c0_276, %c0_277], %624 {strides = array<i32>} : memref<8x8x128xf32, #tpu.memory_space<vmem>>, vector<1x8x128xf32>,
    %c2_278 = arith.constant 2 : index
    %625 = memref.load %arg0[%c2_278] : memref<8xi32, #tpu.memory_space<smem>>
    %c0_i32_279 = arith.constant 0 : i32
    %626 = arith.cmpi sgt, %625, %c0_i32_279 : i32
    %627 = arith.extui %626 : i1 to i32
    %c0_i32_280 = arith.constant 0 : i32
    %628 = arith.cmpi ne, %627, %c0_i32_280 : i32
    scf.if %628 {
      %c2_478 = arith.constant 2 : index
      %c0_479 = arith.constant 0 : index
      %c0_480 = arith.constant 0 : index
      %1005 = vector.load %arg2[%c2_478, %c0_479, %c0_480] : memref<8x8x1xi32, #tpu.memory_space<vmem>>, vector<1x8x1xi32>
      %1006 = vector.shape_cast %1005 : vector<1x8x1xi32> to vector<8x1xi32>
      %1007 = vector.broadcast %1006 : vector<8x1xi32> to vector<8x128xi32>
      %1008 = arith.cmpi eq, %6, %1007 : vector<8x128xi32>
      %1009 = arith.extui %1008 : vector<8x128xi1> to vector<8x128xi32>
      %1010 = arith.sitofp %1009 : vector<8x128xi32> to vector<8x128xf32>
      %c0_481 = arith.constant 0 : index
      %c0_482 = arith.constant 0 : index
      %1011 = vector.load %arg19[%c0_481, %c0_482] : memref<8x128xf32, #tpu.memory_space<vmem>>, vector<8x128xf32>
      tpu.vector_store %arg19[%c0_481, %c0_482], %1010 {strides = array<i32>} : memref<8x128xf32, #tpu.memory_space<vmem>>, vector<8x128xf32>,
    } else {
    }
    %c0_i32_281 = arith.constant 0 : i32
    %629 = arith.cmpi eq, %625, %c0_i32_281 : i32
    %630 = arith.extui %629 : i1 to i32
    %c0_i32_282 = arith.constant 0 : i32
    %631 = arith.cmpi ne, %630, %c0_i32_282 : i32
    scf.if %631 {
      %cst_478 = arith.constant -1.000000e+30 : f32
      %1005 = vector.broadcast %cst_478 : f32 to vector<8x128xf32>
      %1006 = arith.select %8, %621, %1005 : vector<8x128xi1>, vector<8x128xf32>
      %cst_479 = arith.constant dense<0xFF800000> : vector<8xf32>
      %1007 = vector.multi_reduction <maximumf>, %1006, %cst_479 [1] : vector<8x128xf32> to vector<8xf32>
      %1008 = vector.shape_cast %1007 : vector<8xf32> to vector<8x1xf32>
      %1009 = vector.broadcast %1008 : vector<8x1xf32> to vector<8x128xf32>
      %1010 = arith.cmpf oeq, %1006, %1009 : vector<8x128xf32>
      %c128_i32 = arith.constant 128 : i32
      %1011 = vector.broadcast %c128_i32 : i32 to vector<8x128xi32>
      %1012 = arith.select %1010, %6, %1011 : vector<8x128xi1>, vector<8x128xi32>
      %cst_480 = arith.constant dense<2147483647> : vector<8xi32>
      %1013 = vector.multi_reduction <minsi>, %1012, %cst_480 [1] : vector<8x128xi32> to vector<8xi32>
      %1014 = vector.shape_cast %1013 : vector<8xi32> to vector<8x1xi32>
      %1015 = vector.broadcast %1014 : vector<8x1xi32> to vector<8x128xi32>
      %1016 = arith.cmpi eq, %6, %1015 : vector<8x128xi32>
      %1017 = arith.extui %1016 : vector<8x128xi1> to vector<8x128xi32>
      %1018 = arith.sitofp %1017 : vector<8x128xi32> to vector<8x128xf32>
      %c0_481 = arith.constant 0 : index
      %c0_482 = arith.constant 0 : index
      %1019 = vector.load %arg19[%c0_481, %c0_482] : memref<8x128xf32, #tpu.memory_space<vmem>>, vector<8x128xf32>
      tpu.vector_store %arg19[%c0_481, %c0_482], %1018 {strides = array<i32>} : memref<8x128xf32, #tpu.memory_space<vmem>>, vector<8x128xf32>,
    } else {
    }
    %c0_283 = arith.constant 0 : index
    %c0_284 = arith.constant 0 : index
    %632 = vector.load %arg19[%c0_283, %c0_284] : memref<8x128xf32, #tpu.memory_space<vmem>>, vector<8x128xf32>
    %633 = arith.truncf %632 : vector<8x128xf32> to vector<8x128xbf16>
    %c0_285 = arith.constant 0 : index
    %c0_286 = arith.constant 0 : index
    %634 = vector.load %arg15[%c0_285, %c0_286] : memref<128x16xbf16, #tpu.memory_space<vmem>>, vector<128x16xbf16>
    %cst_287 = arith.constant dense<0.000000e+00> : vector<8x16xf32>
    %635 = tpu.matmul %633, %634, %cst_287 {dimension_numbers = #tpu.dot_dimension_numbers<[1], [0], [0], [1], [0, 0, 1, 1], [], []>} : vector<8x128xbf16>, vector<128x16xbf16>, vector<8x16xf32> -> vector<8x16xf32>
    %636 = arith.truncf %635 : vector<8x16xf32> to vector<8x16xbf16>
    %c0_288 = arith.constant 0 : index
    %c0_289 = arith.constant 0 : index
    %637 = vector.load %arg9[%c0_288, %c0_289] : memref<16x128xbf16, #tpu.memory_space<vmem>>, vector<16x128xbf16>
    %cst_290 = arith.constant dense<0.000000e+00> : vector<8x128xf32>
    %638 = tpu.matmul %636, %637, %cst_290 {dimension_numbers = #tpu.dot_dimension_numbers<[1], [0], [0], [1], [0, 0, 1, 1], [], []>} : vector<8x16xbf16>, vector<16x128xbf16>, vector<8x128xf32> -> vector<8x128xf32>
    %639 = arith.truncf %587 : vector<8x32xf32> to vector<8x32xbf16>
    %c0_291 = arith.constant 0 : index
    %c0_292 = arith.constant 0 : index
    %640 = vector.load %arg11[%c0_291, %c0_292] : memref<32x128xbf16, #tpu.memory_space<vmem>>, vector<32x128xbf16>
    %cst_293 = arith.constant dense<0.000000e+00> : vector<8x128xf32>
    %641 = tpu.matmul %639, %640, %cst_293 {dimension_numbers = #tpu.dot_dimension_numbers<[1], [0], [0], [1], [0, 0, 1, 1], [], []>} : vector<8x32xbf16>, vector<32x128xbf16>, vector<8x128xf32> -> vector<8x128xf32>
    %642 = arith.addf %638, %641 : vector<8x128xf32>
    %c0_294 = arith.constant 0 : index
    %c0_295 = arith.constant 0 : index
    %643 = vector.load %arg13[%c0_294, %c0_295] : memref<1x128xf32, #tpu.memory_space<vmem>>, vector<1x128xf32>
    %644 = vector.broadcast %643 : vector<1x128xf32> to vector<8x128xf32>
    %645 = arith.addf %642, %644 : vector<8x128xf32>
    %cst_296 = arith.constant 5.000000e-01 : f32
    %646 = vector.broadcast %cst_296 : f32 to vector<8x128xf32>
    %647 = arith.mulf %646, %645 : vector<8x128xf32>
    %648 = arith.select %5, %645, %647 : vector<8x128xi1>, vector<8x128xf32>
    %649 = math.tanh %648 : vector<8x128xf32>
    %cst_297 = arith.constant 5.000000e-01 : f32
    %650 = vector.broadcast %cst_297 : f32 to vector<8x128xf32>
    %651 = arith.mulf %650, %649 : vector<8x128xf32>
    %cst_298 = arith.constant 5.000000e-01 : f32
    %652 = vector.broadcast %cst_298 : f32 to vector<8x128xf32>
    %653 = arith.addf %651, %652 : vector<8x128xf32>
    %654 = arith.select %5, %649, %653 : vector<8x128xi1>, vector<8x128xf32>
    %655 = vector.extract_strided_slice %654 {offsets = [0, 0], sizes = [8, 32], strides = [1, 1]} : vector<8x128xf32> to vector<8x32xf32>
    %656 = vector.extract_strided_slice %654 {offsets = [0, 32], sizes = [8, 32], strides = [1, 1]} : vector<8x128xf32> to vector<8x32xf32>
    %657 = vector.extract_strided_slice %654 {offsets = [0, 64], sizes = [8, 32], strides = [1, 1]} : vector<8x128xf32> to vector<8x32xf32>
    %658 = vector.extract_strided_slice %654 {offsets = [0, 96], sizes = [8, 32], strides = [1, 1]} : vector<8x128xf32> to vector<8x32xf32>
    %659 = arith.mulf %656, %585 : vector<8x32xf32>
    %660 = arith.mulf %655, %657 : vector<8x32xf32>
    %661 = arith.addf %659, %660 : vector<8x32xf32>
    %662 = math.tanh %661 : vector<8x32xf32>
    %663 = arith.mulf %658, %662 : vector<8x32xf32>
    %664 = arith.truncf %663 : vector<8x32xf32> to vector<8x32xbf16>
    %c0_299 = arith.constant 0 : index
    %c0_300 = arith.constant 0 : index
    %665 = vector.load %arg10[%c0_299, %c0_300] : memref<32x128xbf16, #tpu.memory_space<vmem>>, vector<32x128xbf16>
    %cst_301 = arith.constant dense<0.000000e+00> : vector<8x128xf32>
    %666 = tpu.matmul %664, %665, %cst_301 {dimension_numbers = #tpu.dot_dimension_numbers<[1], [0], [0], [1], [0, 0, 1, 1], [], []>} : vector<8x32xbf16>, vector<32x128xbf16>, vector<8x128xf32> -> vector<8x128xf32>
    %667 = arith.truncf %615 : vector<8x32xf32> to vector<8x32xbf16>
    %c0_302 = arith.constant 0 : index
    %c0_303 = arith.constant 0 : index
    %668 = vector.load %arg12[%c0_302, %c0_303] : memref<32x128xbf16, #tpu.memory_space<vmem>>, vector<32x128xbf16>
    %cst_304 = arith.constant dense<0.000000e+00> : vector<8x128xf32>
    %669 = tpu.matmul %667, %668, %cst_304 {dimension_numbers = #tpu.dot_dimension_numbers<[1], [0], [0], [1], [0, 0, 1, 1], [], []>} : vector<8x32xbf16>, vector<32x128xbf16>, vector<8x128xf32> -> vector<8x128xf32>
    %670 = arith.addf %666, %669 : vector<8x128xf32>
    %c0_305 = arith.constant 0 : index
    %c0_306 = arith.constant 0 : index
    %671 = vector.load %arg14[%c0_305, %c0_306] : memref<1x128xf32, #tpu.memory_space<vmem>>, vector<1x128xf32>
    %672 = vector.broadcast %671 : vector<1x128xf32> to vector<8x128xf32>
    %673 = arith.addf %670, %672 : vector<8x128xf32>
    %cst_307 = arith.constant 5.000000e-01 : f32
    %674 = vector.broadcast %cst_307 : f32 to vector<8x128xf32>
    %675 = arith.mulf %674, %673 : vector<8x128xf32>
    %676 = arith.select %5, %673, %675 : vector<8x128xi1>, vector<8x128xf32>
    %677 = math.tanh %676 : vector<8x128xf32>
    %cst_308 = arith.constant 5.000000e-01 : f32
    %678 = vector.broadcast %cst_308 : f32 to vector<8x128xf32>
    %679 = arith.mulf %678, %677 : vector<8x128xf32>
    %cst_309 = arith.constant 5.000000e-01 : f32
    %680 = vector.broadcast %cst_309 : f32 to vector<8x128xf32>
    %681 = arith.addf %679, %680 : vector<8x128xf32>
    %682 = arith.select %5, %677, %681 : vector<8x128xi1>, vector<8x128xf32>
    %683 = vector.extract_strided_slice %682 {offsets = [0, 0], sizes = [8, 32], strides = [1, 1]} : vector<8x128xf32> to vector<8x32xf32>
    %684 = vector.extract_strided_slice %682 {offsets = [0, 32], sizes = [8, 32], strides = [1, 1]} : vector<8x128xf32> to vector<8x32xf32>
    %685 = vector.extract_strided_slice %682 {offsets = [0, 64], sizes = [8, 32], strides = [1, 1]} : vector<8x128xf32> to vector<8x32xf32>
    %686 = vector.extract_strided_slice %682 {offsets = [0, 96], sizes = [8, 32], strides = [1, 1]} : vector<8x128xf32> to vector<8x32xf32>
    %687 = arith.mulf %684, %613 : vector<8x32xf32>
    %688 = arith.mulf %683, %685 : vector<8x32xf32>
    %689 = arith.addf %687, %688 : vector<8x32xf32>
    %690 = math.tanh %689 : vector<8x32xf32>
    %691 = arith.mulf %686, %690 : vector<8x32xf32>
    %692 = arith.truncf %691 : vector<8x32xf32> to vector<8x32xbf16>
    %c0_310 = arith.constant 0 : index
    %c0_311 = arith.constant 0 : index
    %693 = vector.load %arg16[%c0_310, %c0_311] : memref<32x128xbf16, #tpu.memory_space<vmem>>, vector<32x128xbf16>
    %cst_312 = arith.constant dense<0.000000e+00> : vector<8x128xf32>
    %694 = tpu.matmul %692, %693, %cst_312 {dimension_numbers = #tpu.dot_dimension_numbers<[1], [0], [0], [1], [0, 0, 1, 1], [], []>} : vector<8x32xbf16>, vector<32x128xbf16>, vector<8x128xf32> -> vector<8x128xf32>
    %c0_313 = arith.constant 0 : index
    %c0_314 = arith.constant 0 : index
    %695 = vector.load %arg17[%c0_313, %c0_314] : memref<1x128xf32, #tpu.memory_space<vmem>>, vector<1x128xf32>
    %696 = vector.broadcast %695 : vector<1x128xf32> to vector<8x128xf32>
    %697 = arith.addf %694, %696 : vector<8x128xf32>
    %c3_315 = arith.constant 3 : index
    %c0_316 = arith.constant 0 : index
    %c0_317 = arith.constant 0 : index
    %698 = vector.load %arg18[%c3_315, %c0_316, %c0_317] : memref<8x8x128xf32, #tpu.memory_space<vmem>>, vector<1x8x128xf32>
    %699 = vector.shape_cast %698 : vector<1x8x128xf32> to vector<8x128xf32>
    %700 = vector.shape_cast %697 : vector<8x128xf32> to vector<1x8x128xf32>
    tpu.vector_store %arg18[%c3_315, %c0_316, %c0_317], %700 {strides = array<i32>} : memref<8x8x128xf32, #tpu.memory_space<vmem>>, vector<1x8x128xf32>,
    %c3_318 = arith.constant 3 : index
    %701 = memref.load %arg0[%c3_318] : memref<8xi32, #tpu.memory_space<smem>>
    %c0_i32_319 = arith.constant 0 : i32
    %702 = arith.cmpi sgt, %701, %c0_i32_319 : i32
    %703 = arith.extui %702 : i1 to i32
    %c0_i32_320 = arith.constant 0 : i32
    %704 = arith.cmpi ne, %703, %c0_i32_320 : i32
    scf.if %704 {
      %c3_478 = arith.constant 3 : index
      %c0_479 = arith.constant 0 : index
      %c0_480 = arith.constant 0 : index
      %1005 = vector.load %arg2[%c3_478, %c0_479, %c0_480] : memref<8x8x1xi32, #tpu.memory_space<vmem>>, vector<1x8x1xi32>
      %1006 = vector.shape_cast %1005 : vector<1x8x1xi32> to vector<8x1xi32>
      %1007 = vector.broadcast %1006 : vector<8x1xi32> to vector<8x128xi32>
      %1008 = arith.cmpi eq, %6, %1007 : vector<8x128xi32>
      %1009 = arith.extui %1008 : vector<8x128xi1> to vector<8x128xi32>
      %1010 = arith.sitofp %1009 : vector<8x128xi32> to vector<8x128xf32>
      %c0_481 = arith.constant 0 : index
      %c0_482 = arith.constant 0 : index
      %1011 = vector.load %arg19[%c0_481, %c0_482] : memref<8x128xf32, #tpu.memory_space<vmem>>, vector<8x128xf32>
      tpu.vector_store %arg19[%c0_481, %c0_482], %1010 {strides = array<i32>} : memref<8x128xf32, #tpu.memory_space<vmem>>, vector<8x128xf32>,
    } else {
    }
    %c0_i32_321 = arith.constant 0 : i32
    %705 = arith.cmpi eq, %701, %c0_i32_321 : i32
    %706 = arith.extui %705 : i1 to i32
    %c0_i32_322 = arith.constant 0 : i32
    %707 = arith.cmpi ne, %706, %c0_i32_322 : i32
    scf.if %707 {
      %cst_478 = arith.constant -1.000000e+30 : f32
      %1005 = vector.broadcast %cst_478 : f32 to vector<8x128xf32>
      %1006 = arith.select %8, %697, %1005 : vector<8x128xi1>, vector<8x128xf32>
      %cst_479 = arith.constant dense<0xFF800000> : vector<8xf32>
      %1007 = vector.multi_reduction <maximumf>, %1006, %cst_479 [1] : vector<8x128xf32> to vector<8xf32>
      %1008 = vector.shape_cast %1007 : vector<8xf32> to vector<8x1xf32>
      %1009 = vector.broadcast %1008 : vector<8x1xf32> to vector<8x128xf32>
      %1010 = arith.cmpf oeq, %1006, %1009 : vector<8x128xf32>
      %c128_i32 = arith.constant 128 : i32
      %1011 = vector.broadcast %c128_i32 : i32 to vector<8x128xi32>
      %1012 = arith.select %1010, %6, %1011 : vector<8x128xi1>, vector<8x128xi32>
      %cst_480 = arith.constant dense<2147483647> : vector<8xi32>
      %1013 = vector.multi_reduction <minsi>, %1012, %cst_480 [1] : vector<8x128xi32> to vector<8xi32>
      %1014 = vector.shape_cast %1013 : vector<8xi32> to vector<8x1xi32>
      %1015 = vector.broadcast %1014 : vector<8x1xi32> to vector<8x128xi32>
      %1016 = arith.cmpi eq, %6, %1015 : vector<8x128xi32>
      %1017 = arith.extui %1016 : vector<8x128xi1> to vector<8x128xi32>
      %1018 = arith.sitofp %1017 : vector<8x128xi32> to vector<8x128xf32>
      %c0_481 = arith.constant 0 : index
      %c0_482 = arith.constant 0 : index
      %1019 = vector.load %arg19[%c0_481, %c0_482] : memref<8x128xf32, #tpu.memory_space<vmem>>, vector<8x128xf32>
      tpu.vector_store %arg19[%c0_481, %c0_482], %1018 {strides = array<i32>} : memref<8x128xf32, #tpu.memory_space<vmem>>, vector<8x128xf32>,
    } else {
    }
    %c0_323 = arith.constant 0 : index
    %c0_324 = arith.constant 0 : index
    %708 = vector.load %arg19[%c0_323, %c0_324] : memref<8x128xf32, #tpu.memory_space<vmem>>, vector<8x128xf32>
    %709 = arith.truncf %708 : vector<8x128xf32> to vector<8x128xbf16>
    %c0_325 = arith.constant 0 : index
    %c0_326 = arith.constant 0 : index
    %710 = vector.load %arg15[%c0_325, %c0_326] : memref<128x16xbf16, #tpu.memory_space<vmem>>, vector<128x16xbf16>
    %cst_327 = arith.constant dense<0.000000e+00> : vector<8x16xf32>
    %711 = tpu.matmul %709, %710, %cst_327 {dimension_numbers = #tpu.dot_dimension_numbers<[1], [0], [0], [1], [0, 0, 1, 1], [], []>} : vector<8x128xbf16>, vector<128x16xbf16>, vector<8x16xf32> -> vector<8x16xf32>
    %712 = arith.truncf %711 : vector<8x16xf32> to vector<8x16xbf16>
    %c0_328 = arith.constant 0 : index
    %c0_329 = arith.constant 0 : index
    %713 = vector.load %arg9[%c0_328, %c0_329] : memref<16x128xbf16, #tpu.memory_space<vmem>>, vector<16x128xbf16>
    %cst_330 = arith.constant dense<0.000000e+00> : vector<8x128xf32>
    %714 = tpu.matmul %712, %713, %cst_330 {dimension_numbers = #tpu.dot_dimension_numbers<[1], [0], [0], [1], [0, 0, 1, 1], [], []>} : vector<8x16xbf16>, vector<16x128xbf16>, vector<8x128xf32> -> vector<8x128xf32>
    %715 = arith.truncf %663 : vector<8x32xf32> to vector<8x32xbf16>
    %c0_331 = arith.constant 0 : index
    %c0_332 = arith.constant 0 : index
    %716 = vector.load %arg11[%c0_331, %c0_332] : memref<32x128xbf16, #tpu.memory_space<vmem>>, vector<32x128xbf16>
    %cst_333 = arith.constant dense<0.000000e+00> : vector<8x128xf32>
    %717 = tpu.matmul %715, %716, %cst_333 {dimension_numbers = #tpu.dot_dimension_numbers<[1], [0], [0], [1], [0, 0, 1, 1], [], []>} : vector<8x32xbf16>, vector<32x128xbf16>, vector<8x128xf32> -> vector<8x128xf32>
    %718 = arith.addf %714, %717 : vector<8x128xf32>
    %c0_334 = arith.constant 0 : index
    %c0_335 = arith.constant 0 : index
    %719 = vector.load %arg13[%c0_334, %c0_335] : memref<1x128xf32, #tpu.memory_space<vmem>>, vector<1x128xf32>
    %720 = vector.broadcast %719 : vector<1x128xf32> to vector<8x128xf32>
    %721 = arith.addf %718, %720 : vector<8x128xf32>
    %cst_336 = arith.constant 5.000000e-01 : f32
    %722 = vector.broadcast %cst_336 : f32 to vector<8x128xf32>
    %723 = arith.mulf %722, %721 : vector<8x128xf32>
    %724 = arith.select %5, %721, %723 : vector<8x128xi1>, vector<8x128xf32>
    %725 = math.tanh %724 : vector<8x128xf32>
    %cst_337 = arith.constant 5.000000e-01 : f32
    %726 = vector.broadcast %cst_337 : f32 to vector<8x128xf32>
    %727 = arith.mulf %726, %725 : vector<8x128xf32>
    %cst_338 = arith.constant 5.000000e-01 : f32
    %728 = vector.broadcast %cst_338 : f32 to vector<8x128xf32>
    %729 = arith.addf %727, %728 : vector<8x128xf32>
    %730 = arith.select %5, %725, %729 : vector<8x128xi1>, vector<8x128xf32>
    %731 = vector.extract_strided_slice %730 {offsets = [0, 0], sizes = [8, 32], strides = [1, 1]} : vector<8x128xf32> to vector<8x32xf32>
    %732 = vector.extract_strided_slice %730 {offsets = [0, 32], sizes = [8, 32], strides = [1, 1]} : vector<8x128xf32> to vector<8x32xf32>
    %733 = vector.extract_strided_slice %730 {offsets = [0, 64], sizes = [8, 32], strides = [1, 1]} : vector<8x128xf32> to vector<8x32xf32>
    %734 = vector.extract_strided_slice %730 {offsets = [0, 96], sizes = [8, 32], strides = [1, 1]} : vector<8x128xf32> to vector<8x32xf32>
    %735 = arith.mulf %732, %661 : vector<8x32xf32>
    %736 = arith.mulf %731, %733 : vector<8x32xf32>
    %737 = arith.addf %735, %736 : vector<8x32xf32>
    %738 = math.tanh %737 : vector<8x32xf32>
    %739 = arith.mulf %734, %738 : vector<8x32xf32>
    %740 = arith.truncf %739 : vector<8x32xf32> to vector<8x32xbf16>
    %c0_339 = arith.constant 0 : index
    %c0_340 = arith.constant 0 : index
    %741 = vector.load %arg10[%c0_339, %c0_340] : memref<32x128xbf16, #tpu.memory_space<vmem>>, vector<32x128xbf16>
    %cst_341 = arith.constant dense<0.000000e+00> : vector<8x128xf32>
    %742 = tpu.matmul %740, %741, %cst_341 {dimension_numbers = #tpu.dot_dimension_numbers<[1], [0], [0], [1], [0, 0, 1, 1], [], []>} : vector<8x32xbf16>, vector<32x128xbf16>, vector<8x128xf32> -> vector<8x128xf32>
    %743 = arith.truncf %691 : vector<8x32xf32> to vector<8x32xbf16>
    %c0_342 = arith.constant 0 : index
    %c0_343 = arith.constant 0 : index
    %744 = vector.load %arg12[%c0_342, %c0_343] : memref<32x128xbf16, #tpu.memory_space<vmem>>, vector<32x128xbf16>
    %cst_344 = arith.constant dense<0.000000e+00> : vector<8x128xf32>
    %745 = tpu.matmul %743, %744, %cst_344 {dimension_numbers = #tpu.dot_dimension_numbers<[1], [0], [0], [1], [0, 0, 1, 1], [], []>} : vector<8x32xbf16>, vector<32x128xbf16>, vector<8x128xf32> -> vector<8x128xf32>
    %746 = arith.addf %742, %745 : vector<8x128xf32>
    %c0_345 = arith.constant 0 : index
    %c0_346 = arith.constant 0 : index
    %747 = vector.load %arg14[%c0_345, %c0_346] : memref<1x128xf32, #tpu.memory_space<vmem>>, vector<1x128xf32>
    %748 = vector.broadcast %747 : vector<1x128xf32> to vector<8x128xf32>
    %749 = arith.addf %746, %748 : vector<8x128xf32>
    %cst_347 = arith.constant 5.000000e-01 : f32
    %750 = vector.broadcast %cst_347 : f32 to vector<8x128xf32>
    %751 = arith.mulf %750, %749 : vector<8x128xf32>
    %752 = arith.select %5, %749, %751 : vector<8x128xi1>, vector<8x128xf32>
    %753 = math.tanh %752 : vector<8x128xf32>
    %cst_348 = arith.constant 5.000000e-01 : f32
    %754 = vector.broadcast %cst_348 : f32 to vector<8x128xf32>
    %755 = arith.mulf %754, %753 : vector<8x128xf32>
    %cst_349 = arith.constant 5.000000e-01 : f32
    %756 = vector.broadcast %cst_349 : f32 to vector<8x128xf32>
    %757 = arith.addf %755, %756 : vector<8x128xf32>
    %758 = arith.select %5, %753, %757 : vector<8x128xi1>, vector<8x128xf32>
    %759 = vector.extract_strided_slice %758 {offsets = [0, 0], sizes = [8, 32], strides = [1, 1]} : vector<8x128xf32> to vector<8x32xf32>
    %760 = vector.extract_strided_slice %758 {offsets = [0, 32], sizes = [8, 32], strides = [1, 1]} : vector<8x128xf32> to vector<8x32xf32>
    %761 = vector.extract_strided_slice %758 {offsets = [0, 64], sizes = [8, 32], strides = [1, 1]} : vector<8x128xf32> to vector<8x32xf32>
    %762 = vector.extract_strided_slice %758 {offsets = [0, 96], sizes = [8, 32], strides = [1, 1]} : vector<8x128xf32> to vector<8x32xf32>
    %763 = arith.mulf %760, %689 : vector<8x32xf32>
    %764 = arith.mulf %759, %761 : vector<8x32xf32>
    %765 = arith.addf %763, %764 : vector<8x32xf32>
    %766 = math.tanh %765 : vector<8x32xf32>
    %767 = arith.mulf %762, %766 : vector<8x32xf32>
    %768 = arith.truncf %767 : vector<8x32xf32> to vector<8x32xbf16>
    %c0_350 = arith.constant 0 : index
    %c0_351 = arith.constant 0 : index
    %769 = vector.load %arg16[%c0_350, %c0_351] : memref<32x128xbf16, #tpu.memory_space<vmem>>, vector<32x128xbf16>
    %cst_352 = arith.constant dense<0.000000e+00> : vector<8x128xf32>
    %770 = tpu.matmul %768, %769, %cst_352 {dimension_numbers = #tpu.dot_dimension_numbers<[1], [0], [0], [1], [0, 0, 1, 1], [], []>} : vector<8x32xbf16>, vector<32x128xbf16>, vector<8x128xf32> -> vector<8x128xf32>
    %c0_353 = arith.constant 0 : index
    %c0_354 = arith.constant 0 : index
    %771 = vector.load %arg17[%c0_353, %c0_354] : memref<1x128xf32, #tpu.memory_space<vmem>>, vector<1x128xf32>
    %772 = vector.broadcast %771 : vector<1x128xf32> to vector<8x128xf32>
    %773 = arith.addf %770, %772 : vector<8x128xf32>
    %c4_355 = arith.constant 4 : index
    %c0_356 = arith.constant 0 : index
    %c0_357 = arith.constant 0 : index
    %774 = vector.load %arg18[%c4_355, %c0_356, %c0_357] : memref<8x8x128xf32, #tpu.memory_space<vmem>>, vector<1x8x128xf32>
    %775 = vector.shape_cast %774 : vector<1x8x128xf32> to vector<8x128xf32>
    %776 = vector.shape_cast %773 : vector<8x128xf32> to vector<1x8x128xf32>
    tpu.vector_store %arg18[%c4_355, %c0_356, %c0_357], %776 {strides = array<i32>} : memref<8x8x128xf32, #tpu.memory_space<vmem>>, vector<1x8x128xf32>,
    %c4_358 = arith.constant 4 : index
    %777 = memref.load %arg0[%c4_358] : memref<8xi32, #tpu.memory_space<smem>>
    %c0_i32_359 = arith.constant 0 : i32
    %778 = arith.cmpi sgt, %777, %c0_i32_359 : i32
    %779 = arith.extui %778 : i1 to i32
    %c0_i32_360 = arith.constant 0 : i32
    %780 = arith.cmpi ne, %779, %c0_i32_360 : i32
    scf.if %780 {
      %c4_478 = arith.constant 4 : index
      %c0_479 = arith.constant 0 : index
      %c0_480 = arith.constant 0 : index
      %1005 = vector.load %arg2[%c4_478, %c0_479, %c0_480] : memref<8x8x1xi32, #tpu.memory_space<vmem>>, vector<1x8x1xi32>
      %1006 = vector.shape_cast %1005 : vector<1x8x1xi32> to vector<8x1xi32>
      %1007 = vector.broadcast %1006 : vector<8x1xi32> to vector<8x128xi32>
      %1008 = arith.cmpi eq, %6, %1007 : vector<8x128xi32>
      %1009 = arith.extui %1008 : vector<8x128xi1> to vector<8x128xi32>
      %1010 = arith.sitofp %1009 : vector<8x128xi32> to vector<8x128xf32>
      %c0_481 = arith.constant 0 : index
      %c0_482 = arith.constant 0 : index
      %1011 = vector.load %arg19[%c0_481, %c0_482] : memref<8x128xf32, #tpu.memory_space<vmem>>, vector<8x128xf32>
      tpu.vector_store %arg19[%c0_481, %c0_482], %1010 {strides = array<i32>} : memref<8x128xf32, #tpu.memory_space<vmem>>, vector<8x128xf32>,
    } else {
    }
    %c0_i32_361 = arith.constant 0 : i32
    %781 = arith.cmpi eq, %777, %c0_i32_361 : i32
    %782 = arith.extui %781 : i1 to i32
    %c0_i32_362 = arith.constant 0 : i32
    %783 = arith.cmpi ne, %782, %c0_i32_362 : i32
    scf.if %783 {
      %cst_478 = arith.constant -1.000000e+30 : f32
      %1005 = vector.broadcast %cst_478 : f32 to vector<8x128xf32>
      %1006 = arith.select %8, %773, %1005 : vector<8x128xi1>, vector<8x128xf32>
      %cst_479 = arith.constant dense<0xFF800000> : vector<8xf32>
      %1007 = vector.multi_reduction <maximumf>, %1006, %cst_479 [1] : vector<8x128xf32> to vector<8xf32>
      %1008 = vector.shape_cast %1007 : vector<8xf32> to vector<8x1xf32>
      %1009 = vector.broadcast %1008 : vector<8x1xf32> to vector<8x128xf32>
      %1010 = arith.cmpf oeq, %1006, %1009 : vector<8x128xf32>
      %c128_i32 = arith.constant 128 : i32
      %1011 = vector.broadcast %c128_i32 : i32 to vector<8x128xi32>
      %1012 = arith.select %1010, %6, %1011 : vector<8x128xi1>, vector<8x128xi32>
      %cst_480 = arith.constant dense<2147483647> : vector<8xi32>
      %1013 = vector.multi_reduction <minsi>, %1012, %cst_480 [1] : vector<8x128xi32> to vector<8xi32>
      %1014 = vector.shape_cast %1013 : vector<8xi32> to vector<8x1xi32>
      %1015 = vector.broadcast %1014 : vector<8x1xi32> to vector<8x128xi32>
      %1016 = arith.cmpi eq, %6, %1015 : vector<8x128xi32>
      %1017 = arith.extui %1016 : vector<8x128xi1> to vector<8x128xi32>
      %1018 = arith.sitofp %1017 : vector<8x128xi32> to vector<8x128xf32>
      %c0_481 = arith.constant 0 : index
      %c0_482 = arith.constant 0 : index
      %1019 = vector.load %arg19[%c0_481, %c0_482] : memref<8x128xf32, #tpu.memory_space<vmem>>, vector<8x128xf32>
      tpu.vector_store %arg19[%c0_481, %c0_482], %1018 {strides = array<i32>} : memref<8x128xf32, #tpu.memory_space<vmem>>, vector<8x128xf32>,
    } else {
    }
    %c0_363 = arith.constant 0 : index
    %c0_364 = arith.constant 0 : index
    %784 = vector.load %arg19[%c0_363, %c0_364] : memref<8x128xf32, #tpu.memory_space<vmem>>, vector<8x128xf32>
    %785 = arith.truncf %784 : vector<8x128xf32> to vector<8x128xbf16>
    %c0_365 = arith.constant 0 : index
    %c0_366 = arith.constant 0 : index
    %786 = vector.load %arg15[%c0_365, %c0_366] : memref<128x16xbf16, #tpu.memory_space<vmem>>, vector<128x16xbf16>
    %cst_367 = arith.constant dense<0.000000e+00> : vector<8x16xf32>
    %787 = tpu.matmul %785, %786, %cst_367 {dimension_numbers = #tpu.dot_dimension_numbers<[1], [0], [0], [1], [0, 0, 1, 1], [], []>} : vector<8x128xbf16>, vector<128x16xbf16>, vector<8x16xf32> -> vector<8x16xf32>
    %788 = arith.truncf %787 : vector<8x16xf32> to vector<8x16xbf16>
    %c0_368 = arith.constant 0 : index
    %c0_369 = arith.constant 0 : index
    %789 = vector.load %arg9[%c0_368, %c0_369] : memref<16x128xbf16, #tpu.memory_space<vmem>>, vector<16x128xbf16>
    %cst_370 = arith.constant dense<0.000000e+00> : vector<8x128xf32>
    %790 = tpu.matmul %788, %789, %cst_370 {dimension_numbers = #tpu.dot_dimension_numbers<[1], [0], [0], [1], [0, 0, 1, 1], [], []>} : vector<8x16xbf16>, vector<16x128xbf16>, vector<8x128xf32> -> vector<8x128xf32>
    %791 = arith.truncf %739 : vector<8x32xf32> to vector<8x32xbf16>
    %c0_371 = arith.constant 0 : index
    %c0_372 = arith.constant 0 : index
    %792 = vector.load %arg11[%c0_371, %c0_372] : memref<32x128xbf16, #tpu.memory_space<vmem>>, vector<32x128xbf16>
    %cst_373 = arith.constant dense<0.000000e+00> : vector<8x128xf32>
    %793 = tpu.matmul %791, %792, %cst_373 {dimension_numbers = #tpu.dot_dimension_numbers<[1], [0], [0], [1], [0, 0, 1, 1], [], []>} : vector<8x32xbf16>, vector<32x128xbf16>, vector<8x128xf32> -> vector<8x128xf32>
    %794 = arith.addf %790, %793 : vector<8x128xf32>
    %c0_374 = arith.constant 0 : index
    %c0_375 = arith.constant 0 : index
    %795 = vector.load %arg13[%c0_374, %c0_375] : memref<1x128xf32, #tpu.memory_space<vmem>>, vector<1x128xf32>
    %796 = vector.broadcast %795 : vector<1x128xf32> to vector<8x128xf32>
    %797 = arith.addf %794, %796 : vector<8x128xf32>
    %cst_376 = arith.constant 5.000000e-01 : f32
    %798 = vector.broadcast %cst_376 : f32 to vector<8x128xf32>
    %799 = arith.mulf %798, %797 : vector<8x128xf32>
    %800 = arith.select %5, %797, %799 : vector<8x128xi1>, vector<8x128xf32>
    %801 = math.tanh %800 : vector<8x128xf32>
    %cst_377 = arith.constant 5.000000e-01 : f32
    %802 = vector.broadcast %cst_377 : f32 to vector<8x128xf32>
    %803 = arith.mulf %802, %801 : vector<8x128xf32>
    %cst_378 = arith.constant 5.000000e-01 : f32
    %804 = vector.broadcast %cst_378 : f32 to vector<8x128xf32>
    %805 = arith.addf %803, %804 : vector<8x128xf32>
    %806 = arith.select %5, %801, %805 : vector<8x128xi1>, vector<8x128xf32>
    %807 = vector.extract_strided_slice %806 {offsets = [0, 0], sizes = [8, 32], strides = [1, 1]} : vector<8x128xf32> to vector<8x32xf32>
    %808 = vector.extract_strided_slice %806 {offsets = [0, 32], sizes = [8, 32], strides = [1, 1]} : vector<8x128xf32> to vector<8x32xf32>
    %809 = vector.extract_strided_slice %806 {offsets = [0, 64], sizes = [8, 32], strides = [1, 1]} : vector<8x128xf32> to vector<8x32xf32>
    %810 = vector.extract_strided_slice %806 {offsets = [0, 96], sizes = [8, 32], strides = [1, 1]} : vector<8x128xf32> to vector<8x32xf32>
    %811 = arith.mulf %808, %737 : vector<8x32xf32>
    %812 = arith.mulf %807, %809 : vector<8x32xf32>
    %813 = arith.addf %811, %812 : vector<8x32xf32>
    %814 = math.tanh %813 : vector<8x32xf32>
    %815 = arith.mulf %810, %814 : vector<8x32xf32>
    %816 = arith.truncf %815 : vector<8x32xf32> to vector<8x32xbf16>
    %c0_379 = arith.constant 0 : index
    %c0_380 = arith.constant 0 : index
    %817 = vector.load %arg10[%c0_379, %c0_380] : memref<32x128xbf16, #tpu.memory_space<vmem>>, vector<32x128xbf16>
    %cst_381 = arith.constant dense<0.000000e+00> : vector<8x128xf32>
    %818 = tpu.matmul %816, %817, %cst_381 {dimension_numbers = #tpu.dot_dimension_numbers<[1], [0], [0], [1], [0, 0, 1, 1], [], []>} : vector<8x32xbf16>, vector<32x128xbf16>, vector<8x128xf32> -> vector<8x128xf32>
    %819 = arith.truncf %767 : vector<8x32xf32> to vector<8x32xbf16>
    %c0_382 = arith.constant 0 : index
    %c0_383 = arith.constant 0 : index
    %820 = vector.load %arg12[%c0_382, %c0_383] : memref<32x128xbf16, #tpu.memory_space<vmem>>, vector<32x128xbf16>
    %cst_384 = arith.constant dense<0.000000e+00> : vector<8x128xf32>
    %821 = tpu.matmul %819, %820, %cst_384 {dimension_numbers = #tpu.dot_dimension_numbers<[1], [0], [0], [1], [0, 0, 1, 1], [], []>} : vector<8x32xbf16>, vector<32x128xbf16>, vector<8x128xf32> -> vector<8x128xf32>
    %822 = arith.addf %818, %821 : vector<8x128xf32>
    %c0_385 = arith.constant 0 : index
    %c0_386 = arith.constant 0 : index
    %823 = vector.load %arg14[%c0_385, %c0_386] : memref<1x128xf32, #tpu.memory_space<vmem>>, vector<1x128xf32>
    %824 = vector.broadcast %823 : vector<1x128xf32> to vector<8x128xf32>
    %825 = arith.addf %822, %824 : vector<8x128xf32>
    %cst_387 = arith.constant 5.000000e-01 : f32
    %826 = vector.broadcast %cst_387 : f32 to vector<8x128xf32>
    %827 = arith.mulf %826, %825 : vector<8x128xf32>
    %828 = arith.select %5, %825, %827 : vector<8x128xi1>, vector<8x128xf32>
    %829 = math.tanh %828 : vector<8x128xf32>
    %cst_388 = arith.constant 5.000000e-01 : f32
    %830 = vector.broadcast %cst_388 : f32 to vector<8x128xf32>
    %831 = arith.mulf %830, %829 : vector<8x128xf32>
    %cst_389 = arith.constant 5.000000e-01 : f32
    %832 = vector.broadcast %cst_389 : f32 to vector<8x128xf32>
    %833 = arith.addf %831, %832 : vector<8x128xf32>
    %834 = arith.select %5, %829, %833 : vector<8x128xi1>, vector<8x128xf32>
    %835 = vector.extract_strided_slice %834 {offsets = [0, 0], sizes = [8, 32], strides = [1, 1]} : vector<8x128xf32> to vector<8x32xf32>
    %836 = vector.extract_strided_slice %834 {offsets = [0, 32], sizes = [8, 32], strides = [1, 1]} : vector<8x128xf32> to vector<8x32xf32>
    %837 = vector.extract_strided_slice %834 {offsets = [0, 64], sizes = [8, 32], strides = [1, 1]} : vector<8x128xf32> to vector<8x32xf32>
    %838 = vector.extract_strided_slice %834 {offsets = [0, 96], sizes = [8, 32], strides = [1, 1]} : vector<8x128xf32> to vector<8x32xf32>
    %839 = arith.mulf %836, %765 : vector<8x32xf32>
    %840 = arith.mulf %835, %837 : vector<8x32xf32>
    %841 = arith.addf %839, %840 : vector<8x32xf32>
    %842 = math.tanh %841 : vector<8x32xf32>
    %843 = arith.mulf %838, %842 : vector<8x32xf32>
    %844 = arith.truncf %843 : vector<8x32xf32> to vector<8x32xbf16>
    %c0_390 = arith.constant 0 : index
    %c0_391 = arith.constant 0 : index
    %845 = vector.load %arg16[%c0_390, %c0_391] : memref<32x128xbf16, #tpu.memory_space<vmem>>, vector<32x128xbf16>
    %cst_392 = arith.constant dense<0.000000e+00> : vector<8x128xf32>
    %846 = tpu.matmul %844, %845, %cst_392 {dimension_numbers = #tpu.dot_dimension_numbers<[1], [0], [0], [1], [0, 0, 1, 1], [], []>} : vector<8x32xbf16>, vector<32x128xbf16>, vector<8x128xf32> -> vector<8x128xf32>
    %c0_393 = arith.constant 0 : index
    %c0_394 = arith.constant 0 : index
    %847 = vector.load %arg17[%c0_393, %c0_394] : memref<1x128xf32, #tpu.memory_space<vmem>>, vector<1x128xf32>
    %848 = vector.broadcast %847 : vector<1x128xf32> to vector<8x128xf32>
    %849 = arith.addf %846, %848 : vector<8x128xf32>
    %c5_395 = arith.constant 5 : index
    %c0_396 = arith.constant 0 : index
    %c0_397 = arith.constant 0 : index
    %850 = vector.load %arg18[%c5_395, %c0_396, %c0_397] : memref<8x8x128xf32, #tpu.memory_space<vmem>>, vector<1x8x128xf32>
    %851 = vector.shape_cast %850 : vector<1x8x128xf32> to vector<8x128xf32>
    %852 = vector.shape_cast %849 : vector<8x128xf32> to vector<1x8x128xf32>
    tpu.vector_store %arg18[%c5_395, %c0_396, %c0_397], %852 {strides = array<i32>} : memref<8x8x128xf32, #tpu.memory_space<vmem>>, vector<1x8x128xf32>,
    %c5_398 = arith.constant 5 : index
    %853 = memref.load %arg0[%c5_398] : memref<8xi32, #tpu.memory_space<smem>>
    %c0_i32_399 = arith.constant 0 : i32
    %854 = arith.cmpi sgt, %853, %c0_i32_399 : i32
    %855 = arith.extui %854 : i1 to i32
    %c0_i32_400 = arith.constant 0 : i32
    %856 = arith.cmpi ne, %855, %c0_i32_400 : i32
    scf.if %856 {
      %c5_478 = arith.constant 5 : index
      %c0_479 = arith.constant 0 : index
      %c0_480 = arith.constant 0 : index
      %1005 = vector.load %arg2[%c5_478, %c0_479, %c0_480] : memref<8x8x1xi32, #tpu.memory_space<vmem>>, vector<1x8x1xi32>
      %1006 = vector.shape_cast %1005 : vector<1x8x1xi32> to vector<8x1xi32>
      %1007 = vector.broadcast %1006 : vector<8x1xi32> to vector<8x128xi32>
      %1008 = arith.cmpi eq, %6, %1007 : vector<8x128xi32>
      %1009 = arith.extui %1008 : vector<8x128xi1> to vector<8x128xi32>
      %1010 = arith.sitofp %1009 : vector<8x128xi32> to vector<8x128xf32>
      %c0_481 = arith.constant 0 : index
      %c0_482 = arith.constant 0 : index
      %1011 = vector.load %arg19[%c0_481, %c0_482] : memref<8x128xf32, #tpu.memory_space<vmem>>, vector<8x128xf32>
      tpu.vector_store %arg19[%c0_481, %c0_482], %1010 {strides = array<i32>} : memref<8x128xf32, #tpu.memory_space<vmem>>, vector<8x128xf32>,
    } else {
    }
    %c0_i32_401 = arith.constant 0 : i32
    %857 = arith.cmpi eq, %853, %c0_i32_401 : i32
    %858 = arith.extui %857 : i1 to i32
    %c0_i32_402 = arith.constant 0 : i32
    %859 = arith.cmpi ne, %858, %c0_i32_402 : i32
    scf.if %859 {
      %cst_478 = arith.constant -1.000000e+30 : f32
      %1005 = vector.broadcast %cst_478 : f32 to vector<8x128xf32>
      %1006 = arith.select %8, %849, %1005 : vector<8x128xi1>, vector<8x128xf32>
      %cst_479 = arith.constant dense<0xFF800000> : vector<8xf32>
      %1007 = vector.multi_reduction <maximumf>, %1006, %cst_479 [1] : vector<8x128xf32> to vector<8xf32>
      %1008 = vector.shape_cast %1007 : vector<8xf32> to vector<8x1xf32>
      %1009 = vector.broadcast %1008 : vector<8x1xf32> to vector<8x128xf32>
      %1010 = arith.cmpf oeq, %1006, %1009 : vector<8x128xf32>
      %c128_i32 = arith.constant 128 : i32
      %1011 = vector.broadcast %c128_i32 : i32 to vector<8x128xi32>
      %1012 = arith.select %1010, %6, %1011 : vector<8x128xi1>, vector<8x128xi32>
      %cst_480 = arith.constant dense<2147483647> : vector<8xi32>
      %1013 = vector.multi_reduction <minsi>, %1012, %cst_480 [1] : vector<8x128xi32> to vector<8xi32>
      %1014 = vector.shape_cast %1013 : vector<8xi32> to vector<8x1xi32>
      %1015 = vector.broadcast %1014 : vector<8x1xi32> to vector<8x128xi32>
      %1016 = arith.cmpi eq, %6, %1015 : vector<8x128xi32>
      %1017 = arith.extui %1016 : vector<8x128xi1> to vector<8x128xi32>
      %1018 = arith.sitofp %1017 : vector<8x128xi32> to vector<8x128xf32>
      %c0_481 = arith.constant 0 : index
      %c0_482 = arith.constant 0 : index
      %1019 = vector.load %arg19[%c0_481, %c0_482] : memref<8x128xf32, #tpu.memory_space<vmem>>, vector<8x128xf32>
      tpu.vector_store %arg19[%c0_481, %c0_482], %1018 {strides = array<i32>} : memref<8x128xf32, #tpu.memory_space<vmem>>, vector<8x128xf32>,
    } else {
    }
    %c0_403 = arith.constant 0 : index
    %c0_404 = arith.constant 0 : index
    %860 = vector.load %arg19[%c0_403, %c0_404] : memref<8x128xf32, #tpu.memory_space<vmem>>, vector<8x128xf32>
    %861 = arith.truncf %860 : vector<8x128xf32> to vector<8x128xbf16>
    %c0_405 = arith.constant 0 : index
    %c0_406 = arith.constant 0 : index
    %862 = vector.load %arg15[%c0_405, %c0_406] : memref<128x16xbf16, #tpu.memory_space<vmem>>, vector<128x16xbf16>
    %cst_407 = arith.constant dense<0.000000e+00> : vector<8x16xf32>
    %863 = tpu.matmul %861, %862, %cst_407 {dimension_numbers = #tpu.dot_dimension_numbers<[1], [0], [0], [1], [0, 0, 1, 1], [], []>} : vector<8x128xbf16>, vector<128x16xbf16>, vector<8x16xf32> -> vector<8x16xf32>
    %864 = arith.truncf %863 : vector<8x16xf32> to vector<8x16xbf16>
    %c0_408 = arith.constant 0 : index
    %c0_409 = arith.constant 0 : index
    %865 = vector.load %arg9[%c0_408, %c0_409] : memref<16x128xbf16, #tpu.memory_space<vmem>>, vector<16x128xbf16>
    %cst_410 = arith.constant dense<0.000000e+00> : vector<8x128xf32>
    %866 = tpu.matmul %864, %865, %cst_410 {dimension_numbers = #tpu.dot_dimension_numbers<[1], [0], [0], [1], [0, 0, 1, 1], [], []>} : vector<8x16xbf16>, vector<16x128xbf16>, vector<8x128xf32> -> vector<8x128xf32>
    %867 = arith.truncf %815 : vector<8x32xf32> to vector<8x32xbf16>
    %c0_411 = arith.constant 0 : index
    %c0_412 = arith.constant 0 : index
    %868 = vector.load %arg11[%c0_411, %c0_412] : memref<32x128xbf16, #tpu.memory_space<vmem>>, vector<32x128xbf16>
    %cst_413 = arith.constant dense<0.000000e+00> : vector<8x128xf32>
    %869 = tpu.matmul %867, %868, %cst_413 {dimension_numbers = #tpu.dot_dimension_numbers<[1], [0], [0], [1], [0, 0, 1, 1], [], []>} : vector<8x32xbf16>, vector<32x128xbf16>, vector<8x128xf32> -> vector<8x128xf32>
    %870 = arith.addf %866, %869 : vector<8x128xf32>
    %c0_414 = arith.constant 0 : index
    %c0_415 = arith.constant 0 : index
    %871 = vector.load %arg13[%c0_414, %c0_415] : memref<1x128xf32, #tpu.memory_space<vmem>>, vector<1x128xf32>
    %872 = vector.broadcast %871 : vector<1x128xf32> to vector<8x128xf32>
    %873 = arith.addf %870, %872 : vector<8x128xf32>
    %cst_416 = arith.constant 5.000000e-01 : f32
    %874 = vector.broadcast %cst_416 : f32 to vector<8x128xf32>
    %875 = arith.mulf %874, %873 : vector<8x128xf32>
    %876 = arith.select %5, %873, %875 : vector<8x128xi1>, vector<8x128xf32>
    %877 = math.tanh %876 : vector<8x128xf32>
    %cst_417 = arith.constant 5.000000e-01 : f32
    %878 = vector.broadcast %cst_417 : f32 to vector<8x128xf32>
    %879 = arith.mulf %878, %877 : vector<8x128xf32>
    %cst_418 = arith.constant 5.000000e-01 : f32
    %880 = vector.broadcast %cst_418 : f32 to vector<8x128xf32>
    %881 = arith.addf %879, %880 : vector<8x128xf32>
    %882 = arith.select %5, %877, %881 : vector<8x128xi1>, vector<8x128xf32>
    %883 = vector.extract_strided_slice %882 {offsets = [0, 0], sizes = [8, 32], strides = [1, 1]} : vector<8x128xf32> to vector<8x32xf32>
    %884 = vector.extract_strided_slice %882 {offsets = [0, 32], sizes = [8, 32], strides = [1, 1]} : vector<8x128xf32> to vector<8x32xf32>
    %885 = vector.extract_strided_slice %882 {offsets = [0, 64], sizes = [8, 32], strides = [1, 1]} : vector<8x128xf32> to vector<8x32xf32>
    %886 = vector.extract_strided_slice %882 {offsets = [0, 96], sizes = [8, 32], strides = [1, 1]} : vector<8x128xf32> to vector<8x32xf32>
    %887 = arith.mulf %884, %813 : vector<8x32xf32>
    %888 = arith.mulf %883, %885 : vector<8x32xf32>
    %889 = arith.addf %887, %888 : vector<8x32xf32>
    %890 = math.tanh %889 : vector<8x32xf32>
    %891 = arith.mulf %886, %890 : vector<8x32xf32>
    %892 = arith.truncf %891 : vector<8x32xf32> to vector<8x32xbf16>
    %c0_419 = arith.constant 0 : index
    %c0_420 = arith.constant 0 : index
    %893 = vector.load %arg10[%c0_419, %c0_420] : memref<32x128xbf16, #tpu.memory_space<vmem>>, vector<32x128xbf16>
    %cst_421 = arith.constant dense<0.000000e+00> : vector<8x128xf32>
    %894 = tpu.matmul %892, %893, %cst_421 {dimension_numbers = #tpu.dot_dimension_numbers<[1], [0], [0], [1], [0, 0, 1, 1], [], []>} : vector<8x32xbf16>, vector<32x128xbf16>, vector<8x128xf32> -> vector<8x128xf32>
    %895 = arith.truncf %843 : vector<8x32xf32> to vector<8x32xbf16>
    %c0_422 = arith.constant 0 : index
    %c0_423 = arith.constant 0 : index
    %896 = vector.load %arg12[%c0_422, %c0_423] : memref<32x128xbf16, #tpu.memory_space<vmem>>, vector<32x128xbf16>
    %cst_424 = arith.constant dense<0.000000e+00> : vector<8x128xf32>
    %897 = tpu.matmul %895, %896, %cst_424 {dimension_numbers = #tpu.dot_dimension_numbers<[1], [0], [0], [1], [0, 0, 1, 1], [], []>} : vector<8x32xbf16>, vector<32x128xbf16>, vector<8x128xf32> -> vector<8x128xf32>
    %898 = arith.addf %894, %897 : vector<8x128xf32>
    %c0_425 = arith.constant 0 : index
    %c0_426 = arith.constant 0 : index
    %899 = vector.load %arg14[%c0_425, %c0_426] : memref<1x128xf32, #tpu.memory_space<vmem>>, vector<1x128xf32>
    %900 = vector.broadcast %899 : vector<1x128xf32> to vector<8x128xf32>
    %901 = arith.addf %898, %900 : vector<8x128xf32>
    %cst_427 = arith.constant 5.000000e-01 : f32
    %902 = vector.broadcast %cst_427 : f32 to vector<8x128xf32>
    %903 = arith.mulf %902, %901 : vector<8x128xf32>
    %904 = arith.select %5, %901, %903 : vector<8x128xi1>, vector<8x128xf32>
    %905 = math.tanh %904 : vector<8x128xf32>
    %cst_428 = arith.constant 5.000000e-01 : f32
    %906 = vector.broadcast %cst_428 : f32 to vector<8x128xf32>
    %907 = arith.mulf %906, %905 : vector<8x128xf32>
    %cst_429 = arith.constant 5.000000e-01 : f32
    %908 = vector.broadcast %cst_429 : f32 to vector<8x128xf32>
    %909 = arith.addf %907, %908 : vector<8x128xf32>
    %910 = arith.select %5, %905, %909 : vector<8x128xi1>, vector<8x128xf32>
    %911 = vector.extract_strided_slice %910 {offsets = [0, 0], sizes = [8, 32], strides = [1, 1]} : vector<8x128xf32> to vector<8x32xf32>
    %912 = vector.extract_strided_slice %910 {offsets = [0, 32], sizes = [8, 32], strides = [1, 1]} : vector<8x128xf32> to vector<8x32xf32>
    %913 = vector.extract_strided_slice %910 {offsets = [0, 64], sizes = [8, 32], strides = [1, 1]} : vector<8x128xf32> to vector<8x32xf32>
    %914 = vector.extract_strided_slice %910 {offsets = [0, 96], sizes = [8, 32], strides = [1, 1]} : vector<8x128xf32> to vector<8x32xf32>
    %915 = arith.mulf %912, %841 : vector<8x32xf32>
    %916 = arith.mulf %911, %913 : vector<8x32xf32>
    %917 = arith.addf %915, %916 : vector<8x32xf32>
    %918 = math.tanh %917 : vector<8x32xf32>
    %919 = arith.mulf %914, %918 : vector<8x32xf32>
    %920 = arith.truncf %919 : vector<8x32xf32> to vector<8x32xbf16>
    %c0_430 = arith.constant 0 : index
    %c0_431 = arith.constant 0 : index
    %921 = vector.load %arg16[%c0_430, %c0_431] : memref<32x128xbf16, #tpu.memory_space<vmem>>, vector<32x128xbf16>
    %cst_432 = arith.constant dense<0.000000e+00> : vector<8x128xf32>
    %922 = tpu.matmul %920, %921, %cst_432 {dimension_numbers = #tpu.dot_dimension_numbers<[1], [0], [0], [1], [0, 0, 1, 1], [], []>} : vector<8x32xbf16>, vector<32x128xbf16>, vector<8x128xf32> -> vector<8x128xf32>
    %c0_433 = arith.constant 0 : index
    %c0_434 = arith.constant 0 : index
    %923 = vector.load %arg17[%c0_433, %c0_434] : memref<1x128xf32, #tpu.memory_space<vmem>>, vector<1x128xf32>
    %924 = vector.broadcast %923 : vector<1x128xf32> to vector<8x128xf32>
    %925 = arith.addf %922, %924 : vector<8x128xf32>
    %c6_435 = arith.constant 6 : index
    %c0_436 = arith.constant 0 : index
    %c0_437 = arith.constant 0 : index
    %926 = vector.load %arg18[%c6_435, %c0_436, %c0_437] : memref<8x8x128xf32, #tpu.memory_space<vmem>>, vector<1x8x128xf32>
    %927 = vector.shape_cast %926 : vector<1x8x128xf32> to vector<8x128xf32>
    %928 = vector.shape_cast %925 : vector<8x128xf32> to vector<1x8x128xf32>
    tpu.vector_store %arg18[%c6_435, %c0_436, %c0_437], %928 {strides = array<i32>} : memref<8x8x128xf32, #tpu.memory_space<vmem>>, vector<1x8x128xf32>,
    %c6_438 = arith.constant 6 : index
    %929 = memref.load %arg0[%c6_438] : memref<8xi32, #tpu.memory_space<smem>>
    %c0_i32_439 = arith.constant 0 : i32
    %930 = arith.cmpi sgt, %929, %c0_i32_439 : i32
    %931 = arith.extui %930 : i1 to i32
    %c0_i32_440 = arith.constant 0 : i32
    %932 = arith.cmpi ne, %931, %c0_i32_440 : i32
    scf.if %932 {
      %c6_478 = arith.constant 6 : index
      %c0_479 = arith.constant 0 : index
      %c0_480 = arith.constant 0 : index
      %1005 = vector.load %arg2[%c6_478, %c0_479, %c0_480] : memref<8x8x1xi32, #tpu.memory_space<vmem>>, vector<1x8x1xi32>
      %1006 = vector.shape_cast %1005 : vector<1x8x1xi32> to vector<8x1xi32>
      %1007 = vector.broadcast %1006 : vector<8x1xi32> to vector<8x128xi32>
      %1008 = arith.cmpi eq, %6, %1007 : vector<8x128xi32>
      %1009 = arith.extui %1008 : vector<8x128xi1> to vector<8x128xi32>
      %1010 = arith.sitofp %1009 : vector<8x128xi32> to vector<8x128xf32>
      %c0_481 = arith.constant 0 : index
      %c0_482 = arith.constant 0 : index
      %1011 = vector.load %arg19[%c0_481, %c0_482] : memref<8x128xf32, #tpu.memory_space<vmem>>, vector<8x128xf32>
      tpu.vector_store %arg19[%c0_481, %c0_482], %1010 {strides = array<i32>} : memref<8x128xf32, #tpu.memory_space<vmem>>, vector<8x128xf32>,
    } else {
    }
    %c0_i32_441 = arith.constant 0 : i32
    %933 = arith.cmpi eq, %929, %c0_i32_441 : i32
    %934 = arith.extui %933 : i1 to i32
    %c0_i32_442 = arith.constant 0 : i32
    %935 = arith.cmpi ne, %934, %c0_i32_442 : i32
    scf.if %935 {
      %cst_478 = arith.constant -1.000000e+30 : f32
      %1005 = vector.broadcast %cst_478 : f32 to vector<8x128xf32>
      %1006 = arith.select %8, %925, %1005 : vector<8x128xi1>, vector<8x128xf32>
      %cst_479 = arith.constant dense<0xFF800000> : vector<8xf32>
      %1007 = vector.multi_reduction <maximumf>, %1006, %cst_479 [1] : vector<8x128xf32> to vector<8xf32>
      %1008 = vector.shape_cast %1007 : vector<8xf32> to vector<8x1xf32>
      %1009 = vector.broadcast %1008 : vector<8x1xf32> to vector<8x128xf32>
      %1010 = arith.cmpf oeq, %1006, %1009 : vector<8x128xf32>
      %c128_i32 = arith.constant 128 : i32
      %1011 = vector.broadcast %c128_i32 : i32 to vector<8x128xi32>
      %1012 = arith.select %1010, %6, %1011 : vector<8x128xi1>, vector<8x128xi32>
      %cst_480 = arith.constant dense<2147483647> : vector<8xi32>
      %1013 = vector.multi_reduction <minsi>, %1012, %cst_480 [1] : vector<8x128xi32> to vector<8xi32>
      %1014 = vector.shape_cast %1013 : vector<8xi32> to vector<8x1xi32>
      %1015 = vector.broadcast %1014 : vector<8x1xi32> to vector<8x128xi32>
      %1016 = arith.cmpi eq, %6, %1015 : vector<8x128xi32>
      %1017 = arith.extui %1016 : vector<8x128xi1> to vector<8x128xi32>
      %1018 = arith.sitofp %1017 : vector<8x128xi32> to vector<8x128xf32>
      %c0_481 = arith.constant 0 : index
      %c0_482 = arith.constant 0 : index
      %1019 = vector.load %arg19[%c0_481, %c0_482] : memref<8x128xf32, #tpu.memory_space<vmem>>, vector<8x128xf32>
      tpu.vector_store %arg19[%c0_481, %c0_482], %1018 {strides = array<i32>} : memref<8x128xf32, #tpu.memory_space<vmem>>, vector<8x128xf32>,
    } else {
    }
    %c0_443 = arith.constant 0 : index
    %c0_444 = arith.constant 0 : index
    %936 = vector.load %arg19[%c0_443, %c0_444] : memref<8x128xf32, #tpu.memory_space<vmem>>, vector<8x128xf32>
    %937 = arith.truncf %936 : vector<8x128xf32> to vector<8x128xbf16>
    %c0_445 = arith.constant 0 : index
    %c0_446 = arith.constant 0 : index
    %938 = vector.load %arg15[%c0_445, %c0_446] : memref<128x16xbf16, #tpu.memory_space<vmem>>, vector<128x16xbf16>
    %cst_447 = arith.constant dense<0.000000e+00> : vector<8x16xf32>
    %939 = tpu.matmul %937, %938, %cst_447 {dimension_numbers = #tpu.dot_dimension_numbers<[1], [0], [0], [1], [0, 0, 1, 1], [], []>} : vector<8x128xbf16>, vector<128x16xbf16>, vector<8x16xf32> -> vector<8x16xf32>
    %940 = arith.truncf %939 : vector<8x16xf32> to vector<8x16xbf16>
    %c0_448 = arith.constant 0 : index
    %c0_449 = arith.constant 0 : index
    %941 = vector.load %arg9[%c0_448, %c0_449] : memref<16x128xbf16, #tpu.memory_space<vmem>>, vector<16x128xbf16>
    %cst_450 = arith.constant dense<0.000000e+00> : vector<8x128xf32>
    %942 = tpu.matmul %940, %941, %cst_450 {dimension_numbers = #tpu.dot_dimension_numbers<[1], [0], [0], [1], [0, 0, 1, 1], [], []>} : vector<8x16xbf16>, vector<16x128xbf16>, vector<8x128xf32> -> vector<8x128xf32>
    %943 = arith.truncf %891 : vector<8x32xf32> to vector<8x32xbf16>
    %c0_451 = arith.constant 0 : index
    %c0_452 = arith.constant 0 : index
    %944 = vector.load %arg11[%c0_451, %c0_452] : memref<32x128xbf16, #tpu.memory_space<vmem>>, vector<32x128xbf16>
    %cst_453 = arith.constant dense<0.000000e+00> : vector<8x128xf32>
    %945 = tpu.matmul %943, %944, %cst_453 {dimension_numbers = #tpu.dot_dimension_numbers<[1], [0], [0], [1], [0, 0, 1, 1], [], []>} : vector<8x32xbf16>, vector<32x128xbf16>, vector<8x128xf32> -> vector<8x128xf32>
    %946 = arith.addf %942, %945 : vector<8x128xf32>
    %c0_454 = arith.constant 0 : index
    %c0_455 = arith.constant 0 : index
    %947 = vector.load %arg13[%c0_454, %c0_455] : memref<1x128xf32, #tpu.memory_space<vmem>>, vector<1x128xf32>
    %948 = vector.broadcast %947 : vector<1x128xf32> to vector<8x128xf32>
    %949 = arith.addf %946, %948 : vector<8x128xf32>
    %cst_456 = arith.constant 5.000000e-01 : f32
    %950 = vector.broadcast %cst_456 : f32 to vector<8x128xf32>
    %951 = arith.mulf %950, %949 : vector<8x128xf32>
    %952 = arith.select %5, %949, %951 : vector<8x128xi1>, vector<8x128xf32>
    %953 = math.tanh %952 : vector<8x128xf32>
    %cst_457 = arith.constant 5.000000e-01 : f32
    %954 = vector.broadcast %cst_457 : f32 to vector<8x128xf32>
    %955 = arith.mulf %954, %953 : vector<8x128xf32>
    %cst_458 = arith.constant 5.000000e-01 : f32
    %956 = vector.broadcast %cst_458 : f32 to vector<8x128xf32>
    %957 = arith.addf %955, %956 : vector<8x128xf32>
    %958 = arith.select %5, %953, %957 : vector<8x128xi1>, vector<8x128xf32>
    %959 = vector.extract_strided_slice %958 {offsets = [0, 0], sizes = [8, 32], strides = [1, 1]} : vector<8x128xf32> to vector<8x32xf32>
    %960 = vector.extract_strided_slice %958 {offsets = [0, 32], sizes = [8, 32], strides = [1, 1]} : vector<8x128xf32> to vector<8x32xf32>
    %961 = vector.extract_strided_slice %958 {offsets = [0, 64], sizes = [8, 32], strides = [1, 1]} : vector<8x128xf32> to vector<8x32xf32>
    %962 = vector.extract_strided_slice %958 {offsets = [0, 96], sizes = [8, 32], strides = [1, 1]} : vector<8x128xf32> to vector<8x32xf32>
    %963 = arith.mulf %960, %889 : vector<8x32xf32>
    %964 = arith.mulf %959, %961 : vector<8x32xf32>
    %965 = arith.addf %963, %964 : vector<8x32xf32>
    %966 = math.tanh %965 : vector<8x32xf32>
    %967 = arith.mulf %962, %966 : vector<8x32xf32>
    %968 = arith.truncf %967 : vector<8x32xf32> to vector<8x32xbf16>
    %c0_459 = arith.constant 0 : index
    %c0_460 = arith.constant 0 : index
    %969 = vector.load %arg10[%c0_459, %c0_460] : memref<32x128xbf16, #tpu.memory_space<vmem>>, vector<32x128xbf16>
    %cst_461 = arith.constant dense<0.000000e+00> : vector<8x128xf32>
    %970 = tpu.matmul %968, %969, %cst_461 {dimension_numbers = #tpu.dot_dimension_numbers<[1], [0], [0], [1], [0, 0, 1, 1], [], []>} : vector<8x32xbf16>, vector<32x128xbf16>, vector<8x128xf32> -> vector<8x128xf32>
    %971 = arith.truncf %919 : vector<8x32xf32> to vector<8x32xbf16>
    %c0_462 = arith.constant 0 : index
    %c0_463 = arith.constant 0 : index
    %972 = vector.load %arg12[%c0_462, %c0_463] : memref<32x128xbf16, #tpu.memory_space<vmem>>, vector<32x128xbf16>
    %cst_464 = arith.constant dense<0.000000e+00> : vector<8x128xf32>
    %973 = tpu.matmul %971, %972, %cst_464 {dimension_numbers = #tpu.dot_dimension_numbers<[1], [0], [0], [1], [0, 0, 1, 1], [], []>} : vector<8x32xbf16>, vector<32x128xbf16>, vector<8x128xf32> -> vector<8x128xf32>
    %974 = arith.addf %970, %973 : vector<8x128xf32>
    %c0_465 = arith.constant 0 : index
    %c0_466 = arith.constant 0 : index
    %975 = vector.load %arg14[%c0_465, %c0_466] : memref<1x128xf32, #tpu.memory_space<vmem>>, vector<1x128xf32>
    %976 = vector.broadcast %975 : vector<1x128xf32> to vector<8x128xf32>
    %977 = arith.addf %974, %976 : vector<8x128xf32>
    %cst_467 = arith.constant 5.000000e-01 : f32
    %978 = vector.broadcast %cst_467 : f32 to vector<8x128xf32>
    %979 = arith.mulf %978, %977 : vector<8x128xf32>
    %980 = arith.select %5, %977, %979 : vector<8x128xi1>, vector<8x128xf32>
    %981 = math.tanh %980 : vector<8x128xf32>
    %cst_468 = arith.constant 5.000000e-01 : f32
    %982 = vector.broadcast %cst_468 : f32 to vector<8x128xf32>
    %983 = arith.mulf %982, %981 : vector<8x128xf32>
    %cst_469 = arith.constant 5.000000e-01 : f32
    %984 = vector.broadcast %cst_469 : f32 to vector<8x128xf32>
    %985 = arith.addf %983, %984 : vector<8x128xf32>
    %986 = arith.select %5, %981, %985 : vector<8x128xi1>, vector<8x128xf32>
    %987 = vector.extract_strided_slice %986 {offsets = [0, 0], sizes = [8, 32], strides = [1, 1]} : vector<8x128xf32> to vector<8x32xf32>
    %988 = vector.extract_strided_slice %986 {offsets = [0, 32], sizes = [8, 32], strides = [1, 1]} : vector<8x128xf32> to vector<8x32xf32>
    %989 = vector.extract_strided_slice %986 {offsets = [0, 64], sizes = [8, 32], strides = [1, 1]} : vector<8x128xf32> to vector<8x32xf32>
    %990 = vector.extract_strided_slice %986 {offsets = [0, 96], sizes = [8, 32], strides = [1, 1]} : vector<8x128xf32> to vector<8x32xf32>
    %991 = arith.mulf %988, %917 : vector<8x32xf32>
    %992 = arith.mulf %987, %989 : vector<8x32xf32>
    %993 = arith.addf %991, %992 : vector<8x32xf32>
    %994 = math.tanh %993 : vector<8x32xf32>
    %995 = arith.mulf %990, %994 : vector<8x32xf32>
    %996 = arith.truncf %995 : vector<8x32xf32> to vector<8x32xbf16>
    %c0_470 = arith.constant 0 : index
    %c0_471 = arith.constant 0 : index
    %997 = vector.load %arg16[%c0_470, %c0_471] : memref<32x128xbf16, #tpu.memory_space<vmem>>, vector<32x128xbf16>
    %cst_472 = arith.constant dense<0.000000e+00> : vector<8x128xf32>
    %998 = tpu.matmul %996, %997, %cst_472 {dimension_numbers = #tpu.dot_dimension_numbers<[1], [0], [0], [1], [0, 0, 1, 1], [], []>} : vector<8x32xbf16>, vector<32x128xbf16>, vector<8x128xf32> -> vector<8x128xf32>
    %c0_473 = arith.constant 0 : index
    %c0_474 = arith.constant 0 : index
    %999 = vector.load %arg17[%c0_473, %c0_474] : memref<1x128xf32, #tpu.memory_space<vmem>>, vector<1x128xf32>
    %1000 = vector.broadcast %999 : vector<1x128xf32> to vector<8x128xf32>
    %1001 = arith.addf %998, %1000 : vector<8x128xf32>
    %c7_475 = arith.constant 7 : index
    %c0_476 = arith.constant 0 : index
    %c0_477 = arith.constant 0 : index
    %1002 = vector.load %arg18[%c7_475, %c0_476, %c0_477] : memref<8x8x128xf32, #tpu.memory_space<vmem>>, vector<1x8x128xf32>
    %1003 = vector.shape_cast %1002 : vector<1x8x128xf32> to vector<8x128xf32>
    %1004 = vector.shape_cast %1001 : vector<8x128xf32> to vector<1x8x128xf32>
    tpu.vector_store %arg18[%c7_475, %c0_476, %c0_477], %1004 {strides = array<i32>} : memref<8x8x128xf32, #tpu.memory_space<vmem>>, vector<1x8x128xf32>,
    return
  }
}

</mosaic_0001>

<bundles_post_ra>
// kernel: seq2seq_forward.1
= control target key start
LH: loop header
LB: loop body
LE: loop exit
PB: predicated region body
PF: predicated region fallthrough
CT: control target
= control target key end

     0   :  { %s8572_s0 = inlined_call_operand.vmem [shape: s32[8], index: 0, kind: input, shape index: {}]   ;;  %s8573_s1 = inlined_call_operand.vmem [shape: bf16[8,8,16], index: 1, kind: input, shape index: {}]   ;;  %s8574_s2 = inlined_call_operand.vmem [shape: s32[8,8,1], index: 2, kind: input, shape index: {}]   ;;  %s8575_s3 = inlined_call_operand.vmem [shape: bf16[16,128], index: 3, kind: input, shape index: {}]   ;;  %s8576_s4 = inlined_call_operand.vmem [shape: bf16[32,128], index: 4, kind: input, shape index: {}]   ;;  %s8577_s5 = inlined_call_operand.vmem [shape: bf16[32,128], index: 5, kind: input, shape index: {}]   ;;  %s8578_s6 = inlined_call_operand.vmem [shape: bf16[32,128], index: 6, kind: input, shape index: {}]   ;;  %s8579_s7 = inlined_call_operand.vmem [shape: f32[1,128], index: 7, kind: input, shape index: {}]   ;;  %s8580_s8 = inlined_call_operand.vmem [shape: f32[1,128], index: 8, kind: input, shape index: {}]   ;;  %s8581_s9 = inlined_call_operand.vmem [shape: bf16[16,128], index: 9, kind: input, shape index: {}]   ;;  %s8582_s10 = inlined_call_operand.vmem [shape: bf16[32,128], index: 10, kind: input, shape index: {}]   ;;  %s8583_s11 = inlined_call_operand.vmem [shape: bf16[32,128], index: 11, kind: input, shape index: {}]   ;;  %s8584_s12 = inlined_call_operand.vmem [shape: bf16[32,128], index: 12, kind: input, shape index: {}]   ;;  %s8585_s13 = inlined_call_operand.vmem [shape: f32[1,128], index: 13, kind: input, shape index: {}]   ;;  %s8586_s14 = inlined_call_operand.vmem [shape: f32[1,128], index: 14, kind: input, shape index: {}]   ;;  %s8587_s15 = inlined_call_operand.vmem [shape: bf16[128,16], index: 15, kind: input, shape index: {}]   ;;  %s8588_s16 = inlined_call_operand.vmem [shape: bf16[32,128], index: 16, kind: input, shape index: {}]   ;;  %s8589_s17 = inlined_call_operand.vmem [shape: f32[1,128], index: 17, kind: input, shape index: {}]   ;;  %s8590_s18 = inlined_call_operand.hbm [shape: f32[8,8,128], index: 18, kind: output, shape index: {}]  }
   0x1   :  { %8592 = sst [smem:[#allocation9_spill]] %s8572_s0 }
   0x2   :  { %8593 = sst [smem:[#allocation10_spill]] %s8573_s1 }
   0x3   :  { %8594 = sst [smem:[#allocation11_spill]] %s8574_s2 }
   0x4   :  { %23 = vsyncpa [#allocation5], 0 }
   0x5   :  { %24 = vsyncpa [#allocation4], 0  ;;  %s8595_s29 = sld [smem:[#allocation9_spill]] }
   0xb   :  { %s31_s30 = sshll.u32 %s8595_s29, 4  ;;  %s32_s30 = int_to_ptr.vmem [resolvable:$true] %s31_s30 }
   0xc   :  { %s6954_s0 = scalar_lea.vmem %s32_s30, 16  ;;  %p6959_p1 = scmp.lt.s32.totalorder %s32_s30, %s32_s30 }
   0xd   :  { %p6955_p0 = scmp.ne.s32.totalorder %s32_s30, %s6954_s0  ;;  %p6960_p2 = scmp.lt.s32.totalorder %s6954_s0, %s6954_s0 }
   0xf   :  { %p6961_p3 = por %p6960_p2, %p6959_p1 }
  0x11   :  { %p6962_p4 = pnand %p6961_p3, %p6955_p0 }
  0x13   :  { %6965 = shalt.err (!%p6962_p4)
}
  0x14   :  { %s6992_s19 = smov [#allocation3]  }
  0x15   :  { %34 = dma.vmem_to_smem %s32_s30, 16, %s6992_s19, [#allocation5]  }
  0x16   :  { %6988 = dma.done.wait [#allocation5], 16  }
  0x17   :  { %6989 = vsyncadd [#allocation5], 4294967280 }
  0x18   :  { %72 = sfence }
  0x19   :  { %v7120_v0 = vld [vmem:[%s8577_s5] sm:$0xff]   ;;  %v6993_v1 = vmov 0.0   ;;  %vm6994_vm0 = vmmov 0   ;;  %v7136_v3 = vld [vmem:[%s8577_s5 + $0x8] sm:$0xff]   ;;  %s8596_s26 = sld [smem:[#allocation10_spill]]  ;;  %vm149_vm1 = vcmask 130048   ;;  %v74_v6 = vlaneseq }
  0x1a   :  { %6018 = vmatprep.subr.bf16.mxu0 %v6993_v1  ;;  %1963 = vst [vmem:[#allocation6] sm:$0xff] %v6993_v1  ;;  %6026 = vmatprep.subr.bf16.mxu1 %v6993_v1  ;;  %v7128_v2 = vld [vmem:[%s8575_s3] sm:$0xff]   ;;  %v6995_v5 = vmov 0   ;;  %s6996_s29 = smov 64   ;;  %s6997_s30 = smov 32   ;;  %v7191_v33 = vld [vmem:[%s8578_s6 + $0x8] sm:$0xff]  }
  0x1b   :  { %6019 = vmatpush3.bf16.msra.mxu0 %v7120_v0  ;;  %6028 = vmatprep.mubr.msk.bf16.mxu1 %vm6994_vm0, %v6993_v1  ;;  %v7153_v7 = vand.u32 127, %v74_v6  ;;  %v7159_v12 = vld [vmem:[%s8579_s7] ss:$0 sm:$0xff]  ;;  %v7197_v34 = vld [vmem:[%s8576_s4 + $0x8] sm:$0xff]   ;;  %vm99_vm6 = vcmask 261120   ;;  %s8599_s19 = sld [smem:[#allocation11_spill]] }
  0x1c   :  { %6027 = vmatpush3.bf16.msra.mxu1 %v7128_v2  ;;  %6020 = vmatprep.subr.bf16.mxu0 %v6993_v1  ;;  %v7180_v31 = vld [vmem:[%s8578_s6] sm:$0xff]  }
  0x1d   :  { %6022 = vmatprep.mubr.msk.bf16.mxu0 %vm6994_vm0, %v6993_v1  ;;  %6032 = vmatprep.subr.bf16.mxu1 %v6993_v1  ;;  %vm79_vm2 = vcmp.lt.s32.totalorder %v7153_v7, 32  ;;  %vm76_vm3 = vcmp.ge.s32.totalorder %v7153_v7, 64  ;;  %vm77_vm4 = vcmp.lt.s32.totalorder %v7153_v7, 96  ;;  %v7185_v32 = vld [vmem:[%s8576_s4] sm:$0xff]  }
  0x1e   :  { %6691 = vset.pattern.permute.xlu0 %v6995_v5  ;;  %vm7164_vm5 = vmand %vm76_vm3, %vm77_vm4  ;;  %v7238_v46 = vld [vmem:[%s8580_s8] ss:$0 sm:$0xff] }
  0x1f   :  { %v80_v4 = vld [vmem:[%s8596_s26] sm:$0xf]  ;;  %6021 = vmatpush3.bf16.msra.mxu0 %v7136_v3  ;;  %v5522_v44 = vld [vmem:[%s8596_s26 + $0x4] sm:$0xf] }
  0x20   :  { %6029 = vmatmul.mubr.msk.bf16.vlgmr.msra.gmra.mrb[0].mxu1 %vm149_vm1, %v80_v4  ;;  %6040 = vmatprep.subr.bf16.mxu0 %v6993_v1 }
  0x21   :  { %6036 = vmatprep.mubr.msk.bf16.mxu1 %vm6994_vm0, %v6993_v1  ;;  %6033 = vmatpush3.bf16.msra.mxu1 %v7180_v31 }
  0x22   :  { %6023 = vmatmul.mubr.bf16.vlgmr.msra.gmra.mrb[0].mxu0 %v6995_v5  ;;  %6034 = vmatprep.subr.bf16.mxu1 %v6993_v1 }
  0x23   :  { %6044 = vmatprep.mubr.msk.bf16.mxu0 %vm6994_vm0, %v6993_v1  ;;  %6041 = vmatpush3.bf16.msra.mxu0 %v7185_v32 }
  0x24   :  { %6042 = vmatprep.subr.bf16.mxu0 %v6993_v1 }
  0x25   :  { %6035 = vmatpush3.bf16.msra.mxu1 %v7191_v33 }
  0x26   :  { %6048 = vmatprep.subr.bf16.mxu1 %v6993_v1 }
  0x27   :  { %6043 = vmatpush3.bf16.msra.mxu0 %v7197_v34 }
  0x28   :  { %6056 = vmatprep.subr.bf16.mxu0 %v6993_v1  ;;  %6037 = vmatmul.mubr.bf16.vlgmr.msra.gmra.mrb[4].mxu1 %v6995_v5 }
  0x29   :  { %6049 = vmatpush3.bf16.msra.mxu1 %v7120_v0  ;;  %6052 = vmatprep.mubr.msk.bf16.mxu1 %vm6994_vm0, %v6993_v1 }
  0x2a   :  { %6050 = vmatprep.subr.bf16.mxu1 %v6993_v1 }
  0x2d   :  { %6051 = vmatpush3.bf16.msra.mxu1 %v7136_v3 }
  0x2e   :  { %6062 = vmatprep.subr.bf16.mxu1 %v6993_v1 }
  0xf3   :  { %v187_v8 = vpop.f32.mrb[0].mxu1 }
  0xf4   :  { %v6030_v9 = vpop.f32.mrb[1].mxu1 }
  0xf5   :  { %v190_v10 = vpop.f32.mrb[2].mxu1  ;;  %v137_v11 = vpop.f32.mrb[0].mxu0 }
  0xf6   :  { %v6031_v13 = vpop.f32.mrb[3].mxu1  ;;  %v188_v14 = vadd.f32 %v187_v8, %v137_v11  ;;  %v6024_v15 = vpop.f32.mrb[1].mxu0 }
  0xf7   :  { %v140_v16 = vpop.f32.mrb[2].mxu0 }
  0xf8   :  { %v200_v17 = vadd.f32 %v7159_v12, %v188_v14  ;;  %v6025_v18 = vpop.f32.mrb[3].mxu0 }
  0xfa   :  { %v201_v20 = vmul.f32 0.5, %v200_v17 }
  0xfb   :  { %v279_v39 = vpop.f32.mrb[4].mxu1 }
  0xfc   :  { %v202_v21 = vsel %vm7164_vm5, %v200_v17, %v201_v20  ;;  %v6038_v40 = vpop.f32.mrb[5].mxu1 }
  0xfd   :  { %6716 = vtanh.f32 %v202_v21  ;;  %v282_v41 = vpop.f32.mrb[6].mxu1 }
  0xfe   :  { %v6039_v42 = vpop.f32.mrb[7].mxu1  ;;  %v5527_v41 = vld [vmem:[%s8596_s26 + $0x8] sm:$0xf] }
 0x107   :  { %v6717_v22 = vpop.eup %6716 }
 0x108   :  { %v204_v23 = vmul.f32 0.5, %v6717_v22 }
 0x10a   :  { %v205_v24 = vadd.f32 0.5, %v204_v23 }
 0x10c   :  { %v206_v25 = vsel %vm7164_vm5, %v6717_v22, %v205_v24 }
 0x10d   :  { %209 = vrot.lane.b32.xlu0 %v206_v25, %s6996_s29  ;;  %v207_v28 = vmul.f32 0.0, %v206_v25 }
 0x17f   :  { %v210_v26 = vpop.permute.xlu0 %209 }
 0x180   :  { %v212_v27 = vmul.f32 %v210_v26, %v206_v25 }
 0x182   :  { %214 = vrot.lane.b32.xlu0 %v212_v27, %s6997_s30 }
 0x1f4   :  { %v215_v29 = vpop.permute.xlu0 %214 }
 0x1f5   :  { %v7174_v30 = vadd.f32 %v215_v29, %v207_v28 }
 0x1f7   :  { %6718 = vtanh.f32 %v7174_v30 }
 0x201   :  { %v6719_v35 = vpop.eup %6718 }
 0x202   :  { %220 = vrot.lane.b32.xlu1 %v6719_v35, %s6996_s29 }
 0x274   :  { %v221_v36 = vpop.permute.xlu1 %220 }
 0x275   :  { %v223_v37 = vmul.f32 %v221_v36, %v206_v25 }
 0x277   :  { %v224_v38 = vpack.c.bf16 %v223_v37, %v223_v37 }
 0x279   :  { %286 = vrot.lane.b32.xlu1 %v224_v38, %s6997_s30 }
 0x2eb   :  { %v287_v43 = vpop.permute.xlu1 %286 }
 0x2ec   :  { %6045 = vmatmul.mubr.msk.bf16.vlgmr.msra.gmra.mrb[4].mxu0 %vm99_vm6, %v287_v43  ;;  %6053 = vmatmul.mubr.msk.bf16.vlgmr.msra.gmra.mrb[8].mxu1 %vm99_vm6, %v287_v43 }
 0x2ed   :  { %6057 = vmatpush3.bf16.msra.mxu0 %v7128_v2  ;;  %6058 = vmatprep.mubr.msk.bf16.mxu0 %vm6994_vm0, %v6993_v1 }
 0x2ee   :  { %6063 = vmatpush3.bf16.msra.mxu1 %v7180_v31  ;;  %6066 = vmatprep.mubr.msk.bf16.mxu1 %vm6994_vm0, %v6993_v1 }
 0x2ef   :  { %6064 = vmatprep.subr.bf16.mxu1 %v6993_v1  ;;  %6070 = vmatprep.subr.bf16.mxu0 %v6993_v1 }
 0x2f2   :  { %6065 = vmatpush3.bf16.msra.mxu1 %v7191_v33 }
 0x2f3   :  { %6078 = vmatprep.subr.bf16.mxu1 %v6993_v1 }
 0x2f4   :  { %6059 = vmatmul.mubr.msk.bf16.vlgmr.msra.gmra.mrb[8].mxu0 %vm149_vm1, %v5522_v44 }
 0x2f5   :  { %6071 = vmatpush3.bf16.msra.mxu0 %v7185_v32  ;;  %6074 = vmatprep.mubr.msk.bf16.mxu0 %vm6994_vm0, %v6993_v1 }
 0x2f6   :  { %6072 = vmatprep.subr.bf16.mxu0 %v6993_v1 }
 0x2f9   :  { %6073 = vmatpush3.bf16.msra.mxu0 %v7197_v34 }
 0x2fa   :  { %6086 = vmatprep.subr.bf16.mxu0 %v6993_v1 }
 0x3bf   :  { %v337_v45 = vpop.f32.mrb[4].mxu0  ;;  %v410_v47 = vpop.f32.mrb[8].mxu1 }
 0x3c0   :  { %v338_v48 = vadd.f32 %v337_v45, %v279_v39  ;;  %v6046_v49 = vpop.f32.mrb[5].mxu0  ;;  %v6054_v50 = vpop.f32.mrb[9].mxu1 }
 0x3c1   :  { %v340_v51 = vpop.f32.mrb[6].mxu0  ;;  %v413_v52 = vpop.f32.mrb[10].mxu1 }
 0x3c2   :  { %v350_v53 = vadd.f32 %v7238_v46, %v338_v48  ;;  %v6047_v54 = vpop.f32.mrb[7].mxu0  ;;  %v6055_v55 = vpop.f32.mrb[11].mxu1 }
 0x3c4   :  { %v351_v56 = vmul.f32 0.5, %v350_v53 }
 0x3c6   :  { %v352_v57 = vsel %vm7164_vm5, %v350_v53, %v351_v56 }
 0x3c7   :  { %6720 = vtanh.f32 %v352_v57  ;;  %v453_v58 = vpop.f32.mrb[8].mxu0 }
 0x3c8   :  { %v454_v59 = vadd.f32 %v453_v58, %v410_v47  ;;  %v6060_v60 = vpop.f32.mrb[9].mxu0 }
 0x3c9   :  { %v456_v61 = vpop.f32.mrb[10].mxu0 }
 0x3ca   :  { %v459_v62 = vadd.f32 %v7159_v12, %v454_v59  ;;  %v6061_v63 = vpop.f32.mrb[11].mxu0 }
 0x3cc   :  { %v460_v4 = vmul.f32 0.5, %v459_v62 }
 0x3ce   :  { %v461_v5 = vsel %vm7164_vm5, %v459_v62, %v460_v4 }
 0x3cf   :  { %6722 = vtanh.f32 %v461_v5 }
 0x3d1   :  { %v6721_v6 = vpop.eup %6720 }
 0x3d2   :  { %v354_v8 = vmul.f32 0.5, %v6721_v6 }
 0x3d4   :  { %v355_v9 = vadd.f32 0.5, %v354_v8 }
 0x3d6   :  { %v356_v10 = vsel %vm7164_vm5, %v6721_v6, %v355_v9 }
 0x3d7   :  { %359 = vrot.lane.b32.xlu0 %v356_v10, %s6996_s29  ;;  %v357_v21 = vmul.f32 0.0, %v356_v10 }
 0x3d9   :  { %v6723_v11 = vpop.eup %6722 }
 0x3da   :  { %v463_v13 = vmul.f32 0.5, %v6723_v11 }
 0x3dc   :  { %v464_v14 = vadd.f32 0.5, %v463_v13 }
 0x3de   :  { %v465_v15 = vsel %vm7164_vm5, %v6723_v11, %v464_v14 }
 0x3df   :  { %468 = vrot.lane.b32.xlu1 %v465_v15, %s6996_s29  ;;  %v466_v24 = vmul.f32 %v465_v15, %v7174_v30 }
 0x449   :  { %v360_v16 = vpop.permute.xlu0 %359 }
 0x44a   :  { %v362_v17 = vmul.f32 %v360_v16, %v356_v10 }
 0x44c   :  { %364 = vrot.lane.b32.xlu0 %v362_v17, %s6997_s30 }
 0x451   :  { %v469_v18 = vpop.permute.xlu1 %468 }
 0x452   :  { %v471_v20 = vmul.f32 %v469_v18, %v465_v15 }
 0x454   :  { %473 = vrot.lane.b32.xlu1 %v471_v20, %s6997_s30 }
 0x4be   :  { %v365_v22 = vpop.permute.xlu0 %364 }
 0x4bf   :  { %v7254_v23 = vadd.f32 %v365_v22, %v357_v21 }
 0x4c1   :  { %6724 = vtanh.f32 %v7254_v23 }
 0x4c6   :  { %v474_v25 = vpop.permute.xlu1 %473 }
 0x4c7   :  { %v7258_v26 = vadd.f32 %v474_v25, %v466_v24 }
 0x4c9   :  { %6726 = vtanh.f32 %v7258_v26 }
 0x4cb   :  { %v6725_v27 = vpop.eup %6724 }
 0x4cc   :  { %370 = vrot.lane.b32.xlu0 %v6725_v27, %s6996_s29 }
 0x4d3   :  { %v6727_v28 = vpop.eup %6726 }
 0x4d4   :  { %479 = vrot.lane.b32.xlu1 %v6727_v28, %s6996_s29 }
 0x53e   :  { %v371_v29 = vpop.permute.xlu0 %370 }
 0x53f   :  { %v373_v35 = vmul.f32 %v371_v29, %v356_v10 }
 0x541   :  { %v484_v36 = vpack.c.bf16 %v373_v35, %v373_v35 }
 0x543   :  { %486 = vrot.lane.b32.xlu0 %v484_v36, %s6997_s30 }
 0x546   :  { %v480_v37 = vpop.permute.xlu1 %479 }
 0x547   :  { %v482_v38 = vmul.f32 %v480_v37, %v465_v15 }
 0x549   :  { %v483_v39 = vpack.c.bf16 %v482_v38, %v482_v38 }
 0x54b   :  { %532 = vrot.lane.b32.xlu1 %v483_v39, %s6997_s30 }
 0x5b5   :  { %v487_v30 = vpop.permute.xlu0 %486 }
 0x5b6   :  { %6067 = vmatmul.mubr.msk.bf16.vlgmr.msra.gmra.mrb[12].mxu1 %vm99_vm6, %v487_v30 }
 0x5b7   :  { %6079 = vmatpush3.bf16.msra.mxu1 %v7120_v0  ;;  %6082 = vmatprep.mubr.msk.bf16.mxu1 %vm6994_vm0, %v6993_v1 }
 0x5b8   :  { %6080 = vmatprep.subr.bf16.mxu1 %v6993_v1 }
 0x5bb   :  { %6081 = vmatpush3.bf16.msra.mxu1 %v7136_v3 }
 0x5bc   :  { %6092 = vmatprep.subr.bf16.mxu1 %v6993_v1 }
 0x5bd   :  { %v533_v40 = vpop.permute.xlu1 %532 }
 0x5be   :  { %6075 = vmatmul.mubr.msk.bf16.vlgmr.msra.gmra.mrb[12].mxu0 %vm99_vm6, %v533_v40  ;;  %6083 = vmatmul.mubr.msk.bf16.vlgmr.msra.gmra.mrb[16].mxu1 %vm99_vm6, %v533_v40 }
 0x5bf   :  { %6087 = vmatpush3.bf16.msra.mxu0 %v7128_v2  ;;  %6088 = vmatprep.mubr.msk.bf16.mxu0 %vm6994_vm0, %v6993_v1 }
 0x5c0   :  { %6093 = vmatpush3.bf16.msra.mxu1 %v7180_v31  ;;  %6096 = vmatprep.mubr.msk.bf16.mxu1 %vm6994_vm0, %v6993_v1 }
 0x5c1   :  { %6094 = vmatprep.subr.bf16.mxu1 %v6993_v1  ;;  %6100 = vmatprep.subr.bf16.mxu0 %v6993_v1 }
 0x5c4   :  { %6095 = vmatpush3.bf16.msra.mxu1 %v7191_v33 }
 0x5c5   :  { %6108 = vmatprep.subr.bf16.mxu1 %v6993_v1 }
 0x5c6   :  { %6089 = vmatmul.mubr.msk.bf16.vlgmr.msra.gmra.mrb[16].mxu0 %vm149_vm1, %v5527_v41 }
 0x5c7   :  { %6101 = vmatpush3.bf16.msra.mxu0 %v7185_v32  ;;  %6104 = vmatprep.mubr.msk.bf16.mxu0 %vm6994_vm0, %v6993_v1 }
 0x5c8   :  { %6102 = vmatprep.subr.bf16.mxu0 %v6993_v1 }
 0x5cb   :  { %6103 = vmatpush3.bf16.msra.mxu0 %v7197_v34 }
 0x5cc   :  { %6116 = vmatprep.subr.bf16.mxu0 %v6993_v1 }
 0x689   :  { %v525_v42 = vpop.f32.mrb[12].mxu1 }
 0x68a   :  { %v6068_v43 = vpop.f32.mrb[13].mxu1 }
 0x68b   :  { %v528_v44 = vpop.f32.mrb[14].mxu1 }
 0x68c   :  { %v6069_v45 = vpop.f32.mrb[15].mxu1 }
 0x691   :  { %v571_v47 = vpop.f32.mrb[12].mxu0  ;;  %v637_v48 = vpop.f32.mrb[16].mxu1 }
 0x692   :  { %v572_v49 = vadd.f32 %v571_v47, %v525_v42  ;;  %v6076_v50 = vpop.f32.mrb[13].mxu0  ;;  %v6084_v51 = vpop.f32.mrb[17].mxu1  ;;  %v5532_v42 = vld [vmem:[%s8596_s26 + $0xc] sm:$0xf] }
 0x693   :  { %v574_v52 = vpop.f32.mrb[14].mxu0  ;;  %v640_v53 = vpop.f32.mrb[18].mxu1 }
 0x694   :  { %v577_v54 = vadd.f32 %v7238_v46, %v572_v49  ;;  %v6077_v55 = vpop.f32.mrb[15].mxu0  ;;  %v6085_v56 = vpop.f32.mrb[19].mxu1 }
 0x696   :  { %v578_v57 = vmul.f32 0.5, %v577_v54 }
 0x698   :  { %v579_v58 = vsel %vm7164_vm5, %v577_v54, %v578_v57 }
 0x699   :  { %6728 = vtanh.f32 %v579_v58  ;;  %v680_v59 = vpop.f32.mrb[16].mxu0 }
 0x69a   :  { %v681_v60 = vadd.f32 %v680_v59, %v637_v48  ;;  %v6090_v61 = vpop.f32.mrb[17].mxu0 }
 0x69b   :  { %v683_v62 = vpop.f32.mrb[18].mxu0 }
 0x69c   :  { %v686_v63 = vadd.f32 %v7159_v12, %v681_v60  ;;  %v6091_v4 = vpop.f32.mrb[19].mxu0 }
 0x69e   :  { %v687_v5 = vmul.f32 0.5, %v686_v63 }
 0x6a0   :  { %v688_v6 = vsel %vm7164_vm5, %v686_v63, %v687_v5 }
 0x6a1   :  { %6730 = vtanh.f32 %v688_v6 }
 0x6a3   :  { %v6729_v8 = vpop.eup %6728 }
 0x6a4   :  { %v581_v9 = vmul.f32 0.5, %v6729_v8 }
 0x6a6   :  { %v582_v10 = vadd.f32 0.5, %v581_v9 }
 0x6a8   :  { %v583_v11 = vsel %vm7164_vm5, %v6729_v8, %v582_v10 }
 0x6a9   :  { %586 = vrot.lane.b32.xlu0 %v583_v11, %s6996_s29  ;;  %v584_v22 = vmul.f32 %v583_v11, %v7254_v23 }
 0x6ab   :  { %v6731_v13 = vpop.eup %6730 }
 0x6ac   :  { %v690_v14 = vmul.f32 0.5, %v6731_v13 }
 0x6ae   :  { %v691_v15 = vadd.f32 0.5, %v690_v14 }
 0x6b0   :  { %v692_v16 = vsel %vm7164_vm5, %v6731_v13, %v691_v15 }
 0x6b1   :  { %695 = vrot.lane.b32.xlu1 %v692_v16, %s6996_s29  ;;  %v693_v27 = vmul.f32 %v692_v16, %v7258_v26 }
 0x71b   :  { %v587_v17 = vpop.permute.xlu0 %586 }
 0x71c   :  { %v589_v18 = vmul.f32 %v587_v17, %v583_v11 }
 0x71e   :  { %591 = vrot.lane.b32.xlu0 %v589_v18, %s6997_s30 }
 0x723   :  { %v696_v20 = vpop.permute.xlu1 %695 }
 0x724   :  { %v698_v21 = vmul.f32 %v696_v20, %v692_v16 }
 0x726   :  { %700 = vrot.lane.b32.xlu1 %v698_v21, %s6997_s30 }
 0x790   :  { %v592_v24 = vpop.permute.xlu0 %591 }
 0x791   :  { %v7309_v25 = vadd.f32 %v592_v24, %v584_v22 }
 0x793   :  { %6732 = vtanh.f32 %v7309_v25 }
 0x798   :  { %v701_v28 = vpop.permute.xlu1 %700 }
 0x799   :  { %v7313_v29 = vadd.f32 %v701_v28, %v693_v27 }
 0x79b   :  { %6734 = vtanh.f32 %v7313_v29 }
 0x79d   :  { %v6733_v35 = vpop.eup %6732 }
 0x79e   :  { %597 = vrot.lane.b32.xlu0 %v6733_v35, %s6996_s29 }
 0x7a5   :  { %v6735_v36 = vpop.eup %6734 }
 0x7a6   :  { %706 = vrot.lane.b32.xlu1 %v6735_v36, %s6996_s29 }
 0x810   :  { %v598_v37 = vpop.permute.xlu0 %597 }
 0x811   :  { %v600_v23 = vmul.f32 %v598_v37, %v583_v11 }
 0x813   :  { %v711_v38 = vpack.c.bf16 %v600_v23, %v600_v23 }
 0x815   :  { %713 = vrot.lane.b32.xlu0 %v711_v38, %s6997_s30 }
 0x818   :  { %v707_v39 = vpop.permute.xlu1 %706 }
 0x819   :  { %v709_v30 = vmul.f32 %v707_v39, %v692_v16 }
 0x81b   :  { %v710_v40 = vpack.c.bf16 %v709_v30, %v709_v30 }
 0x81d   :  { %759 = vrot.lane.b32.xlu1 %v710_v40, %s6997_s30 }
 0x887   :  { %v714_v26 = vpop.permute.xlu0 %713 }
 0x888   :  { %6097 = vmatmul.mubr.msk.bf16.vlgmr.msra.gmra.mrb[20].mxu1 %vm99_vm6, %v714_v26 }
 0x889   :  { %6109 = vmatpush3.bf16.msra.mxu1 %v7120_v0  ;;  %6112 = vmatprep.mubr.msk.bf16.mxu1 %vm6994_vm0, %v6993_v1 }
 0x88a   :  { %6110 = vmatprep.subr.bf16.mxu1 %v6993_v1 }
 0x88d   :  { %6111 = vmatpush3.bf16.msra.mxu1 %v7136_v3 }
 0x88e   :  { %6122 = vmatprep.subr.bf16.mxu1 %v6993_v1 }
 0x88f   :  { %v760_v41 = vpop.permute.xlu1 %759 }
 0x890   :  { %6105 = vmatmul.mubr.msk.bf16.vlgmr.msra.gmra.mrb[20].mxu0 %vm99_vm6, %v760_v41  ;;  %6113 = vmatmul.mubr.msk.bf16.vlgmr.msra.gmra.mrb[24].mxu1 %vm99_vm6, %v760_v41 }
 0x891   :  { %6117 = vmatpush3.bf16.msra.mxu0 %v7128_v2  ;;  %6118 = vmatprep.mubr.msk.bf16.mxu0 %vm6994_vm0, %v6993_v1 }
 0x892   :  { %6123 = vmatpush3.bf16.msra.mxu1 %v7180_v31  ;;  %6126 = vmatprep.mubr.msk.bf16.mxu1 %vm6994_vm0, %v6993_v1 }
 0x893   :  { %6124 = vmatprep.subr.bf16.mxu1 %v6993_v1  ;;  %6130 = vmatprep.subr.bf16.mxu0 %v6993_v1 }
 0x896   :  { %6125 = vmatpush3.bf16.msra.mxu1 %v7191_v33 }
 0x897   :  { %6138 = vmatprep.subr.bf16.mxu1 %v6993_v1 }
 0x898   :  { %6119 = vmatmul.mubr.msk.bf16.vlgmr.msra.gmra.mrb[24].mxu0 %vm149_vm1, %v5532_v42 }
 0x899   :  { %6131 = vmatpush3.bf16.msra.mxu0 %v7185_v32  ;;  %6134 = vmatprep.mubr.msk.bf16.mxu0 %vm6994_vm0, %v6993_v1 }
 0x89a   :  { %6132 = vmatprep.subr.bf16.mxu0 %v6993_v1 }
 0x89d   :  { %6133 = vmatpush3.bf16.msra.mxu0 %v7197_v34 }
 0x89e   :  { %6146 = vmatprep.subr.bf16.mxu0 %v6993_v1 }
 0x95b   :  { %v752_v43 = vpop.f32.mrb[20].mxu1 }
 0x95c   :  { %v6098_v44 = vpop.f32.mrb[21].mxu1 }
 0x95d   :  { %v755_v45 = vpop.f32.mrb[22].mxu1 }
 0x95e   :  { %v6099_v47 = vpop.f32.mrb[23].mxu1 }
 0x963   :  { %v798_v48 = vpop.f32.mrb[20].mxu0  ;;  %v864_v49 = vpop.f32.mrb[24].mxu1 }
 0x964   :  { %v799_v50 = vadd.f32 %v798_v48, %v752_v43  ;;  %v6106_v51 = vpop.f32.mrb[21].mxu0  ;;  %v6114_v52 = vpop.f32.mrb[25].mxu1  ;;  %v5537_v43 = vld [vmem:[%s8596_s26 + $0x10] sm:$0xf] }
 0x965   :  { %v801_v53 = vpop.f32.mrb[22].mxu0  ;;  %v867_v54 = vpop.f32.mrb[26].mxu1 }
 0x966   :  { %v804_v55 = vadd.f32 %v7238_v46, %v799_v50  ;;  %v6107_v56 = vpop.f32.mrb[23].mxu0  ;;  %v6115_v57 = vpop.f32.mrb[27].mxu1 }
 0x968   :  { %v805_v58 = vmul.f32 0.5, %v804_v55 }
 0x96a   :  { %v806_v59 = vsel %vm7164_vm5, %v804_v55, %v805_v58 }
 0x96b   :  { %6736 = vtanh.f32 %v806_v59  ;;  %v907_v60 = vpop.f32.mrb[24].mxu0 }
 0x96c   :  { %v908_v61 = vadd.f32 %v907_v60, %v864_v49  ;;  %v6120_v62 = vpop.f32.mrb[25].mxu0 }
 0x96d   :  { %v910_v63 = vpop.f32.mrb[26].mxu0 }
 0x96e   :  { %v913_v4 = vadd.f32 %v7159_v12, %v908_v61  ;;  %v6121_v5 = vpop.f32.mrb[27].mxu0 }
 0x970   :  { %v914_v6 = vmul.f32 0.5, %v913_v4 }
 0x972   :  { %v915_v8 = vsel %vm7164_vm5, %v913_v4, %v914_v6 }
 0x973   :  { %6738 = vtanh.f32 %v915_v8 }
 0x975   :  { %v6737_v9 = vpop.eup %6736 }
 0x976   :  { %v808_v10 = vmul.f32 0.5, %v6737_v9 }
 0x978   :  { %v809_v11 = vadd.f32 0.5, %v808_v10 }
 0x97a   :  { %v810_v13 = vsel %vm7164_vm5, %v6737_v9, %v809_v11 }
 0x97b   :  { %813 = vrot.lane.b32.xlu0 %v810_v13, %s6996_s29  ;;  %v811_v24 = vmul.f32 %v810_v13, %v7309_v25 }
 0x97d   :  { %v6739_v14 = vpop.eup %6738 }
 0x97e   :  { %v917_v15 = vmul.f32 0.5, %v6739_v14 }
 0x980   :  { %v918_v16 = vadd.f32 0.5, %v917_v15 }
 0x982   :  { %v919_v17 = vsel %vm7164_vm5, %v6739_v14, %v918_v16 }
 0x983   :  { %922 = vrot.lane.b32.xlu1 %v919_v17, %s6996_s29  ;;  %v920_v35 = vmul.f32 %v919_v17, %v7313_v29 }
 0x9ed   :  { %v814_v18 = vpop.permute.xlu0 %813 }
 0x9ee   :  { %v816_v20 = vmul.f32 %v814_v18, %v810_v13 }
 0x9f0   :  { %818 = vrot.lane.b32.xlu0 %v816_v20, %s6997_s30 }
 0x9f5   :  { %v923_v21 = vpop.permute.xlu1 %922 }
 0x9f6   :  { %v925_v22 = vmul.f32 %v923_v21, %v919_v17 }
 0x9f8   :  { %927 = vrot.lane.b32.xlu1 %v925_v22, %s6997_s30 }
 0xa62   :  { %v819_v27 = vpop.permute.xlu0 %818 }
 0xa63   :  { %v7364_v28 = vadd.f32 %v819_v27, %v811_v24 }
 0xa65   :  { %6740 = vtanh.f32 %v7364_v28 }
 0xa6a   :  { %v928_v36 = vpop.permute.xlu1 %927 }
 0xa6b   :  { %v7368_v37 = vadd.f32 %v928_v36, %v920_v35 }
 0xa6d   :  { %6742 = vtanh.f32 %v7368_v37 }
 0xa6f   :  { %v6741_v23 = vpop.eup %6740 }
 0xa70   :  { %824 = vrot.lane.b32.xlu0 %v6741_v23, %s6996_s29 }
 0xa77   :  { %v6743_v38 = vpop.eup %6742 }
 0xa78   :  { %933 = vrot.lane.b32.xlu1 %v6743_v38, %s6996_s29 }
 0xae2   :  { %v825_v39 = vpop.permute.xlu0 %824 }
 0xae3   :  { %v827_v25 = vmul.f32 %v825_v39, %v810_v13 }
 0xae5   :  { %v938_v30 = vpack.c.bf16 %v827_v25, %v827_v25 }
 0xae7   :  { %940 = vrot.lane.b32.xlu0 %v938_v30, %s6997_s30 }
 0xaea   :  { %v934_v40 = vpop.permute.xlu1 %933 }
 0xaeb   :  { %v936_v26 = vmul.f32 %v934_v40, %v919_v17 }
 0xaed   :  { %v937_v41 = vpack.c.bf16 %v936_v26, %v936_v26 }
 0xaef   :  { %986 = vrot.lane.b32.xlu1 %v937_v41, %s6997_s30 }
 0xb59   :  { %v941_v29 = vpop.permute.xlu0 %940 }
 0xb5a   :  { %6127 = vmatmul.mubr.msk.bf16.vlgmr.msra.gmra.mrb[28].mxu1 %vm99_vm6, %v941_v29 }
 0xb5b   :  { %6139 = vmatpush3.bf16.msra.mxu1 %v7120_v0  ;;  %6142 = vmatprep.mubr.msk.bf16.mxu1 %vm6994_vm0, %v6993_v1 }
 0xb5c   :  { %6140 = vmatprep.subr.bf16.mxu1 %v6993_v1 }
 0xb5f   :  { %6141 = vmatpush3.bf16.msra.mxu1 %v7136_v3 }
 0xb60   :  { %6152 = vmatprep.subr.bf16.mxu1 %v6993_v1 }
 0xb61   :  { %v987_v42 = vpop.permute.xlu1 %986 }
 0xb62   :  { %6135 = vmatmul.mubr.msk.bf16.vlgmr.msra.gmra.mrb[28].mxu0 %vm99_vm6, %v987_v42  ;;  %6143 = vmatmul.mubr.msk.bf16.vlgmr.msra.gmra.mrb[32].mxu1 %vm99_vm6, %v987_v42 }
 0xb63   :  { %6147 = vmatpush3.bf16.msra.mxu0 %v7128_v2  ;;  %6148 = vmatprep.mubr.msk.bf16.mxu0 %vm6994_vm0, %v6993_v1 }
 0xb64   :  { %6153 = vmatpush3.bf16.msra.mxu1 %v7180_v31  ;;  %6156 = vmatprep.mubr.msk.bf16.mxu1 %vm6994_vm0, %v6993_v1 }
 0xb65   :  { %6154 = vmatprep.subr.bf16.mxu1 %v6993_v1  ;;  %6160 = vmatprep.subr.bf16.mxu0 %v6993_v1 }
 0xb68   :  { %6155 = vmatpush3.bf16.msra.mxu1 %v7191_v33 }
 0xb69   :  { %6168 = vmatprep.subr.bf16.mxu1 %v6993_v1 }
 0xb6a   :  { %6149 = vmatmul.mubr.msk.bf16.vlgmr.msra.gmra.mrb[32].mxu0 %vm149_vm1, %v5537_v43 }
 0xb6b   :  { %6161 = vmatpush3.bf16.msra.mxu0 %v7185_v32  ;;  %6164 = vmatprep.mubr.msk.bf16.mxu0 %vm6994_vm0, %v6993_v1 }
 0xb6c   :  { %6162 = vmatprep.subr.bf16.mxu0 %v6993_v1 }
 0xb6f   :  { %6163 = vmatpush3.bf16.msra.mxu0 %v7197_v34 }
 0xb70   :  { %6176 = vmatprep.subr.bf16.mxu0 %v6993_v1 }
 0xc2d   :  { %v979_v44 = vpop.f32.mrb[28].mxu1 }
 0xc2e   :  { %v6128_v45 = vpop.f32.mrb[29].mxu1 }
 0xc2f   :  { %v982_v47 = vpop.f32.mrb[30].mxu1 }
 0xc30   :  { %v6129_v48 = vpop.f32.mrb[31].mxu1 }
 0xc35   :  { %v1025_v49 = vpop.f32.mrb[28].mxu0  ;;  %v1091_v50 = vpop.f32.mrb[32].mxu1 }
 0xc36   :  { %v1026_v51 = vadd.f32 %v1025_v49, %v979_v44  ;;  %v6136_v52 = vpop.f32.mrb[29].mxu0  ;;  %v6144_v53 = vpop.f32.mrb[33].mxu1 }
 0xc37   :  { %v1028_v54 = vpop.f32.mrb[30].mxu0  ;;  %v1094_v55 = vpop.f32.mrb[34].mxu1 }
 0xc38   :  { %v1031_v56 = vadd.f32 %v7238_v46, %v1026_v51  ;;  %v6137_v57 = vpop.f32.mrb[31].mxu0  ;;  %v6145_v58 = vpop.f32.mrb[35].mxu1 }
 0xc3a   :  { %v1032_v59 = vmul.f32 0.5, %v1031_v56 }
 0xc3c   :  { %v1033_v60 = vsel %vm7164_vm5, %v1031_v56, %v1032_v59 }
 0xc3d   :  { %6744 = vtanh.f32 %v1033_v60  ;;  %v1134_v61 = vpop.f32.mrb[32].mxu0 }
 0xc3e   :  { %v1135_v62 = vadd.f32 %v1134_v61, %v1091_v50  ;;  %v6150_v63 = vpop.f32.mrb[33].mxu0 }
 0xc3f   :  { %v1137_v4 = vpop.f32.mrb[34].mxu0 }
 0xc40   :  { %v1140_v5 = vadd.f32 %v7159_v12, %v1135_v62  ;;  %v6151_v6 = vpop.f32.mrb[35].mxu0 }
 0xc42   :  { %v1141_v8 = vmul.f32 0.5, %v1140_v5 }
 0xc44   :  { %v1142_v9 = vsel %vm7164_vm5, %v1140_v5, %v1141_v8 }
 0xc45   :  { %6746 = vtanh.f32 %v1142_v9 }
 0xc47   :  { %v6745_v10 = vpop.eup %6744 }
 0xc48   :  { %v1035_v11 = vmul.f32 0.5, %v6745_v10 }
 0xc4a   :  { %v1036_v13 = vadd.f32 0.5, %v1035_v11 }
 0xc4c   :  { %v1037_v14 = vsel %vm7164_vm5, %v6745_v10, %v1036_v13 }
 0xc4d   :  { %1040 = vrot.lane.b32.xlu0 %v1037_v14, %s6996_s29  ;;  %v1038_v27 = vmul.f32 %v1037_v14, %v7364_v28 }
 0xc4f   :  { %v6747_v15 = vpop.eup %6746 }
 0xc50   :  { %v1144_v16 = vmul.f32 0.5, %v6747_v15 }
 0xc52   :  { %v1145_v17 = vadd.f32 0.5, %v1144_v16 }
 0xc54   :  { %v1146_v18 = vsel %vm7164_vm5, %v6747_v15, %v1145_v17 }
 0xc55   :  { %1149 = vrot.lane.b32.xlu1 %v1146_v18, %s6996_s29  ;;  %v1147_v23 = vmul.f32 %v1146_v18, %v7368_v37 }
 0xcbf   :  { %v1041_v20 = vpop.permute.xlu0 %1040 }
 0xcc0   :  { %v1043_v21 = vmul.f32 %v1041_v20, %v1037_v14 }
 0xcc2   :  { %1045 = vrot.lane.b32.xlu0 %v1043_v21, %s6997_s30 }
 0xcc7   :  { %v1150_v22 = vpop.permute.xlu1 %1149 }
 0xcc8   :  { %v1152_v24 = vmul.f32 %v1150_v22, %v1146_v18 }
 0xcca   :  { %1154 = vrot.lane.b32.xlu1 %v1152_v24, %s6997_s30 }
 0xd34   :  { %v1046_v35 = vpop.permute.xlu0 %1045 }
 0xd35   :  { %v7419_v36 = vadd.f32 %v1046_v35, %v1038_v27 }
 0xd37   :  { %6748 = vtanh.f32 %v7419_v36 }
 0xd3c   :  { %v1155_v38 = vpop.permute.xlu1 %1154 }
 0xd3d   :  { %v7423_v39 = vadd.f32 %v1155_v38, %v1147_v23 }
 0xd3f   :  { %6750 = vtanh.f32 %v7423_v39 }
 0xd41   :  { %v6749_v25 = vpop.eup %6748 }
 0xd42   :  { %1051 = vrot.lane.b32.xlu0 %v6749_v25, %s6996_s29 }
 0xd49   :  { %v6751_v30 = vpop.eup %6750 }
 0xd4a   :  { %1160 = vrot.lane.b32.xlu1 %v6751_v30, %s6996_s29 }
 0xdb4   :  { %v1052_v40 = vpop.permute.xlu0 %1051 }
 0xdb5   :  { %v1054_v28 = vmul.f32 %v1052_v40, %v1037_v14 }
 0xdb7   :  { %v1165_v26 = vpack.c.bf16 %v1054_v28, %v1054_v28 }
 0xdb9   :  { %1167 = vrot.lane.b32.xlu0 %v1165_v26, %s6997_s30 }
 0xdbc   :  { %v1161_v41 = vpop.permute.xlu1 %1160 }
 0xdbd   :  { %v1163_v29 = vmul.f32 %v1161_v41, %v1146_v18 }
 0xdbf   :  { %v1164_v42 = vpack.c.bf16 %v1163_v29, %v1163_v29  ;;  %v7489_v29 = vld [vmem:[%s8577_s5] sm:$0xff]  }
 0xdc1   :  { %1213 = vrot.lane.b32.xlu1 %v1164_v42, %s6997_s30  ;;  %v7492_v42 = vld [vmem:[#allocation6] sm:$0xff] }
 0xe2b   :  { %v1168_v37 = vpop.permute.xlu0 %1167 }
 0xe2c   :  { %6157 = vmatmul.mubr.msk.bf16.vlgmr.msra.gmra.mrb[36].mxu1 %vm99_vm6, %v1168_v37  ;;  %v7500_v37 = vld [vmem:[%s8577_s5 + $0x8] sm:$0xff]   ;;  %s5583_s5 = sld [smem:[#allocation3 + $0x1]] }
 0xe2d   :  { %6169 = vmatpush3.bf16.msra.mxu1 %v7120_v0  ;;  %6172 = vmatprep.mubr.msk.bf16.mxu1 %vm6994_vm0, %v6993_v1  ;;  %v5542_v0 = vld [vmem:[%s8596_s26 + $0x14] sm:$0xf] }
 0xe2e   :  { %6170 = vmatprep.subr.bf16.mxu1 %v6993_v1 }
 0xe31   :  { %6171 = vmatpush3.bf16.msra.mxu1 %v7136_v3 }
 0xe32   :  { %6182 = vmatprep.subr.bf16.mxu1 %v6993_v1  ;;  %p5584_p5 = scmp.le.s32.totalorder %s5583_s5, 0 }
 0xe33   :  { %v1214_v43 = vpop.permute.xlu1 %1213  ;;  %s8600_s21 = sld [smem:[#allocation11_spill]] (!%p5584_p5) }
 0xe34   :  { %6165 = vmatmul.mubr.msk.bf16.vlgmr.msra.gmra.mrb[36].mxu0 %vm99_vm6, %v1214_v43  ;;  %6173 = vmatmul.mubr.msk.bf16.vlgmr.msra.gmra.mrb[40].mxu1 %vm99_vm6, %v1214_v43 }
 0xe35   :  { %6177 = vmatpush3.bf16.msra.mxu0 %v7128_v2  ;;  %6178 = vmatprep.mubr.msk.bf16.mxu0 %vm6994_vm0, %v6993_v1 }
 0xe36   :  { %6183 = vmatpush3.bf16.msra.mxu1 %v7180_v31  ;;  %6186 = vmatprep.mubr.msk.bf16.mxu1 %vm6994_vm0, %v6993_v1 }
 0xe37   :  { %6184 = vmatprep.subr.bf16.mxu1 %v6993_v1  ;;  %6190 = vmatprep.subr.bf16.mxu0 %v6993_v1 }
 0xe3a   :  { %6185 = vmatpush3.bf16.msra.mxu1 %v7191_v33 }
 0xe3b   :  { %6198 = vmatprep.subr.bf16.mxu1 %v6993_v1 }
 0xe3c   :  { %6179 = vmatmul.mubr.msk.bf16.vlgmr.msra.gmra.mrb[40].mxu0 %vm149_vm1, %v5542_v0  ;;  %v7509_v0 = vld [vmem:[%s8575_s3] sm:$0xff]  }
 0xe3d   :  { %6191 = vmatpush3.bf16.msra.mxu0 %v7185_v32  ;;  %6194 = vmatprep.mubr.msk.bf16.mxu0 %vm6994_vm0, %v6993_v1 }
 0xe3e   :  { %6192 = vmatprep.subr.bf16.mxu0 %v6993_v1 }
 0xe41   :  { %6193 = vmatpush3.bf16.msra.mxu0 %v7197_v34 }
 0xe42   :  { %6206 = vmatprep.subr.bf16.mxu0 %v6993_v1 }
 0xeff   :  { %v1206_v2 = vpop.f32.mrb[36].mxu1 }
 0xf00   :  { %v6158_v3 = vpop.f32.mrb[37].mxu1 }
 0xf01   :  { %v1209_v44 = vpop.f32.mrb[38].mxu1 }
 0xf02   :  { %v6159_v45 = vpop.f32.mrb[39].mxu1 }
 0xf07   :  { %v1252_v47 = vpop.f32.mrb[36].mxu0  ;;  %v1318_v48 = vpop.f32.mrb[40].mxu1 }
 0xf08   :  { %v1253_v49 = vadd.f32 %v1252_v47, %v1206_v2  ;;  %v6166_v50 = vpop.f32.mrb[37].mxu0  ;;  %v6174_v51 = vpop.f32.mrb[41].mxu1  ;;  %v5547_v2 = vld [vmem:[%s8596_s26 + $0x18] sm:$0xf] }
 0xf09   :  { %v1255_v52 = vpop.f32.mrb[38].mxu0  ;;  %v1321_v53 = vpop.f32.mrb[42].mxu1 }
 0xf0a   :  { %v1258_v54 = vadd.f32 %v7238_v46, %v1253_v49  ;;  %v6167_v55 = vpop.f32.mrb[39].mxu0  ;;  %v6175_v56 = vpop.f32.mrb[43].mxu1 }
 0xf0c   :  { %v1259_v57 = vmul.f32 0.5, %v1258_v54 }
 0xf0e   :  { %v1260_v58 = vsel %vm7164_vm5, %v1258_v54, %v1259_v57 }
 0xf0f   :  { %6752 = vtanh.f32 %v1260_v58  ;;  %v1361_v59 = vpop.f32.mrb[40].mxu0 }
 0xf10   :  { %v1362_v60 = vadd.f32 %v1361_v59, %v1318_v48  ;;  %v6180_v61 = vpop.f32.mrb[41].mxu0 }
 0xf11   :  { %v1364_v62 = vpop.f32.mrb[42].mxu0 }
 0xf12   :  { %v1367_v63 = vadd.f32 %v7159_v12, %v1362_v60  ;;  %v6181_v4 = vpop.f32.mrb[43].mxu0  ;;  %v7537_v60 = vld [vmem:[%s8579_s7] ss:$0 sm:$0xff] }
 0xf14   :  { %v1368_v5 = vmul.f32 0.5, %v1367_v63 }
 0xf16   :  { %v1369_v6 = vsel %vm7164_vm5, %v1367_v63, %v1368_v5 }
 0xf17   :  { %6754 = vtanh.f32 %v1369_v6 }
 0xf19   :  { %v6753_v8 = vpop.eup %6752 }
 0xf1a   :  { %v1262_v9 = vmul.f32 0.5, %v6753_v8 }
 0xf1c   :  { %v1263_v10 = vadd.f32 0.5, %v1262_v9 }
 0xf1e   :  { %v1264_v11 = vsel %vm7164_vm5, %v6753_v8, %v1263_v10 }
 0xf1f   :  { %1267 = vrot.lane.b32.xlu0 %v1264_v11, %s6996_s29  ;;  %v1265_v21 = vmul.f32 %v1264_v11, %v7419_v36 }
 0xf21   :  { %v6755_v13 = vpop.eup %6754 }
 0xf22   :  { %v1371_v14 = vmul.f32 0.5, %v6755_v13 }
 0xf24   :  { %v1372_v15 = vadd.f32 0.5, %v1371_v14 }
 0xf26   :  { %v1373_v12 = vsel %vm7164_vm5, %v6755_v13, %v1372_v15 }
 0xf27   :  { %1376 = vrot.lane.b32.xlu1 %v1373_v12, %s6996_s29  ;;  %v1374_v27 = vmul.f32 %v1373_v12, %v7423_v39 }
 0xf91   :  { %v1268_v16 = vpop.permute.xlu0 %1267 }
 0xf92   :  { %v1270_v17 = vmul.f32 %v1268_v16, %v1264_v11 }
 0xf94   :  { %1272 = vrot.lane.b32.xlu0 %v1270_v17, %s6997_s30 }
 0xf99   :  { %v1377_v18 = vpop.permute.xlu1 %1376 }
 0xf9a   :  { %v1379_v20 = vmul.f32 %v1377_v18, %v1373_v12 }
 0xf9c   :  { %1381 = vrot.lane.b32.xlu1 %v1379_v20, %s6997_s30 }
0x1006   :  { %v1273_v22 = vpop.permute.xlu0 %1272 }
0x1007   :  { %v7474_v24 = vadd.f32 %v1273_v22, %v1265_v21 }
0x1009   :  { %6756 = vtanh.f32 %v7474_v24 }
0x100e   :  { %v1382_v35 = vpop.permute.xlu1 %1381 }
0x100f   :  { %v7478_v23 = vadd.f32 %v1382_v35, %v1374_v27 }
0x1011   :  { %6758 = vtanh.f32 %v7478_v23 }
0x1013   :  { %v6757_v38 = vpop.eup %6756 }
0x1014   :  { %1278 = vrot.lane.b32.xlu0 %v6757_v38, %s6996_s29 }
0x101b   :  { %v6759_v25 = vpop.eup %6758 }
0x101c   :  { %1387 = vrot.lane.b32.xlu1 %v6759_v25, %s6996_s29 }
0x1086   :  { %v1279_v30 = vpop.permute.xlu0 %1278 }
0x1087   :  { %v1281_v36 = vmul.f32 %v1279_v30, %v1264_v11 }
0x1089   :  { %v1392_v40 = vpack.c.bf16 %v1281_v36, %v1281_v36 }
0x108b   :  { %1394 = vrot.lane.b32.xlu0 %v1392_v40, %s6997_s30 }
0x108e   :  { %v1388_v28 = vpop.permute.xlu1 %1387 }
0x108f   :  { %v1390_v26 = vmul.f32 %v1388_v28, %v1373_v12 }
0x1091   :  { %v1391_v41 = vpack.c.bf16 %v1390_v26, %v1390_v26 }
0x1093   :  { %1440 = vrot.lane.b32.xlu1 %v1391_v41, %s6997_s30  ;;  %v6793_v41 = vld [vmem:[%s8578_s6] sm:$0xff]  }
0x10fd   :  { %v1395_v39 = vpop.permute.xlu0 %1394 }
0x10fe   :  { %6187 = vmatmul.mubr.msk.bf16.vlgmr.msra.gmra.mrb[44].mxu1 %vm99_vm6, %v1395_v39  ;;  %v5552_v39 = vld [vmem:[%s8596_s26 + $0x1c] sm:$0xf] }
0x10ff   :  { %6199 = vmatpush3.bf16.msra.mxu1 %v7489_v29  ;;  %6202 = vmatprep.mubr.msk.bf16.mxu1 %vm6994_vm0, %v7492_v42 }
0x1100   :  { %6200 = vmatprep.subr.bf16.mxu1 %v7492_v42 }
0x1103   :  { %6201 = vmatpush3.bf16.msra.mxu1 %v7500_v37 }
0x1104   :  { %6212 = vmatprep.subr.bf16.mxu1 %v7492_v42 }
0x1105   :  { %v1441_v43 = vpop.permute.xlu1 %1440 }
0x1106   :  { %6195 = vmatmul.mubr.msk.bf16.vlgmr.msra.gmra.mrb[44].mxu0 %vm99_vm6, %v1441_v43  ;;  %6203 = vmatmul.mubr.msk.bf16.vlgmr.msra.gmra.mrb[48].mxu1 %vm99_vm6, %v1441_v43  ;;  %v6796_v43 = vld [vmem:[%s8576_s4 + $0x8] sm:$0xff]  }
0x1107   :  { %6207 = vmatpush3.bf16.msra.mxu0 %v7509_v0  ;;  %6208 = vmatprep.mubr.msk.bf16.mxu0 %vm6994_vm0, %v7492_v42 }
0x1108   :  { %6213 = vmatpush3.bf16.msra.mxu1 %v7180_v31  ;;  %6216 = vmatprep.mubr.msk.bf16.mxu1 %vm6994_vm0, %v7492_v42 }
0x1109   :  { %6214 = vmatprep.subr.bf16.mxu1 %v7492_v42  ;;  %6220 = vmatprep.subr.bf16.mxu0 %v7492_v42 }
0x110c   :  { %6215 = vmatpush3.bf16.msra.mxu1 %v7191_v33 }
0x110d   :  { %6228 = vmatprep.subr.bf16.mxu1 %v7492_v42 }
0x110e   :  { %6209 = vmatmul.mubr.msk.bf16.vlgmr.msra.gmra.mrb[48].mxu0 %vm149_vm1, %v5547_v2 }
0x110f   :  { %6221 = vmatpush3.bf16.msra.mxu0 %v7185_v32  ;;  %6224 = vmatprep.mubr.msk.bf16.mxu0 %vm6994_vm0, %v7492_v42 }
0x1110   :  { %6222 = vmatprep.subr.bf16.mxu0 %v7492_v42 }
0x1113   :  { %6223 = vmatpush3.bf16.msra.mxu0 %v7197_v34 }
0x1114   :  { %6236 = vmatprep.subr.bf16.mxu0 %v7492_v42 }
0x11d1   :  { %v1433_v31 = vpop.f32.mrb[44].mxu1 }
0x11d2   :  { %v6188_v3 = vpop.f32.mrb[45].mxu1 }
0x11d3   :  { %v1436_v44 = vpop.f32.mrb[46].mxu1 }
0x11d4   :  { %v6189_v45 = vpop.f32.mrb[47].mxu1 }
0x11d9   :  { %v1479_v33 = vpop.f32.mrb[44].mxu0  ;;  %v1545_v47 = vpop.f32.mrb[48].mxu1 }
0x11da   :  { %v1480_v48 = vadd.f32 %v1479_v33, %v1433_v31  ;;  %v6196_v49 = vpop.f32.mrb[45].mxu0  ;;  %v6204_v50 = vpop.f32.mrb[49].mxu1 }
0x11db   :  { %v1482_v51 = vpop.f32.mrb[46].mxu0  ;;  %v1548_v32 = vpop.f32.mrb[50].mxu1 }
0x11dc   :  { %v1485_v52 = vadd.f32 %v7238_v46, %v1480_v48  ;;  %v6197_v53 = vpop.f32.mrb[47].mxu0  ;;  %v6205_v54 = vpop.f32.mrb[51].mxu1  ;;  %v7602_v51 = vld [vmem:[%s8580_s8] ss:$0 sm:$0xff] }
0x11de   :  { %v1486_v55 = vmul.f32 0.5, %v1485_v52 }
0x11e0   :  { %v1487_v34 = vsel %vm7164_vm5, %v1485_v52, %v1486_v55 }
0x11e1   :  { %6760 = vtanh.f32 %v1487_v34  ;;  %v1588_v56 = vpop.f32.mrb[48].mxu0 }
0x11e2   :  { %v1589_v57 = vadd.f32 %v1588_v56, %v1545_v47  ;;  %v6210_v58 = vpop.f32.mrb[49].mxu0 }
0x11e3   :  { %v1591_v59 = vpop.f32.mrb[50].mxu0 }
0x11e4   :  { %v1594_v61 = vadd.f32 %v7537_v60, %v1589_v57  ;;  %v6211_v62 = vpop.f32.mrb[51].mxu0 }
0x11e6   :  { %v1595_v46 = vmul.f32 0.5, %v1594_v61 }
0x11e8   :  { %v1596_v63 = vsel %vm7164_vm5, %v1594_v61, %v1595_v46 }
0x11e9   :  { %6762 = vtanh.f32 %v1596_v63 }
0x11eb   :  { %v6761_v4 = vpop.eup %6760 }
0x11ec   :  { %v1489_v5 = vmul.f32 0.5, %v6761_v4 }
0x11ee   :  { %v1490_v6 = vadd.f32 0.5, %v1489_v5 }
0x11f0   :  { %v1491_v8 = vsel %vm7164_vm5, %v6761_v4, %v1490_v6 }
0x11f1   :  { %1494 = vrot.lane.b32.xlu0 %v1491_v8, %s6996_s29  ;;  %v1492_v17 = vmul.f32 %v1491_v8, %v7474_v24 }
0x11f3   :  { %v6763_v9 = vpop.eup %6762 }
0x11f4   :  { %v1598_v10 = vmul.f32 0.5, %v6763_v9 }
0x11f6   :  { %v1599_v11 = vadd.f32 0.5, %v1598_v10 }
0x11f8   :  { %v1600_v13 = vsel %vm7164_vm5, %v6763_v9, %v1599_v11 }
0x11f9   :  { %1603 = vrot.lane.b32.xlu1 %v1600_v13, %s6996_s29  ;;  %v1601_v21 = vmul.f32 %v1600_v13, %v7478_v23 }
0x1263   :  { %v1495_v14 = vpop.permute.xlu0 %1494 }
0x1264   :  { %v1497_v15 = vmul.f32 %v1495_v14, %v1491_v8 }
0x1266   :  { %1499 = vrot.lane.b32.xlu0 %v1497_v15, %s6997_s30 }
0x126b   :  { %v1604_v12 = vpop.permute.xlu1 %1603 }
0x126c   :  { %v1606_v16 = vmul.f32 %v1604_v12, %v1600_v13  ;;  %v1964_v12 = vld [vmem:[%s8599_s19] sm:$0xff] }
0x126e   :  { %1608 = vrot.lane.b32.xlu1 %v1606_v16, %s6997_s30 }
0x12d8   :  { %v1500_v18 = vpop.permute.xlu0 %1499 }
0x12d9   :  { %v7551_v20 = vadd.f32 %v1500_v18, %v1492_v17 }
0x12db   :  { %6764 = vtanh.f32 %v7551_v20 }
0x12e0   :  { %v1609_v22 = vpop.permute.xlu1 %1608 }
0x12e1   :  { %v7555_v27 = vadd.f32 %v1609_v22, %v1601_v21 }
0x12e3   :  { %6766 = vtanh.f32 %v7555_v27 }
0x12e5   :  { %v6765_v35 = vpop.eup %6764 }
0x12e6   :  { %1505 = vrot.lane.b32.xlu0 %v6765_v35, %s6996_s29 }
0x12ed   :  { %v6767_v38 = vpop.eup %6766 }
0x12ee   :  { %1614 = vrot.lane.b32.xlu1 %v6767_v38, %s6996_s29 }
0x1358   :  { %v1506_v25 = vpop.permute.xlu0 %1505 }
0x1359   :  { %v1508_v24 = vmul.f32 %v1506_v25, %v1491_v8  ;;  %v6699_v25 = vld [vmem:[%s8587_s15] sm:$0xff]  }
0x135b   :  { %v1619_v30 = vpack.c.bf16 %v1508_v24, %v1508_v24 }
0x135d   :  { %1621 = vrot.lane.b32.xlu0 %v1619_v30, %s6997_s30  ;;  %v6700_v30 = vld [vmem:[%s8587_s15 + $0x8] sm:$0xff]  }
0x1360   :  { %v1615_v36 = vpop.permute.xlu1 %1614 }
0x1361   :  { %v1617_v40 = vmul.f32 %v1615_v36, %v1600_v13 }
0x1363   :  { %v1618_v28 = vpack.c.bf16 %v1617_v40, %v1617_v40  ;;  %v6701_v40 = vld [vmem:[%s8587_s15 + $0x10] sm:$0xff]  }
0x1365   :  { %1667 = vrot.lane.b32.xlu1 %v1618_v28, %s6997_s30  ;;  %v6702_v28 = vld [vmem:[%s8587_s15 + $0x18] sm:$0xff]  }
0x13cf   :  { %v1622_v23 = vpop.permute.xlu0 %1621 }
0x13d0   :  { %6217 = vmatmul.mubr.msk.bf16.vlgmr.msra.gmra.mrb[52].mxu1 %vm99_vm6, %v1622_v23  ;;  %v6703_v23 = vld [vmem:[%s8587_s15 + $0x20] sm:$0xff]  }
0x13d1   :  { %6229 = vmatpush3.bf16.msra.mxu1 %v7489_v29  ;;  %6232 = vmatprep.mubr.msk.bf16.mxu1 %vm6994_vm0, %v7492_v42  ;;  %v6794_v29 = vld [vmem:[%s8578_s6 + $0x8] sm:$0xff]  }
0x13d2   :  { %6230 = vmatprep.subr.bf16.mxu1 %v7492_v42 }
0x13d5   :  { %6231 = vmatpush3.bf16.msra.mxu1 %v7500_v37  ;;  %v6795_v37 = vld [vmem:[%s8576_s4] sm:$0xff]  }
0x13d6   :  { %6242 = vmatprep.subr.bf16.mxu1 %v7492_v42 }
0x13d7   :  { %v1668_v26 = vpop.permute.xlu1 %1667 }
0x13d8   :  { %6225 = vmatmul.mubr.msk.bf16.vlgmr.msra.gmra.mrb[52].mxu0 %vm99_vm6, %v1668_v26  ;;  %6233 = vmatmul.mubr.msk.bf16.vlgmr.msra.gmra.mrb[56].mxu1 %vm99_vm6, %v1668_v26  ;;  %v6704_v26 = vld [vmem:[%s8587_s15 + $0x28] sm:$0xff]  }
0x13d9   :  { %6237 = vmatpush3.bf16.msra.mxu0 %v7509_v0  ;;  %6238 = vmatprep.mubr.msk.bf16.mxu0 %vm6994_vm0, %v7492_v42 }
0x13da   :  { %6243 = vmatpush3.bf16.msra.mxu1 %v6793_v41  ;;  %6246 = vmatprep.mubr.msk.bf16.mxu1 %vm6994_vm0, %v7492_v42  ;;  %v6705_v41 = vld [vmem:[%s8587_s15 + $0x30] sm:$0xff]  }
0x13db   :  { %6244 = vmatprep.subr.bf16.mxu1 %v7492_v42  ;;  %6250 = vmatprep.subr.bf16.mxu0 %v7492_v42 }
0x13de   :  { %6245 = vmatpush3.bf16.msra.mxu1 %v6794_v29 }
0x13df   :  { %6258 = vmatprep.subr.bf16.mxu1 %v7492_v42 }
0x13e0   :  { %6239 = vmatmul.mubr.msk.bf16.vlgmr.msra.gmra.mrb[56].mxu0 %vm149_vm1, %v5552_v39  ;;  %v6706_v39 = vld [vmem:[%s8587_s15 + $0x38] sm:$0xff]  }
0x13e1   :  { %6251 = vmatpush3.bf16.msra.mxu0 %v6795_v37  ;;  %6254 = vmatprep.mubr.msk.bf16.mxu0 %vm6994_vm0, %v7492_v42 }
0x13e2   :  { %6252 = vmatprep.subr.bf16.mxu0 %v7492_v42 }
0x13e5   :  { %6253 = vmatpush3.bf16.msra.mxu0 %v6796_v43 }
0x13e6   :  { %6278 = vmatprep.subr.bf16.mxu0 %v7492_v42 }
0x14a3   :  { %v1660_v0 = vpop.f32.mrb[52].mxu1 }
0x14a4   :  { %v6218_v2 = vpop.f32.mrb[53].mxu1 }
0x14a5   :  { %v1663_v31 = vpop.f32.mrb[54].mxu1 }
0x14a6   :  { %v6219_v3 = vpop.f32.mrb[55].mxu1 }
0x14ab   :  { %v1706_v44 = vpop.f32.mrb[52].mxu0  ;;  %v1772_v45 = vpop.f32.mrb[56].mxu1 }
0x14ac   :  { %v1707_v33 = vadd.f32 %v1706_v44, %v1660_v0  ;;  %v6226_v47 = vpop.f32.mrb[53].mxu0  ;;  %v6234_v48 = vpop.f32.mrb[57].mxu1 }
0x14ad   :  { %v1709_v49 = vpop.f32.mrb[54].mxu0  ;;  %v1775_v50 = vpop.f32.mrb[58].mxu1 }
0x14ae   :  { %v1712_v32 = vadd.f32 %v7602_v51, %v1707_v33  ;;  %v6227_v52 = vpop.f32.mrb[55].mxu0  ;;  %v6235_v53 = vpop.f32.mrb[59].mxu1 }
0x14af   :  { %v6707_v52 = vld [vmem:[%s8583_s11] sm:$0xff]  }
0x14b0   :  { %v1713_v54 = vmul.f32 0.5, %v1712_v32 }
0x14b2   :  { %v1714_v55 = vsel %vm7164_vm5, %v1712_v32, %v1713_v54  ;;  %v6708_v54 = vld [vmem:[%s8583_s11 + $0x8] sm:$0xff]  }
0x14b3   :  { %6768 = vtanh.f32 %v1714_v55  ;;  %v1815_v34 = vpop.f32.mrb[56].mxu0  ;;  %v6709_v55 = vld [vmem:[%s8581_s9] sm:$0xff]  }
0x14b4   :  { %v1816_v56 = vadd.f32 %v1815_v34, %v1772_v45  ;;  %v6240_v57 = vpop.f32.mrb[57].mxu0 }
0x14b5   :  { %v1818_v58 = vpop.f32.mrb[58].mxu0 }
0x14b6   :  { %v6241_v59 = vpop.f32.mrb[59].mxu0  ;;  %v1821_v11 = vadd.f32 %v7537_v60, %v1816_v56 }
0x14b8   :  { %v1822_v13 = vmul.f32 0.5, %v1821_v11 }
0x14ba   :  { %v1823_v14 = vsel %vm7164_vm5, %v1821_v11, %v1822_v13  ;;  %v5571_v11 = vld [vmem:[%s8585_s13] ss:$0 sm:$0xff] }
0x14bd   :  { %v6769_v61 = vpop.eup %6768 }
0x14be   :  { %v1716_v62 = vmul.f32 0.5, %v6769_v61 }
0x14c0   :  { %v1717_v46 = vadd.f32 0.5, %v1716_v62 }
0x14c2   :  { %v1718_v63 = vsel %vm7164_vm5, %v6769_v61, %v1717_v46 }
0x14c3   :  { %1721 = vrot.lane.b32.xlu0 %v1718_v63, %s6996_s29  ;;  %v1719_v6 = vmul.f32 %v1718_v63, %v7551_v20 }
0x1535   :  { %v1722_v4 = vpop.permute.xlu0 %1721 }
0x1536   :  { %v1724_v5 = vmul.f32 %v1722_v4, %v1718_v63 }
0x1538   :  { %1726 = vrot.lane.b32.xlu1 %v1724_v5, %s6997_s30 }
0x15aa   :  { %v1727_v8 = vpop.permute.xlu1 %1726 }
0x15ab   :  { %v7612_v9 = vadd.f32 %v1727_v8, %v1719_v6 }
0x15ad   :  { %6770 = vtanh.f32 %v7612_v9 }
0x15ae   :  { %6772 = vtanh.f32 %v1823_v14 }
0x15b7   :  { %v6771_v10 = vpop.eup %6770 }
0x15b8   :  { %1732 = vrot.lane.b32.xlu0 %v6771_v10, %s6996_s29  ;;  %v6773_v15 = vpop.eup %6772 }
0x15b9   :  { %v1825_v17 = vmul.f32 0.5, %v6773_v15 }
0x15bb   :  { %v1826_v21 = vadd.f32 0.5, %v1825_v17 }
0x15bc   :  { %1966 = vperm.xlu0 %6691, %v1964_v12  }
0x15bd   :  { %v1827_v60 = vsel %vm7164_vm5, %v6773_v15, %v1826_v21 }
0x15be   :  { %v1828_v37 = vmul.f32 %v1827_v60, %v7555_v27 }
0x162a   :  { %v1733_v16 = vpop.permute.xlu0 %1732 }
0x162b   :  { %v1735_v18 = vmul.f32 %v1733_v16, %v1718_v63 }
0x162d   :  { %v1846_v20 = vpack.c.bf16 %v1735_v18, %v1735_v18 }
0x162f   :  { %1848 = vrot.lane.b32.xlu1 %v1846_v20, %s6997_s30 }
0x1633   :  { %1830 = vrot.lane.b32.xlu1 %v1827_v60, %s6996_s29 }
0x163b   :  { %v1967_v24 = vpop.permute.xlu0 %1966 }
0x163c   :  { %vm1968_vm7 = vcmp.eq.s32.totalorder %v7153_v7, %v1967_v24 }
0x163d   :  { %v5557_v36 = vsel %vm1968_vm7, 1.0, %v7492_v42 }
0x163e   :  { %1971 = vst [vmem:[#allocation2] sm:$0xff] %v5557_v36  ;;  %v1973_v29 = vpack.c.bf16 %v5557_v36, %v5557_v36 }
0x16a1   :  { %v1849_v22 = vpop.permute.xlu1 %1848 }
0x16a2   :  { %6247 = vmatmul.mubr.msk.bf16.vlgmr.msra.gmra.mrb[60].mxu1 %vm99_vm6, %v1849_v22 }
0x16a3   :  { %6274 = vmatprep.mubr.msk.bf16.mxu1 %vm6994_vm0, %v7492_v42  ;;  %6259 = vmatpush3.bf16.msra.mxu1 %v6699_v25 }
0x16a4   :  { %6260 = vmatprep.subr.bf16.mxu1 %v7492_v42 }
0x16a5   :  { %v1831_v35 = vpop.permute.xlu1 %1830 }
0x16a6   :  { %v1833_v38 = vmul.f32 %v1831_v35, %v1827_v60 }
0x16a7   :  { %6261 = vmatpush3.bf16.msra.mxu1 %v6700_v30 }
0x16a8   :  { %1835 = vrot.lane.b32.xlu1 %v1833_v38, %s6997_s30  ;;  %6262 = vmatprep.subr.bf16.mxu1 %v7492_v42 }
0x16ab   :  { %6263 = vmatpush3.bf16.msra.mxu1 %v6701_v40 }
0x16ac   :  { %6264 = vmatprep.subr.bf16.mxu1 %v7492_v42 }
0x16af   :  { %6265 = vmatpush3.bf16.msra.mxu1 %v6702_v28 }
0x16b0   :  { %6266 = vmatprep.subr.bf16.mxu1 %v7492_v42 }
0x16b3   :  { %6267 = vmatpush3.bf16.msra.mxu1 %v6703_v23 }
0x16b4   :  { %6268 = vmatprep.subr.bf16.mxu1 %v7492_v42 }
0x16b7   :  { %6269 = vmatpush3.bf16.msra.mxu1 %v6704_v26 }
0x16b8   :  { %6270 = vmatprep.subr.bf16.mxu1 %v7492_v42 }
0x16bb   :  { %6271 = vmatpush3.bf16.msra.mxu1 %v6705_v41 }
0x16bc   :  { %6272 = vmatprep.subr.bf16.mxu1 %v7492_v42 }
0x16bf   :  { %6273 = vmatpush3.bf16.msra.mxu1 %v6706_v39 }
0x16c0   :  { %6308 = vmatprep.subr.bf16.mxu1 %v7492_v42 }
0x16c2   :  { %6275 = vmatmul.mubr.bf16.vlgmr.msra.gmra.mrb[64].mxu1 %v1973_v29 }
0x16c3   :  { %6312 = vmatprep.mubr.msk.bf16.mxu1 %vm6994_vm0, %v7492_v42 }
0x171a   :  { %v1836_v43 = vpop.permute.xlu1 %1835 }
0x171b   :  { %v7667_v0 = vadd.f32 %v1836_v43, %v1828_v37  ;;  %v6710_v43 = vld [vmem:[%s8584_s12] sm:$0xff]  }
0x171d   :  { %6774 = vtanh.f32 %v7667_v0 }
0x1727   :  { %v6775_v2 = vpop.eup %6774 }
0x1728   :  { %1841 = vrot.lane.b32.xlu0 %v6775_v2, %s6996_s29 }
0x1775   :  { %v1887_v31 = vpop.f32.mrb[60].mxu1 }
0x1776   :  { %v6248_v3 = vpop.f32.mrb[61].mxu1 }
0x1777   :  { %v1890_v44 = vpop.f32.mrb[62].mxu1 }
0x1778   :  { %v6249_v45 = vpop.f32.mrb[63].mxu1 }
0x1795   :  { %v2072_v48 = vpop.f32.mrb[64].mxu1 }
0x1796   :  { %v6276_v50 = vpop.f32.mrb[65].mxu1  ;;  %v2078_v34 = vpack.c.bf16 %v2072_v48, %v2072_v48 }
0x1797   :  { %v2075_v32 = vpop.f32.mrb[66].mxu1 }
0x1798   :  { %v6277_v27 = vpop.f32.mrb[67].mxu1 }
0x179a   :  { %v1842_v33 = vpop.permute.xlu0 %1841 }
0x179b   :  { %v1844_v47 = vmul.f32 %v1842_v33, %v1827_v60 }
0x179d   :  { %v1845_v49 = vpack.c.bf16 %v1844_v47, %v1844_v47  ;;  %v6712_v47 = vld [vmem:[%s8582_s10] sm:$0xff]  }
0x179f   :  { %1894 = vrot.lane.b32.xlu1 %v1845_v49, %s6997_s30  ;;  %v6713_v49 = vld [vmem:[%s8582_s10 + $0x8] sm:$0xff]  }
0x1811   :  { %v1895_v53 = vpop.permute.xlu1 %1894 }
0x1812   :  { %6255 = vmatmul.mubr.msk.bf16.vlgmr.msra.gmra.mrb[60].mxu0 %vm99_vm6, %v1895_v53 }
0x1813   :  { %6279 = vmatpush3.bf16.msra.mxu0 %v6707_v52  ;;  %6282 = vmatprep.mubr.msk.bf16.mxu0 %vm6994_vm0, %v7492_v42 }
0x1814   :  { %6280 = vmatprep.subr.bf16.mxu0 %v7492_v42 }
0x1817   :  { %6281 = vmatpush3.bf16.msra.mxu0 %v6708_v54 }
0x1818   :  { %6286 = vmatprep.subr.bf16.mxu0 %v7492_v42 }
0x181a   :  { %6283 = vmatmul.mubr.msk.bf16.vlgmr.msra.gmra.mrb[64].mxu0 %vm99_vm6, %v1895_v53 }
0x181b   :  { %6287 = vmatpush3.bf16.msra.mxu0 %v6709_v55  ;;  %6288 = vmatprep.mubr.msk.bf16.mxu0 %vm6994_vm0, %v7492_v42  ;;  %v5578_v55 = vld [vmem:[%s8586_s14] ss:$0 sm:$0xff] }
0x181c   :  { %6292 = vmatprep.subr.bf16.mxu0 %v7492_v42 }
0x1822   :  { %6289 = vmatmul.mubr.msk.bf16.vlgmr.msra.gmra.mrb[68].mxu0 %vm149_vm1, %v2078_v34 }
0x1823   :  { %6296 = vmatprep.mubr.msk.bf16.mxu0 %vm6994_vm0, %v7492_v42  ;;  %6293 = vmatpush3.bf16.msra.mxu0 %v6710_v43 }
0x1824   :  { %6294 = vmatprep.subr.bf16.mxu0 %v7492_v42 }
0x18e5   :  { %v1933_v56 = vpop.f32.mrb[60].mxu0 }
0x18e6   :  { %v1934_v57 = vadd.f32 %v1933_v56, %v1887_v31  ;;  %v6256_v58 = vpop.f32.mrb[61].mxu0 }
0x18e7   :  { %v1936_v59 = vpop.f32.mrb[62].mxu0 }
0x18e8   :  { %v1939_v61 = vadd.f32 %v7602_v51, %v1934_v57  ;;  %v6257_v62 = vpop.f32.mrb[63].mxu0 }
0x18ea   :  { %v1940_v46 = vmul.f32 0.5, %v1939_v61 }
0x18ec   :  { %v1941_v63 = vsel %vm7164_vm5, %v1939_v61, %v1940_v46 }
0x18ed   :  { %6776 = vtanh.f32 %v1941_v63  ;;  %v2131_v4 = vpop.f32.mrb[64].mxu0 }
0x18ee   :  { %v6284_v5 = vpop.f32.mrb[65].mxu0 }
0x18ef   :  { %v2134_v6 = vpop.f32.mrb[66].mxu0 }
0x18f0   :  { %v6285_v8 = vpop.f32.mrb[67].mxu0 }
0x18f5   :  { %v2180_v10 = vpop.f32.mrb[68].mxu0 }
0x18f6   :  { %v2181_v13 = vadd.f32 %v2180_v10, %v2131_v4  ;;  %v6290_v14 = vpop.f32.mrb[69].mxu0 }
0x18f7   :  { %v6777_v15 = vpop.eup %6776  ;;  %v2183_v12 = vpop.f32.mrb[70].mxu0  ;;  %v6714_v14 = vld [vmem:[%s8588_s16] sm:$0xff]  }
0x18f8   :  { %v2193_v51 = vadd.f32 %v5571_v11, %v2181_v13  ;;  %v6291_v16 = vpop.f32.mrb[71].mxu0  ;;  %v1943_v17 = vmul.f32 0.5, %v6777_v15  ;;  %6309 = vmatpush3.bf16.msra.mxu1 %v6714_v14 }
0x18f9   :  { %6310 = vmatprep.subr.bf16.mxu1 %v7492_v42 }
0x18fa   :  { %v2194_v18 = vmul.f32 0.5, %v2193_v51  ;;  %v1944_v20 = vadd.f32 0.5, %v1943_v17 }
0x18fc   :  { %v2195_v21 = vsel %vm7164_vm5, %v2193_v51, %v2194_v18  ;;  %v1945_v60 = vsel %vm7164_vm5, %v6777_v15, %v1944_v20  ;;  %v6715_v15 = vld [vmem:[%s8588_s16 + $0x8] sm:$0xff]   ;;  %v5579_v20 = vld [vmem:[%s8589_s17] ss:$0 sm:$0xff] }
0x18fd   :  { %6778 = vtanh.f32 %v2195_v21  ;;  %1948 = vrot.lane.b32.xlu0 %v1945_v60, %s6996_s29  ;;  %v1946_v28 = vmul.f32 %v1945_v60, %v7612_v9  ;;  %v6711_v9 = vld [vmem:[%s8584_s12 + $0x8] sm:$0xff]   ;;  %6311 = vmatpush3.bf16.msra.mxu1 %v6715_v15 }
0x18fe   :  { %6295 = vmatpush3.bf16.msra.mxu0 %v6711_v9 }
0x18ff   :  { %6300 = vmatprep.subr.bf16.mxu0 %v7492_v42 }
0x1907   :  { %v6779_v22 = vpop.eup %6778 }
0x1908   :  { %v2197_v35 = vmul.f32 0.5, %v6779_v22 }
0x190a   :  { %v2198_v38 = vadd.f32 0.5, %v2197_v35 }
0x190c   :  { %v2199_v25 = vsel %vm7164_vm5, %v6779_v22, %v2198_v38  ;;  %v5585_v38 = vld [vmem:[%s8600_s21 + $0x8] sm:$0xff] (!%p5584_p5) }
0x190d   :  { %2202 = vrot.lane.b32.xlu1 %v2199_v25, %s6996_s29  ;;  %v2200_v39 = vmul.f32 %v2199_v25, %v7667_v0 }
0x196f   :  { %v1949_v24 = vpop.permute.xlu0 %1948 }
0x1970   :  { %v1951_v30 = vmul.f32 %v1949_v24, %v1945_v60 }
0x1972   :  { %1953 = vrot.lane.b32.xlu0 %v1951_v30, %s6997_s30  ;;  %v6999_v30 = vmov (!%p5584_p5), 0.0  }
0x197f   :  { %v2203_v36 = vpop.permute.xlu1 %2202 }
0x1980   :  { %v2205_v40 = vmul.f32 %v2203_v36, %v2199_v25 }
0x1982   :  { %2207 = vrot.lane.b32.xlu1 %v2205_v40, %s6997_s30 }
0x19e4   :  { %v1954_v23 = vpop.permute.xlu0 %1953 }
0x19e5   :  { %v1956_v26 = vadd.f32 %v1954_v23, %v1946_v28 }
0x19e7   :  { %6780 = vtanh.f32 %v1956_v26 }
0x19f1   :  { %v6781_v41 = vpop.eup %6780 }
0x19f2   :  { %1959 = vrot.lane.b32.xlu0 %v6781_v41, %s6996_s29 }
0x19f4   :  { %v2208_v29 = vpop.permute.xlu1 %2207 }
0x19f5   :  { %v7712_v37 = vadd.f32 %v2208_v29, %v2200_v39 }
0x19f7   :  { %6782 = vtanh.f32 %v7712_v37 }
0x1a01   :  { %v6783_v0 = vpop.eup %6782 }
0x1a02   :  { %2213 = vrot.lane.b32.xlu1 %v6783_v0, %s6996_s29 }
0x1a64   :  { %v1960_v2 = vpop.permute.xlu0 %1959 }
0x1a65   :  { %v1962_v31 = vmul.f32 %v1960_v2, %v1945_v60 }
0x1a67   :  { %v2222_v3 = vpack.c.bf16 %v1962_v31, %v1962_v31 }
0x1a69   :  { %2228 = vrot.lane.b32.xlu0 %v2222_v3, %s6997_s30 }
0x1a74   :  { %v2214_v44 = vpop.permute.xlu1 %2213 }
0x1a75   :  { %v2216_v45 = vmul.f32 %v2214_v44, %v2199_v25  ;;  %v6998_v25 = vmov (!%p5584_p5), 0  }
0x1a76   :  { %6798 = vset.pattern.permute.xlu0 (!%p5584_p5), %v6998_v25 }
0x1a77   :  { %v2217_v33 = vpack.c.bf16 %v2216_v45, %v2216_v45 }
0x1a79   :  { %2286 = vrot.lane.b32.xlu1 %v2217_v33, %s6997_s30 }
0x1adb   :  { %v2229_v48 = vpop.permute.xlu0 %2228 }
0x1adc   :  { %6297 = vmatmul.mubr.msk.bf16.vlgmr.msra.gmra.mrb[72].mxu0 %vm99_vm6, %v2229_v48 }
0x1add   :  { %6301 = vmatpush3.bf16.msra.mxu0 %v6712_v47  ;;  %6304 = vmatprep.mubr.msk.bf16.mxu0 %vm6994_vm0, %v7492_v42 }
0x1ade   :  { %6302 = vmatprep.subr.bf16.mxu0 %v7492_v42 }
0x1ae1   :  { %6303 = vmatpush3.bf16.msra.mxu0 %v6713_v49 }
0x1aeb   :  { %v7736_v50 = vpop.permute.xlu1 %2286 }
0x1aec   :  { %6305 = vmatmul.mubr.msk.bf16.vlgmr.msra.gmra.mrb[76].mxu0 %vm99_vm6, %v7736_v50 }
0x1baf   :  { %v2279_v32 = vpop.f32.mrb[72].mxu0 }
0x1bb0   :  { %v6298_v27 = vpop.f32.mrb[73].mxu0 }
0x1bb1   :  { %v2282_v52 = vpop.f32.mrb[74].mxu0 }
0x1bb2   :  { %v6299_v53 = vpop.f32.mrb[75].mxu0 }
0x1bbf   :  { %v2337_v54 = vpop.f32.mrb[76].mxu0 }
0x1bc0   :  { %v2338_v34 = vadd.f32 %v2337_v54, %v2279_v32  ;;  %v6306_v56 = vpop.f32.mrb[77].mxu0 }
0x1bc1   :  { %v2340_v57 = vpop.f32.mrb[78].mxu0 }
0x1bc2   :  { %v2350_v58 = vadd.f32 %v5578_v55, %v2338_v34  ;;  %v6307_v59 = vpop.f32.mrb[79].mxu0 }
0x1bc4   :  { %v2351_v61 = vmul.f32 0.5, %v2350_v58 }
0x1bc6   :  { %v2352_v62 = vsel %vm7164_vm5, %v2350_v58, %v2351_v61 }
0x1bc7   :  { %6784 = vtanh.f32 %v2352_v62 }
0x1bd1   :  { %v6785_v46 = vpop.eup %6784 }
0x1bd2   :  { %v2354_v63 = vmul.f32 0.5, %v6785_v46 }
0x1bd4   :  { %v2355_v4 = vadd.f32 0.5, %v2354_v63 }
0x1bd6   :  { %v2356_v5 = vsel %vm7164_vm5, %v6785_v46, %v2355_v4 }
0x1bd7   :  { %2359 = vrot.lane.b32.xlu0 %v2356_v5, %s6996_s29  ;;  %v2357_v10 = vmul.f32 %v2356_v5, %v1956_v26 }
0x1c49   :  { %v2360_v6 = vpop.permute.xlu0 %2359 }
0x1c4a   :  { %v2362_v8 = vmul.f32 %v2360_v6, %v2356_v5 }
0x1c4c   :  { %2364 = vrot.lane.b32.xlu1 %v2362_v8, %s6997_s30 }
0x1cbe   :  { %v2365_v11 = vpop.permute.xlu1 %2364 }
0x1cbf   :  { %v7749_v13 = vadd.f32 %v2365_v11, %v2357_v10 }
0x1cc1   :  { %6786 = vtanh.f32 %v7749_v13 }
0x1ccb   :  { %v6787_v12 = vpop.eup %6786 }
0x1ccc   :  { %2370 = vrot.lane.b32.xlu0 %v6787_v12, %s6996_s29 }
0x1cd0   :  { %2454 = vperm.xlu0 (!%p5584_p5), %6798, %v5585_v38  }
0x1d3e   :  { %v2371_v51 = vpop.permute.xlu0 %2370 }
0x1d3f   :  { %v2373_v16 = vmul.f32 %v2371_v51, %v2356_v5 }
0x1d41   :  { %v2374_v17 = vpack.c.bf16 %v2373_v16, %v2373_v16 }
0x1d43   :  { %2387 = vrot.lane.b32.xlu1 %v2374_v17, %s6997_s30 }
0x1d4f   :  { %v2455_v24 = vpop.permute.xlu0 (!%p5584_p5), %2454 }
0x1d50   :  { %vm2456_vm8 = vcmp.eq.s32.totalorder (!%p5584_p5), %v7153_v7, %v2455_v24 }
0x1d51   :  { %v5586_v36 = vsel (!%p5584_p5), %vm2456_vm8, 1.0, %v6999_v30 }
0x1d52   :  { %2459 = vst [vmem:[#allocation2] sm:$0xff] (!%p5584_p5), %v5586_v36 }
0x1db5   :  { %v7761_v18 = vpop.permute.xlu1 %2387 }
0x1db6   :  { %6313 = vmatmul.mubr.msk.bf16.vlgmr.msra.gmra.mrb[68].mxu1 %vm99_vm6, %v7761_v18 }
0x1e86   :  { %2450 = sbr.rel (%p5584_p5) target bundleno = 7821 (0x1e8d), region = 81 }
0x1e89   :  { %v2438_v42 = vpop.f32.mrb[68].mxu1 }
0x1e8a   :  { %v2439_v21 = vadd.f32 %v5579_v20, %v2438_v42  ;;  %v6314_v60 = vpop.f32.mrb[69].mxu1 }
0x1e8b   :  { %v2441_v22 = vpop.f32.mrb[70].mxu1 }
0x1e8c   :  { %2445 = vst [vmem:[#allocation6 + $0x8] sm:$0xff] %v2439_v21  ;;  %v6315_v35 = vpop.f32.mrb[71].mxu1 }
0x1e8d PF:  { %p5587_p6 = scmp.ne.s32.totalorder %s5583_s5, 0 }
0x1e8e   :  { %v2464_v40 = vsel (!%p5587_p6), %vm79_vm2, %v2439_v21, -1e+30  ;;  %v7000_v45 = vmov (!%p5587_p6), 0.0  }
0x1e8f   :  { %2463 = sbr.rel (%p5587_p6) target bundleno = 8264 (0x2048), region = 85  ;;  %2465 = vmax.xlane.f32.xlu0 (!%p5587_p6), %v2464_v40 }
0x1f1c   :  { %v2466_v28 = vpop.xlane.xlu0 %2465 }
0x1f1d   :  { %vm2467_vm9 = vcmp.eq.f32.partialorder %v2464_v40, %v2466_v28 }
0x1f1e   :  { %v2468_v23 = vsel %vm2467_vm9, %v7153_v7, 128 }
0x1f1f   :  { %v2470_v26 = vshra.s32 %v2468_v23, 16  ;;  %v2469_v39 = vand.u32 65535, %v2468_v23 }
0x1f21   :  { %v2472_v41 = vcvt.s32.f32 %v2470_v26  ;;  %v2471_v43 = vcvt.s32.f32 %v2469_v39 }
0x1f23   :  { %2473 = vmin.xlane.f32.xlu0 %v2472_v41 }
0x1fb0   :  { %v2474_v29 = vpop.xlane.xlu0 %2473 }
0x1fb1   :  { %vm2475_vm10 = vcmp.eq.f32.partialorder %v2472_v41, %v2474_v29  ;;  %v2480_v0 = vcvt.f32.s32 %v2474_v29 }
0x1fb2   :  { %v2476_v9 = vsel %vm2475_vm10, %v2471_v43, inf }
0x1fb3   :  { %2477 = vmin.xlane.f32.xlu1 %v2476_v9  ;;  %v2481_v31 = vshll.u32 %v2480_v0, 16 }
0x2040   :  { %v2478_v2 = vpop.xlane.xlu1 %2477 }
0x2041   :  { %v2479_v3 = vcvt.f32.s32 %v2478_v2 }
0x2043   :  { %v2482_v44 = vadd.s32 %v2481_v31, %v2479_v3 }
0x2045   :  { %vm2483_vm11 = vcmp.eq.s32.totalorder %v7153_v7, %v2482_v44 }
0x2046   :  { %v5588_v33 = vsel %vm2483_vm11, 1.0, %v7000_v45 }
0x2047   :  { %2486 = vst [vmem:[#allocation2] sm:$0xff] %v5588_v33 }
0x2048 PF:  { %6316 = vmatprep.subr.bf16.mxu0 %v6993_v1  ;;  %v6799_v47 = vld [vmem:[%s8587_s15] sm:$0xff]   ;;  %6332 = vmatprep.mubr.msk.bf16.mxu0 %vm6994_vm0, %v6993_v1  ;;  %v6800_v48 = vld [vmem:[%s8587_s15 + $0x8] sm:$0xff]   ;;  %v6801_v49 = vld [vmem:[%s8587_s15 + $0x10] sm:$0xff]   ;;  %s5614_s22 = sld [smem:[#allocation3 + $0x2]] }
0x2049   :  { %6336 = vmatprep.subr.bf16.mxu1 %v6993_v1  ;;  %6340 = vmatprep.mubr.msk.bf16.mxu1 %vm6994_vm0, %v6993_v1  ;;  %v6807_v32 = vld [vmem:[%s8583_s11] sm:$0xff]   ;;  %v6802_v27 = vld [vmem:[%s8587_s15 + $0x18] sm:$0xff]   ;;  %v6808_v52 = vld [vmem:[%s8583_s11 + $0x8] sm:$0xff]  }
0x204a   :  { %6317 = vmatpush3.bf16.msra.mxu0 %v6799_v47  ;;  %6337 = vmatpush3.bf16.msra.mxu1 %v6807_v32  ;;  %v6803_v53 = vld [vmem:[%s8587_s15 + $0x20] sm:$0xff]   ;;  %v6804_v55 = vld [vmem:[%s8587_s15 + $0x28] sm:$0xff]   ;;  %v6805_v34 = vld [vmem:[%s8587_s15 + $0x30] sm:$0xff]  }
0x204b   :  { %6318 = vmatprep.subr.bf16.mxu0 %v6993_v1  ;;  %6338 = vmatprep.subr.bf16.mxu1 %v6993_v1  ;;  %v6809_v54 = vld [vmem:[%s8581_s9] sm:$0xff]   ;;  %v6811_v36 = vld [vmem:[%s8584_s12 + $0x8] sm:$0xff]  }
0x204c   :  { %v5602_v10 = vld [vmem:[%s8585_s13] ss:$0 sm:$0xff]  ;;  %v6813_v28 = vld [vmem:[%s8582_s10 + $0x8] sm:$0xff]  }
0x204d   :  { %v6810_v30 = vld [vmem:[%s8584_s12] sm:$0xff]  }
0x204e   :  { %6319 = vmatpush3.bf16.msra.mxu0 %v6800_v48  ;;  %6339 = vmatpush3.bf16.msra.mxu1 %v6808_v52  ;;  %v2487_v56 = vld [vmem:[#allocation2] sm:$0xff]  ;;  %p5615_p7 = scmp.le.s32.totalorder %s5614_s22, 0 }
0x204f   :  { %6320 = vmatprep.subr.bf16.mxu0 %v6993_v1  ;;  %6344 = vmatprep.subr.bf16.mxu1 %v6993_v1  ;;  %v2488_v57 = vpack.c.bf16 %v2487_v56, %v2487_v56  ;;  %v5609_v2 = vld [vmem:[%s8586_s14] ss:$0 sm:$0xff]  ;;  %s8601_s27 = sld [smem:[#allocation11_spill]] (!%p5615_p7) }
0x2050   :  { %v6814_v56 = vld [vmem:[%s8588_s16] sm:$0xff]  }
0x2051   :  { %6341 = vmatmul.mubr.msk.bf16.vlgmr.msra.gmra.mrb[72].mxu1 %vm99_vm6, %v7736_v50  ;;  %v6806_v50 = vld [vmem:[%s8587_s15 + $0x38] sm:$0xff]  }
0x2052   :  { %6321 = vmatpush3.bf16.msra.mxu0 %v6801_v49  ;;  %6345 = vmatpush3.bf16.msra.mxu1 %v6809_v54 }
0x2053   :  { %6322 = vmatprep.subr.bf16.mxu0 %v6993_v1  ;;  %6346 = vmatprep.mubr.msk.bf16.mxu1 %vm6994_vm0, %v6993_v1 }
0x2054   :  { %6350 = vmatprep.subr.bf16.mxu1 %v6993_v1 }
0x2056   :  { %6323 = vmatpush3.bf16.msra.mxu0 %v6802_v27 }
0x2057   :  { %6324 = vmatprep.subr.bf16.mxu0 %v6993_v1 }
0x205a   :  { %6325 = vmatpush3.bf16.msra.mxu0 %v6803_v53 }
0x205b   :  { %6326 = vmatprep.subr.bf16.mxu0 %v6993_v1 }
0x205e   :  { %6327 = vmatpush3.bf16.msra.mxu0 %v6804_v55 }
0x205f   :  { %6328 = vmatprep.subr.bf16.mxu0 %v6993_v1 }
0x2062   :  { %6329 = vmatpush3.bf16.msra.mxu0 %v6805_v34 }
0x2063   :  { %6330 = vmatprep.subr.bf16.mxu0 %v6993_v1 }
0x2066   :  { %6331 = vmatpush3.bf16.msra.mxu0 %v6806_v50 }
0x2067   :  { %6366 = vmatprep.subr.bf16.mxu0 %v6993_v1 }
0x2069   :  { %6333 = vmatmul.mubr.bf16.vlgmr.msra.gmra.mrb[80].mxu0 %v2488_v57  ;;  %v6815_v57 = vld [vmem:[%s8588_s16 + $0x8] sm:$0xff]  }
0x206a   :  { %6370 = vmatprep.mubr.msk.bf16.mxu0 %vm6994_vm0, %v6993_v1  ;;  %6367 = vmatpush3.bf16.msra.mxu0 %v6814_v56 }
0x206b   :  { %6368 = vmatprep.subr.bf16.mxu0 %v6993_v1 }
0x206e   :  { %6369 = vmatpush3.bf16.msra.mxu0 %v6815_v57 }
0x2124   :  { %v2646_v58 = vpop.f32.mrb[72].mxu1 }
0x2125   :  { %v6342_v59 = vpop.f32.mrb[73].mxu1 }
0x2126   :  { %v2649_v61 = vpop.f32.mrb[74].mxu1 }
0x2127   :  { %v6343_v62 = vpop.f32.mrb[75].mxu1 }
0x213c   :  { %v2587_v46 = vpop.f32.mrb[80].mxu0 }
0x213d   :  { %v2593_v63 = vpack.c.bf16 %v2587_v46, %v2587_v46  ;;  %v6334_v4 = vpop.f32.mrb[81].mxu0  ;;  %v5610_v46 = vld [vmem:[%s8589_s17] ss:$0 sm:$0xff] }
0x213e   :  { %v2590_v5 = vpop.f32.mrb[82].mxu0 }
0x213f   :  { %v6335_v6 = vpop.f32.mrb[83].mxu0  ;;  %6347 = vmatmul.mubr.msk.bf16.vlgmr.msra.gmra.mrb[76].mxu1 %vm149_vm1, %v2593_v63 }
0x2140   :  { %6354 = vmatprep.mubr.msk.bf16.mxu1 %vm6994_vm0, %v6993_v1  ;;  %6351 = vmatpush3.bf16.msra.mxu1 %v6810_v30 }
0x2141   :  { %6352 = vmatprep.subr.bf16.mxu1 %v6993_v1 }
0x2144   :  { %6353 = vmatpush3.bf16.msra.mxu1 %v6811_v36 }
0x2145   :  { %6358 = vmatprep.subr.bf16.mxu1 %v6993_v1 }
0x2147   :  { %6355 = vmatmul.mubr.msk.bf16.vlgmr.msra.gmra.mrb[80].mxu1 %vm99_vm6, %v7761_v18 }
0x2148   :  { %6362 = vmatprep.mubr.msk.bf16.mxu1 %vm6994_vm0, %v6993_v1 }
0x2212   :  { %v2695_v8 = vpop.f32.mrb[76].mxu1 }
0x2213   :  { %v2696_v11 = vadd.f32 %v2695_v8, %v2646_v58  ;;  %v6348_v14 = vpop.f32.mrb[77].mxu1 }
0x2214   :  { %v2698_v15 = vpop.f32.mrb[78].mxu1 }
0x2215   :  { %v2708_v12 = vadd.f32 %v5602_v10, %v2696_v11  ;;  %v6349_v51 = vpop.f32.mrb[79].mxu1  ;;  %v5616_v10 = vld [vmem:[%s8601_s27 + $0x10] sm:$0xff] (!%p5615_p7)  ;;  %v7001_v11 = vmov (!%p5615_p7), 0   ;;  %v7002_v15 = vmov (!%p5615_p7), 0.0  }
0x2216   :  { %6824 = vset.pattern.permute.xlu0 (!%p5615_p7), %v7001_v11 }
0x2217   :  { %v2709_v16 = vmul.f32 0.5, %v2708_v12 }
0x2219   :  { %v2710_v17 = vsel %vm7164_vm5, %v2708_v12, %v2709_v16 }
0x221a   :  { %6816 = vtanh.f32 %v2710_v17  ;;  %v2787_v39 = vpop.f32.mrb[80].mxu1 }
0x221b   :  { %v6356_v29 = vpop.f32.mrb[81].mxu1 }
0x221c   :  { %v2790_v43 = vpop.f32.mrb[82].mxu1 }
0x221d   :  { %v6357_v18 = vpop.f32.mrb[83].mxu1 }
0x2224   :  { %v6817_v20 = vpop.eup %6816 }
0x2225   :  { %v2712_v42 = vmul.f32 0.5, %v6817_v20 }
0x2227   :  { %v2713_v21 = vadd.f32 0.5, %v2712_v42 }
0x2229   :  { %v2714_v60 = vsel %vm7164_vm5, %v6817_v20, %v2713_v21 }
0x222a   :  { %2717 = vrot.lane.b32.xlu0 %v2714_v60, %s6996_s29  ;;  %v2715_v38 = vmul.f32 %v2714_v60, %v7712_v37  ;;  %v6812_v37 = vld [vmem:[%s8582_s10] sm:$0xff]  }
0x222b   :  { %6359 = vmatpush3.bf16.msra.mxu1 %v6812_v37 }
0x222c   :  { %6360 = vmatprep.subr.bf16.mxu1 %v6993_v1 }
0x222f   :  { %6361 = vmatpush3.bf16.msra.mxu1 %v6813_v28 }
0x229c   :  { %v2718_v22 = vpop.permute.xlu0 %2717 }
0x229d   :  { %v2720_v35 = vmul.f32 %v2718_v22, %v2714_v60 }
0x229f   :  { %2722 = vrot.lane.b32.xlu0 %v2720_v35, %s6997_s30 }
0x2311   :  { %v2723_v25 = vpop.permute.xlu0 %2722 }
0x2312   :  { %v7845_v24 = vadd.f32 %v2723_v25, %v2715_v38 }
0x2314   :  { %6818 = vtanh.f32 %v7845_v24 }
0x231e   :  { %v6819_v40 = vpop.eup %6818 }
0x231f   :  { %2728 = vrot.lane.b32.xlu1 %v6819_v40, %s6996_s29 }
0x2391   :  { %v2729_v23 = vpop.permute.xlu1 %2728 }
0x2392   :  { %v2731_v26 = vmul.f32 %v2729_v23, %v2714_v60 }
0x2394   :  { %v2732_v41 = vpack.c.bf16 %v2731_v26, %v2731_v26 }
0x2396   :  { %2794 = vrot.lane.b32.xlu1 %v2732_v41, %s6997_s30 }
0x2408   :  { %v7869_v9 = vpop.permute.xlu1 %2794 }
0x2409   :  { %6363 = vmatmul.mubr.msk.bf16.vlgmr.msra.gmra.mrb[84].mxu1 %vm99_vm6, %v7869_v9 }
0x24dc   :  { %v2845_v0 = vpop.f32.mrb[84].mxu1 }
0x24dd   :  { %v2846_v31 = vadd.f32 %v2845_v0, %v2787_v39  ;;  %v6364_v3 = vpop.f32.mrb[85].mxu1 }
0x24de   :  { %v2848_v44 = vpop.f32.mrb[86].mxu1 }
0x24df   :  { %v2858_v45 = vadd.f32 %v5609_v2, %v2846_v31  ;;  %v6365_v33 = vpop.f32.mrb[87].mxu1 }
0x24e1   :  { %v2859_v47 = vmul.f32 0.5, %v2858_v45 }
0x24e3   :  { %v2860_v48 = vsel %vm7164_vm5, %v2858_v45, %v2859_v47 }
0x24e4   :  { %6820 = vtanh.f32 %v2860_v48 }
0x24ee   :  { %v6821_v49 = vpop.eup %6820 }
0x24ef   :  { %v2862_v32 = vmul.f32 0.5, %v6821_v49 }
0x24f1   :  { %v2863_v27 = vadd.f32 0.5, %v2862_v32 }
0x24f3   :  { %v2864_v52 = vsel %vm7164_vm5, %v6821_v49, %v2863_v27 }
0x24f4   :  { %2867 = vrot.lane.b32.xlu0 %v2864_v52, %s6996_s29  ;;  %v2865_v55 = vmul.f32 %v2864_v52, %v7749_v13 }
0x2566   :  { %v2868_v53 = vpop.permute.xlu0 %2867 }
0x2567   :  { %v2870_v54 = vmul.f32 %v2868_v53, %v2864_v52 }
0x2569   :  { %2872 = vrot.lane.b32.xlu1 %v2870_v54, %s6997_s30 }
0x25db   :  { %v2873_v34 = vpop.permute.xlu1 %2872 }
0x25dc   :  { %v7883_v50 = vadd.f32 %v2873_v34, %v2865_v55 }
0x25de   :  { %6822 = vtanh.f32 %v7883_v50 }
0x25e8   :  { %v6823_v58 = vpop.eup %6822 }
0x25e9   :  { %2878 = vrot.lane.b32.xlu0 %v6823_v58, %s6996_s29 }
0x25ed   :  { %2962 = vperm.xlu0 (!%p5615_p7), %6824, %v5616_v10  }
0x265b   :  { %v2879_v13 = vpop.permute.xlu0 %2878 }
0x265c   :  { %v2881_v59 = vmul.f32 %v2879_v13, %v2864_v52 }
0x265e   :  { %v2882_v61 = vpack.c.bf16 %v2881_v59, %v2881_v59 }
0x2660   :  { %2895 = vrot.lane.b32.xlu1 %v2882_v61, %s6997_s30 }
0x266c   :  { %v2963_v14 = vpop.permute.xlu0 (!%p5615_p7), %2962 }
0x266d   :  { %vm2964_vm12 = vcmp.eq.s32.totalorder (!%p5615_p7), %v7153_v7, %v2963_v14 }
0x266e   :  { %v5617_v12 = vsel (!%p5615_p7), %vm2964_vm12, 1.0, %v7002_v15 }
0x266f   :  { %2967 = vst [vmem:[#allocation2] sm:$0xff] (!%p5615_p7), %v5617_v12 }
0x26d2   :  { %v7895_v62 = vpop.permute.xlu1 %2895 }
0x26d3   :  { %6371 = vmatmul.mubr.msk.bf16.vlgmr.msra.gmra.mrb[84].mxu0 %vm99_vm6, %v7895_v62 }
0x27a3   :  { %2958 = sbr.rel (%p5615_p7) target bundleno = 10154 (0x27aa), region = 89 }
0x27a6   :  { %v2946_v63 = vpop.f32.mrb[84].mxu0 }
0x27a7   :  { %v2947_v4 = vadd.f32 %v5610_v46, %v2946_v63  ;;  %v6372_v5 = vpop.f32.mrb[85].mxu0 }
0x27a8   :  { %v2949_v6 = vpop.f32.mrb[86].mxu0 }
0x27a9   :  { %2953 = vst [vmem:[#allocation6 + $0x10] sm:$0xff] %v2947_v4  ;;  %v6373_v8 = vpop.f32.mrb[87].mxu0 }
0x27aa PF:  { %p5618_p8 = scmp.ne.s32.totalorder %s5614_s22, 0 }
0x27ab   :  { %v2972_v51 = vsel (!%p5618_p8), %vm79_vm2, %v2947_v4, -1e+30  ;;  %v7003_v40 = vmov (!%p5618_p8), 0.0  }
0x27ac   :  { %2971 = sbr.rel (%p5618_p8) target bundleno = 10597 (0x2965), region = 93  ;;  %2973 = vmax.xlane.f32.xlu0 (!%p5618_p8), %v2972_v51 }
0x2839   :  { %v2974_v16 = vpop.xlane.xlu0 %2973 }
0x283a   :  { %vm2975_vm13 = vcmp.eq.f32.partialorder %v2972_v51, %v2974_v16 }
0x283b   :  { %v2976_v17 = vsel %vm2975_vm13, %v7153_v7, 128 }
0x283c   :  { %v2978_v20 = vshra.s32 %v2976_v17, 16  ;;  %v2977_v21 = vand.u32 65535, %v2976_v17 }
0x283e   :  { %v2980_v42 = vcvt.s32.f32 %v2978_v20  ;;  %v2979_v22 = vcvt.s32.f32 %v2977_v21 }
0x2840   :  { %2981 = vmin.xlane.f32.xlu0 %v2980_v42 }
0x28cd   :  { %v2982_v60 = vpop.xlane.xlu0 %2981 }
0x28ce   :  { %vm2983_vm14 = vcmp.eq.f32.partialorder %v2980_v42, %v2982_v60  ;;  %v2988_v38 = vcvt.f32.s32 %v2982_v60 }
0x28cf   :  { %v2984_v35 = vsel %vm2983_vm14, %v2979_v22, inf }
0x28d0   :  { %2985 = vmin.xlane.f32.xlu1 %v2984_v35  ;;  %v2989_v30 = vshll.u32 %v2988_v38, 16 }
0x295d   :  { %v2986_v25 = vpop.xlane.xlu1 %2985 }
0x295e   :  { %v2987_v36 = vcvt.f32.s32 %v2986_v25 }
0x2960   :  { %v2990_v37 = vadd.s32 %v2989_v30, %v2987_v36 }
0x2962   :  { %vm2991_vm15 = vcmp.eq.s32.totalorder %v7153_v7, %v2990_v37 }
0x2963   :  { %v5619_v28 = vsel %vm2991_vm15, 1.0, %v7003_v40 }
0x2964   :  { %2994 = vst [vmem:[#allocation2] sm:$0xff] %v5619_v28 }
0x2965 PF:  { %6374 = vmatprep.subr.bf16.mxu1 %v6993_v1  ;;  %v6825_v23 = vld [vmem:[%s8587_s15] sm:$0xff]   ;;  %6390 = vmatprep.mubr.msk.bf16.mxu1 %vm6994_vm0, %v6993_v1  ;;  %v6826_v26 = vld [vmem:[%s8587_s15 + $0x8] sm:$0xff]   ;;  %v6827_v41 = vld [vmem:[%s8587_s15 + $0x10] sm:$0xff]   ;;  %s5645_s26 = sld [smem:[#allocation3 + $0x3]] }
0x2966   :  { %6394 = vmatprep.subr.bf16.mxu0 %v6993_v1  ;;  %6398 = vmatprep.mubr.msk.bf16.mxu0 %vm6994_vm0, %v6993_v1  ;;  %v6833_v39 = vld [vmem:[%s8583_s11] sm:$0xff]   ;;  %v6828_v29 = vld [vmem:[%s8587_s15 + $0x18] sm:$0xff]   ;;  %v6834_v43 = vld [vmem:[%s8583_s11 + $0x8] sm:$0xff]  }
0x2967   :  { %6375 = vmatpush3.bf16.msra.mxu1 %v6825_v23  ;;  %6395 = vmatpush3.bf16.msra.mxu0 %v6833_v39  ;;  %v6829_v18 = vld [vmem:[%s8587_s15 + $0x20] sm:$0xff]   ;;  %v6830_v2 = vld [vmem:[%s8587_s15 + $0x28] sm:$0xff]   ;;  %v6831_v31 = vld [vmem:[%s8587_s15 + $0x30] sm:$0xff]  }
0x2968   :  { %6376 = vmatprep.subr.bf16.mxu1 %v6993_v1  ;;  %6396 = vmatprep.subr.bf16.mxu0 %v6993_v1  ;;  %v6835_v0 = vld [vmem:[%s8581_s9] sm:$0xff]   ;;  %v6837_v12 = vld [vmem:[%s8584_s12 + $0x8] sm:$0xff]  }
0x2969   :  { %v5633_v55 = vld [vmem:[%s8585_s13] ss:$0 sm:$0xff]  ;;  %v6839_v16 = vld [vmem:[%s8582_s10 + $0x8] sm:$0xff]  }
0x296a   :  { %v6836_v15 = vld [vmem:[%s8584_s12] sm:$0xff]  }
0x296b   :  { %6377 = vmatpush3.bf16.msra.mxu1 %v6826_v26  ;;  %6397 = vmatpush3.bf16.msra.mxu0 %v6834_v43  ;;  %v2995_v3 = vld [vmem:[#allocation2] sm:$0xff]  ;;  %p5646_p9 = scmp.le.s32.totalorder %s5645_s26, 0 }
0x296c   :  { %6378 = vmatprep.subr.bf16.mxu1 %v6993_v1  ;;  %6402 = vmatprep.subr.bf16.mxu0 %v6993_v1  ;;  %v2996_v44 = vpack.c.bf16 %v2995_v3, %v2995_v3  ;;  %v5640_v25 = vld [vmem:[%s8586_s14] ss:$0 sm:$0xff]  ;;  %s8602_s8 = sld [smem:[#allocation11_spill]] (!%p5646_p9) }
0x296d   :  { %v6840_v3 = vld [vmem:[%s8588_s16] sm:$0xff]  }
0x296e   :  { %6399 = vmatmul.mubr.msk.bf16.vlgmr.msra.gmra.mrb[88].mxu0 %vm99_vm6, %v7869_v9  ;;  %v6832_v9 = vld [vmem:[%s8587_s15 + $0x38] sm:$0xff]  }
0x296f   :  { %6379 = vmatpush3.bf16.msra.mxu1 %v6827_v41  ;;  %6403 = vmatpush3.bf16.msra.mxu0 %v6835_v0 }
0x2970   :  { %6380 = vmatprep.subr.bf16.mxu1 %v6993_v1  ;;  %6404 = vmatprep.mubr.msk.bf16.mxu0 %vm6994_vm0, %v6993_v1 }
0x2971   :  { %6408 = vmatprep.subr.bf16.mxu0 %v6993_v1 }
0x2973   :  { %6381 = vmatpush3.bf16.msra.mxu1 %v6828_v29 }
0x2974   :  { %6382 = vmatprep.subr.bf16.mxu1 %v6993_v1 }
0x2977   :  { %6383 = vmatpush3.bf16.msra.mxu1 %v6829_v18 }
0x2978   :  { %6384 = vmatprep.subr.bf16.mxu1 %v6993_v1 }
0x297b   :  { %6385 = vmatpush3.bf16.msra.mxu1 %v6830_v2 }
0x297c   :  { %6386 = vmatprep.subr.bf16.mxu1 %v6993_v1 }
0x297f   :  { %6387 = vmatpush3.bf16.msra.mxu1 %v6831_v31 }
0x2980   :  { %6388 = vmatprep.subr.bf16.mxu1 %v6993_v1 }
0x2983   :  { %6389 = vmatpush3.bf16.msra.mxu1 %v6832_v9 }
0x2984   :  { %6424 = vmatprep.subr.bf16.mxu1 %v6993_v1 }
0x2986   :  { %6391 = vmatmul.mubr.bf16.vlgmr.msra.gmra.mrb[88].mxu1 %v2996_v44  ;;  %v6841_v44 = vld [vmem:[%s8588_s16 + $0x8] sm:$0xff]  }
0x2987   :  { %6428 = vmatprep.mubr.msk.bf16.mxu1 %vm6994_vm0, %v6993_v1  ;;  %6425 = vmatpush3.bf16.msra.mxu1 %v6840_v3 }
0x2988   :  { %6426 = vmatprep.subr.bf16.mxu1 %v6993_v1 }
0x298b   :  { %6427 = vmatpush3.bf16.msra.mxu1 %v6841_v44 }
0x2a41   :  { %v3154_v45 = vpop.f32.mrb[88].mxu0 }
0x2a42   :  { %v6400_v33 = vpop.f32.mrb[89].mxu0 }
0x2a43   :  { %v3157_v47 = vpop.f32.mrb[90].mxu0 }
0x2a44   :  { %v6401_v48 = vpop.f32.mrb[91].mxu0 }
0x2a59   :  { %v3095_v49 = vpop.f32.mrb[88].mxu1 }
0x2a5a   :  { %v3101_v32 = vpack.c.bf16 %v3095_v49, %v3095_v49  ;;  %v6392_v27 = vpop.f32.mrb[89].mxu1  ;;  %v5641_v49 = vld [vmem:[%s8589_s17] ss:$0 sm:$0xff] }
0x2a5b   :  { %v3098_v52 = vpop.f32.mrb[90].mxu1 }
0x2a5c   :  { %v6393_v53 = vpop.f32.mrb[91].mxu1  ;;  %6405 = vmatmul.mubr.msk.bf16.vlgmr.msra.gmra.mrb[92].mxu0 %vm149_vm1, %v3101_v32 }
0x2a5d   :  { %6412 = vmatprep.mubr.msk.bf16.mxu0 %vm6994_vm0, %v6993_v1  ;;  %6409 = vmatpush3.bf16.msra.mxu0 %v6836_v15 }
0x2a5e   :  { %6410 = vmatprep.subr.bf16.mxu0 %v6993_v1 }
0x2a61   :  { %6411 = vmatpush3.bf16.msra.mxu0 %v6837_v12 }
0x2a62   :  { %6416 = vmatprep.subr.bf16.mxu0 %v6993_v1 }
0x2a64   :  { %6413 = vmatmul.mubr.msk.bf16.vlgmr.msra.gmra.mrb[96].mxu0 %vm99_vm6, %v7895_v62 }
0x2a65   :  { %6420 = vmatprep.mubr.msk.bf16.mxu0 %vm6994_vm0, %v6993_v1 }
0x2b2f   :  { %v3203_v54 = vpop.f32.mrb[92].mxu0 }
0x2b30   :  { %v3204_v34 = vadd.f32 %v3203_v54, %v3154_v45  ;;  %v6406_v56 = vpop.f32.mrb[93].mxu0 }
0x2b31   :  { %v3206_v57 = vpop.f32.mrb[94].mxu0 }
0x2b32   :  { %v3216_v58 = vadd.f32 %v5633_v55, %v3204_v34  ;;  %v6407_v13 = vpop.f32.mrb[95].mxu0  ;;  %v5647_v55 = vld [vmem:[%s8602_s8 + $0x18] sm:$0xff] (!%p5646_p9)  ;;  %v7004_v34 = vmov (!%p5646_p9), 0   ;;  %v7005_v57 = vmov (!%p5646_p9), 0.0  }
0x2b33   :  { %6850 = vset.pattern.permute.xlu0 (!%p5646_p9), %v7004_v34 }
0x2b34   :  { %v3217_v59 = vmul.f32 0.5, %v3216_v58 }
0x2b36   :  { %v3218_v61 = vsel %vm7164_vm5, %v3216_v58, %v3217_v59 }
0x2b37   :  { %6842 = vtanh.f32 %v3218_v61  ;;  %v3295_v21 = vpop.f32.mrb[96].mxu0 }
0x2b38   :  { %v6414_v60 = vpop.f32.mrb[97].mxu0 }
0x2b39   :  { %v3298_v22 = vpop.f32.mrb[98].mxu0 }
0x2b3a   :  { %v6415_v62 = vpop.f32.mrb[99].mxu0 }
0x2b41   :  { %v6843_v46 = vpop.eup %6842 }
0x2b42   :  { %v3220_v63 = vmul.f32 0.5, %v6843_v46 }
0x2b44   :  { %v3221_v4 = vadd.f32 0.5, %v3220_v63 }
0x2b46   :  { %v3222_v5 = vsel %vm7164_vm5, %v6843_v46, %v3221_v4 }
0x2b47   :  { %3225 = vrot.lane.b32.xlu0 %v3222_v5, %s6996_s29  ;;  %v3223_v10 = vmul.f32 %v3222_v5, %v7845_v24  ;;  %v6838_v24 = vld [vmem:[%s8582_s10] sm:$0xff]  }
0x2b48   :  { %6417 = vmatpush3.bf16.msra.mxu0 %v6838_v24 }
0x2b49   :  { %6418 = vmatprep.subr.bf16.mxu0 %v6993_v1 }
0x2b4c   :  { %6419 = vmatpush3.bf16.msra.mxu0 %v6839_v16 }
0x2bb9   :  { %v3226_v6 = vpop.permute.xlu0 %3225 }
0x2bba   :  { %v3228_v8 = vmul.f32 %v3226_v6, %v3222_v5 }
0x2bbc   :  { %3230 = vrot.lane.b32.xlu0 %v3228_v8, %s6997_s30 }
0x2c2e   :  { %v3231_v11 = vpop.permute.xlu0 %3230 }
0x2c2f   :  { %v7979_v14 = vadd.f32 %v3231_v11, %v3223_v10 }
0x2c31   :  { %6844 = vtanh.f32 %v7979_v14 }
0x2c3b   :  { %v6845_v51 = vpop.eup %6844 }
0x2c3c   :  { %3236 = vrot.lane.b32.xlu1 %v6845_v51, %s6996_s29 }
0x2cae   :  { %v3237_v17 = vpop.permute.xlu1 %3236 }
0x2caf   :  { %v3239_v20 = vmul.f32 %v3237_v17, %v3222_v5 }
0x2cb1   :  { %v3240_v42 = vpack.c.bf16 %v3239_v20, %v3239_v20 }
0x2cb3   :  { %3302 = vrot.lane.b32.xlu1 %v3240_v42, %s6997_s30 }
0x2d25   :  { %v8003_v35 = vpop.permute.xlu1 %3302 }
0x2d26   :  { %6421 = vmatmul.mubr.msk.bf16.vlgmr.msra.gmra.mrb[100].mxu0 %vm99_vm6, %v8003_v35 }
0x2df9   :  { %v3353_v38 = vpop.f32.mrb[100].mxu0 }
0x2dfa   :  { %v3354_v30 = vadd.f32 %v3353_v38, %v3295_v21  ;;  %v6422_v36 = vpop.f32.mrb[101].mxu0 }
0x2dfb   :  { %v3356_v37 = vpop.f32.mrb[102].mxu0 }
0x2dfc   :  { %v3366_v40 = vadd.f32 %v5640_v25, %v3354_v30  ;;  %v6423_v28 = vpop.f32.mrb[103].mxu0 }
0x2dfe   :  { %v3367_v23 = vmul.f32 0.5, %v3366_v40 }
0x2e00   :  { %v3368_v26 = vsel %vm7164_vm5, %v3366_v40, %v3367_v23 }
0x2e01   :  { %6846 = vtanh.f32 %v3368_v26 }
0x2e0b   :  { %v6847_v41 = vpop.eup %6846 }
0x2e0c   :  { %v3370_v39 = vmul.f32 0.5, %v6847_v41 }
0x2e0e   :  { %v3371_v29 = vadd.f32 0.5, %v3370_v39 }
0x2e10   :  { %v3372_v43 = vsel %vm7164_vm5, %v6847_v41, %v3371_v29 }
0x2e11   :  { %3375 = vrot.lane.b32.xlu0 %v3372_v43, %s6996_s29  ;;  %v3373_v2 = vmul.f32 %v3372_v43, %v7883_v50 }
0x2e83   :  { %v3376_v18 = vpop.permute.xlu0 %3375 }
0x2e84   :  { %v3378_v0 = vmul.f32 %v3376_v18, %v3372_v43 }
0x2e86   :  { %3380 = vrot.lane.b32.xlu1 %v3378_v0, %s6997_s30 }
0x2ef8   :  { %v3381_v31 = vpop.permute.xlu1 %3380 }
0x2ef9   :  { %v8017_v9 = vadd.f32 %v3381_v31, %v3373_v2 }
0x2efb   :  { %6848 = vtanh.f32 %v8017_v9 }
0x2f05   :  { %v6849_v45 = vpop.eup %6848 }
0x2f06   :  { %3386 = vrot.lane.b32.xlu0 %v6849_v45, %s6996_s29 }
0x2f0a   :  { %3470 = vperm.xlu0 (!%p5646_p9), %6850, %v5647_v55  }
0x2f78   :  { %v3387_v50 = vpop.permute.xlu0 %3386 }
0x2f79   :  { %v3389_v33 = vmul.f32 %v3387_v50, %v3372_v43 }
0x2f7b   :  { %v3390_v47 = vpack.c.bf16 %v3389_v33, %v3389_v33 }
0x2f7d   :  { %3403 = vrot.lane.b32.xlu1 %v3390_v47, %s6997_s30 }
0x2f89   :  { %v3471_v56 = vpop.permute.xlu0 (!%p5646_p9), %3470 }
0x2f8a   :  { %vm3472_vm3 = vcmp.eq.s32.totalorder (!%p5646_p9), %v7153_v7, %v3471_v56 }
0x2f8b   :  { %v5648_v58 = vsel (!%p5646_p9), %vm3472_vm3, 1.0, %v7005_v57 }
0x2f8c   :  { %3475 = vst [vmem:[#allocation2] sm:$0xff] (!%p5646_p9), %v5648_v58 }
0x2fef   :  { %v8029_v48 = vpop.permute.xlu1 %3403 }
0x2ff0   :  { %6429 = vmatmul.mubr.msk.bf16.vlgmr.msra.gmra.mrb[92].mxu1 %vm99_vm6, %v8029_v48 }
0x30c0   :  { %3466 = sbr.rel (%p5646_p9) target bundleno = 12487 (0x30c7), region = 97 }
0x30c3   :  { %v3454_v32 = vpop.f32.mrb[92].mxu1 }
0x30c4   :  { %v3455_v27 = vadd.f32 %v5641_v49, %v3454_v32  ;;  %v6430_v52 = vpop.f32.mrb[93].mxu1 }
0x30c5   :  { %v3457_v53 = vpop.f32.mrb[94].mxu1 }
0x30c6   :  { %3461 = vst [vmem:[#allocation6 + $0x18] sm:$0xff] %v3455_v27  ;;  %v6431_v54 = vpop.f32.mrb[95].mxu1 }
0x30c7 PF:  { %p5649_p10 = scmp.ne.s32.totalorder %s5645_s26, 0 }
0x30c8   :  { %v3480_v13 = vsel (!%p5649_p10), %vm79_vm2, %v3455_v27, -1e+30  ;;  %v7006_v51 = vmov (!%p5649_p10), 0.0  }
0x30c9   :  { %3479 = sbr.rel (%p5649_p10) target bundleno = 12930 (0x3282), region = 101  ;;  %3481 = vmax.xlane.f32.xlu0 (!%p5649_p10), %v3480_v13 }
0x3156   :  { %v3482_v59 = vpop.xlane.xlu0 %3481 }
0x3157   :  { %vm3483_vm4 = vcmp.eq.f32.partialorder %v3480_v13, %v3482_v59 }
0x3158   :  { %v3484_v61 = vsel %vm3483_vm4, %v7153_v7, 128 }
0x3159   :  { %v3486_v46 = vshra.s32 %v3484_v61, 16  ;;  %v3485_v4 = vand.u32 65535, %v3484_v61 }
0x315b   :  { %v3488_v63 = vcvt.s32.f32 %v3486_v46  ;;  %v3487_v6 = vcvt.s32.f32 %v3485_v4 }
0x315d   :  { %3489 = vmin.xlane.f32.xlu0 %v3488_v63 }
0x31ea   :  { %v3490_v5 = vpop.xlane.xlu0 %3489 }
0x31eb   :  { %vm3491_vm7 = vcmp.eq.f32.partialorder %v3488_v63, %v3490_v5  ;;  %v3496_v10 = vcvt.f32.s32 %v3490_v5 }
0x31ec   :  { %v3492_v8 = vsel %vm3491_vm7, %v3487_v6, inf }
0x31ed   :  { %3493 = vmin.xlane.f32.xlu1 %v3492_v8  ;;  %v3497_v15 = vshll.u32 %v3496_v10, 16 }
0x327a   :  { %v3494_v11 = vpop.xlane.xlu1 %3493 }
0x327b   :  { %v3495_v12 = vcvt.f32.s32 %v3494_v11 }
0x327d   :  { %v3498_v24 = vadd.s32 %v3497_v15, %v3495_v12 }
0x327f   :  { %vm3499_vm8 = vcmp.eq.s32.totalorder %v7153_v7, %v3498_v24 }
0x3280   :  { %v5650_v16 = vsel %vm3499_vm8, 1.0, %v7006_v51 }
0x3281   :  { %3502 = vst [vmem:[#allocation2] sm:$0xff] %v5650_v16 }
0x3282 PF:  { %6432 = vmatprep.subr.bf16.mxu0 %v6993_v1  ;;  %v6851_v17 = vld [vmem:[%s8587_s15] sm:$0xff]   ;;  %6448 = vmatprep.mubr.msk.bf16.mxu0 %vm6994_vm0, %v6993_v1  ;;  %v6852_v20 = vld [vmem:[%s8587_s15 + $0x8] sm:$0xff]   ;;  %v6853_v42 = vld [vmem:[%s8587_s15 + $0x10] sm:$0xff]   ;;  %s5676_s19 = sld [smem:[#allocation3 + $0x4]] }
0x3283   :  { %6452 = vmatprep.subr.bf16.mxu1 %v6993_v1  ;;  %6456 = vmatprep.mubr.msk.bf16.mxu1 %vm6994_vm0, %v6993_v1  ;;  %v6859_v21 = vld [vmem:[%s8583_s11] sm:$0xff]   ;;  %v6854_v60 = vld [vmem:[%s8587_s15 + $0x18] sm:$0xff]   ;;  %v6860_v22 = vld [vmem:[%s8583_s11 + $0x8] sm:$0xff]  }
0x3284   :  { %6433 = vmatpush3.bf16.msra.mxu0 %v6851_v17  ;;  %6453 = vmatpush3.bf16.msra.mxu1 %v6859_v21  ;;  %v6855_v62 = vld [vmem:[%s8587_s15 + $0x20] sm:$0xff]   ;;  %v6856_v25 = vld [vmem:[%s8587_s15 + $0x28] sm:$0xff]   ;;  %v6857_v30 = vld [vmem:[%s8587_s15 + $0x30] sm:$0xff]  }
0x3285   :  { %6434 = vmatprep.subr.bf16.mxu0 %v6993_v1  ;;  %6454 = vmatprep.subr.bf16.mxu1 %v6993_v1  ;;  %v6861_v38 = vld [vmem:[%s8581_s9] sm:$0xff]   ;;  %v6863_v58 = vld [vmem:[%s8584_s12 + $0x8] sm:$0xff]  }
0x3286   :  { %v5664_v2 = vld [vmem:[%s8585_s13] ss:$0 sm:$0xff]  ;;  %v6865_v59 = vld [vmem:[%s8582_s10 + $0x8] sm:$0xff]  }
0x3287   :  { %v6862_v57 = vld [vmem:[%s8584_s12] sm:$0xff]  }
0x3288   :  { %6435 = vmatpush3.bf16.msra.mxu0 %v6852_v20  ;;  %6455 = vmatpush3.bf16.msra.mxu1 %v6860_v22  ;;  %v3503_v36 = vld [vmem:[#allocation2] sm:$0xff]  ;;  %p5677_p11 = scmp.le.s32.totalorder %s5676_s19, 0 }
0x3289   :  { %6436 = vmatprep.subr.bf16.mxu0 %v6993_v1  ;;  %6460 = vmatprep.subr.bf16.mxu1 %v6993_v1  ;;  %v3504_v37 = vpack.c.bf16 %v3503_v36, %v3503_v36  ;;  %v5671_v11 = vld [vmem:[%s8586_s14] ss:$0 sm:$0xff]  ;;  %s8603_s7 = sld [smem:[#allocation11_spill]] (!%p5677_p11) }
0x328a   :  { %v6866_v36 = vld [vmem:[%s8588_s16] sm:$0xff]  }
0x328b   :  { %6457 = vmatmul.mubr.msk.bf16.vlgmr.msra.gmra.mrb[96].mxu1 %vm99_vm6, %v8003_v35  ;;  %v6858_v35 = vld [vmem:[%s8587_s15 + $0x38] sm:$0xff]  }
0x328c   :  { %6437 = vmatpush3.bf16.msra.mxu0 %v6853_v42  ;;  %6461 = vmatpush3.bf16.msra.mxu1 %v6861_v38 }
0x328d   :  { %6438 = vmatprep.subr.bf16.mxu0 %v6993_v1  ;;  %6462 = vmatprep.mubr.msk.bf16.mxu1 %vm6994_vm0, %v6993_v1 }
0x328e   :  { %6466 = vmatprep.subr.bf16.mxu1 %v6993_v1 }
0x3290   :  { %6439 = vmatpush3.bf16.msra.mxu0 %v6854_v60 }
0x3291   :  { %6440 = vmatprep.subr.bf16.mxu0 %v6993_v1 }
0x3294   :  { %6441 = vmatpush3.bf16.msra.mxu0 %v6855_v62 }
0x3295   :  { %6442 = vmatprep.subr.bf16.mxu0 %v6993_v1 }
0x3298   :  { %6443 = vmatpush3.bf16.msra.mxu0 %v6856_v25 }
0x3299   :  { %6444 = vmatprep.subr.bf16.mxu0 %v6993_v1 }
0x329c   :  { %6445 = vmatpush3.bf16.msra.mxu0 %v6857_v30 }
0x329d   :  { %6446 = vmatprep.subr.bf16.mxu0 %v6993_v1 }
0x32a0   :  { %6447 = vmatpush3.bf16.msra.mxu0 %v6858_v35 }
0x32a1   :  { %6482 = vmatprep.subr.bf16.mxu0 %v6993_v1 }
0x32a3   :  { %6449 = vmatmul.mubr.bf16.vlgmr.msra.gmra.mrb[104].mxu0 %v3504_v37  ;;  %v6867_v37 = vld [vmem:[%s8588_s16 + $0x8] sm:$0xff]  }
0x32a4   :  { %6486 = vmatprep.mubr.msk.bf16.mxu0 %vm6994_vm0, %v6993_v1  ;;  %6483 = vmatpush3.bf16.msra.mxu0 %v6866_v36 }
0x32a5   :  { %6484 = vmatprep.subr.bf16.mxu0 %v6993_v1 }
0x32a8   :  { %6485 = vmatpush3.bf16.msra.mxu0 %v6867_v37 }
0x335e   :  { %v3662_v40 = vpop.f32.mrb[96].mxu1 }
0x335f   :  { %v6458_v28 = vpop.f32.mrb[97].mxu1 }
0x3360   :  { %v3665_v23 = vpop.f32.mrb[98].mxu1 }
0x3361   :  { %v6459_v26 = vpop.f32.mrb[99].mxu1 }
0x3376   :  { %v3603_v41 = vpop.f32.mrb[104].mxu0 }
0x3377   :  { %v3609_v39 = vpack.c.bf16 %v3603_v41, %v3603_v41  ;;  %v6450_v29 = vpop.f32.mrb[105].mxu0  ;;  %v5672_v41 = vld [vmem:[%s8589_s17] ss:$0 sm:$0xff] }
0x3378   :  { %v3606_v43 = vpop.f32.mrb[106].mxu0 }
0x3379   :  { %v6451_v18 = vpop.f32.mrb[107].mxu0  ;;  %6463 = vmatmul.mubr.msk.bf16.vlgmr.msra.gmra.mrb[100].mxu1 %vm149_vm1, %v3609_v39 }
0x337a   :  { %6470 = vmatprep.mubr.msk.bf16.mxu1 %vm6994_vm0, %v6993_v1  ;;  %6467 = vmatpush3.bf16.msra.mxu1 %v6862_v57 }
0x337b   :  { %6468 = vmatprep.subr.bf16.mxu1 %v6993_v1 }
0x337e   :  { %6469 = vmatpush3.bf16.msra.mxu1 %v6863_v58 }
0x337f   :  { %6474 = vmatprep.subr.bf16.mxu1 %v6993_v1 }
0x3381   :  { %6471 = vmatmul.mubr.msk.bf16.vlgmr.msra.gmra.mrb[104].mxu1 %vm99_vm6, %v8029_v48 }
0x3382   :  { %6478 = vmatprep.mubr.msk.bf16.mxu1 %vm6994_vm0, %v6993_v1 }
0x344c   :  { %v3711_v0 = vpop.f32.mrb[100].mxu1 }
0x344d   :  { %v3712_v31 = vadd.f32 %v3711_v0, %v3662_v40  ;;  %v6464_v3 = vpop.f32.mrb[101].mxu1 }
0x344e   :  { %v3714_v44 = vpop.f32.mrb[102].mxu1 }
0x344f   :  { %v3724_v45 = vadd.f32 %v5664_v2, %v3712_v31  ;;  %v6465_v50 = vpop.f32.mrb[103].mxu1  ;;  %v5678_v2 = vld [vmem:[%s8603_s7 + $0x20] sm:$0xff] (!%p5677_p11)  ;;  %v7007_v31 = vmov (!%p5677_p11), 0   ;;  %v7008_v44 = vmov (!%p5677_p11), 0.0  }
0x3450   :  { %6876 = vset.pattern.permute.xlu0 (!%p5677_p11), %v7007_v31 }
0x3451   :  { %v3725_v33 = vmul.f32 0.5, %v3724_v45 }
0x3453   :  { %v3726_v47 = vsel %vm7164_vm5, %v3724_v45, %v3725_v33 }
0x3454   :  { %6868 = vtanh.f32 %v3726_v47  ;;  %v3803_v4 = vpop.f32.mrb[104].mxu1 }
0x3455   :  { %v6472_v5 = vpop.f32.mrb[105].mxu1 }
0x3456   :  { %v3806_v6 = vpop.f32.mrb[106].mxu1 }
0x3457   :  { %v6473_v48 = vpop.f32.mrb[107].mxu1 }
0x345e   :  { %v6869_v49 = vpop.eup %6868 }
0x345f   :  { %v3728_v32 = vmul.f32 0.5, %v6869_v49 }
0x3461   :  { %v3729_v27 = vadd.f32 0.5, %v3728_v32 }
0x3463   :  { %v3730_v52 = vsel %vm7164_vm5, %v6869_v49, %v3729_v27 }
0x3464   :  { %3733 = vrot.lane.b32.xlu0 %v3730_v52, %s6996_s29  ;;  %v3731_v55 = vmul.f32 %v3730_v52, %v7979_v14  ;;  %v6864_v14 = vld [vmem:[%s8582_s10] sm:$0xff]  }
0x3465   :  { %6475 = vmatpush3.bf16.msra.mxu1 %v6864_v14 }
0x3466   :  { %6476 = vmatprep.subr.bf16.mxu1 %v6993_v1 }
0x3469   :  { %6477 = vmatpush3.bf16.msra.mxu1 %v6865_v59 }
0x34d6   :  { %v3734_v53 = vpop.permute.xlu0 %3733 }
0x34d7   :  { %v3736_v54 = vmul.f32 %v3734_v53, %v3730_v52 }
0x34d9   :  { %3738 = vrot.lane.b32.xlu0 %v3736_v54, %s6997_s30 }
0x354b   :  { %v3739_v34 = vpop.permute.xlu0 %3738 }
0x354c   :  { %v8113_v56 = vadd.f32 %v3739_v34, %v3731_v55 }
0x354e   :  { %6870 = vtanh.f32 %v8113_v56 }
0x3558   :  { %v6871_v13 = vpop.eup %6870 }
0x3559   :  { %3744 = vrot.lane.b32.xlu1 %v6871_v13, %s6996_s29 }
0x35cb   :  { %v3745_v61 = vpop.permute.xlu1 %3744 }
0x35cc   :  { %v3747_v46 = vmul.f32 %v3745_v61, %v3730_v52 }
0x35ce   :  { %v3748_v63 = vpack.c.bf16 %v3747_v46, %v3747_v46 }
0x35d0   :  { %3810 = vrot.lane.b32.xlu1 %v3748_v63, %s6997_s30 }
0x3642   :  { %v8137_v8 = vpop.permute.xlu1 %3810 }
0x3643   :  { %6479 = vmatmul.mubr.msk.bf16.vlgmr.msra.gmra.mrb[108].mxu1 %vm99_vm6, %v8137_v8 }
0x3716   :  { %v3861_v10 = vpop.f32.mrb[108].mxu1 }
0x3717   :  { %v3862_v15 = vadd.f32 %v3861_v10, %v3803_v4  ;;  %v6480_v12 = vpop.f32.mrb[109].mxu1 }
0x3718   :  { %v3864_v24 = vpop.f32.mrb[110].mxu1 }
0x3719   :  { %v3874_v51 = vadd.f32 %v5671_v11, %v3862_v15  ;;  %v6481_v16 = vpop.f32.mrb[111].mxu1 }
0x371b   :  { %v3875_v17 = vmul.f32 0.5, %v3874_v51 }
0x371d   :  { %v3876_v20 = vsel %vm7164_vm5, %v3874_v51, %v3875_v17 }
0x371e   :  { %6872 = vtanh.f32 %v3876_v20 }
0x3728   :  { %v6873_v42 = vpop.eup %6872 }
0x3729   :  { %v3878_v21 = vmul.f32 0.5, %v6873_v42 }
0x372b   :  { %v3879_v60 = vadd.f32 0.5, %v3878_v21 }
0x372d   :  { %v3880_v22 = vsel %vm7164_vm5, %v6873_v42, %v3879_v60 }
0x372e   :  { %3883 = vrot.lane.b32.xlu0 %v3880_v22, %s6996_s29  ;;  %v3881_v25 = vmul.f32 %v3880_v22, %v8017_v9 }
0x37a0   :  { %v3884_v62 = vpop.permute.xlu0 %3883 }
0x37a1   :  { %v3886_v38 = vmul.f32 %v3884_v62, %v3880_v22 }
0x37a3   :  { %3888 = vrot.lane.b32.xlu1 %v3886_v38, %s6997_s30 }
0x3815   :  { %v3889_v30 = vpop.permute.xlu1 %3888 }
0x3816   :  { %v8151_v35 = vadd.f32 %v3889_v30, %v3881_v25 }
0x3818   :  { %6874 = vtanh.f32 %v8151_v35 }
0x3822   :  { %v6875_v40 = vpop.eup %6874 }
0x3823   :  { %3894 = vrot.lane.b32.xlu0 %v6875_v40, %s6996_s29 }
0x3827   :  { %3978 = vperm.xlu0 (!%p5677_p11), %6876, %v5678_v2  }
0x3895   :  { %v3895_v9 = vpop.permute.xlu0 %3894 }
0x3896   :  { %v3897_v28 = vmul.f32 %v3895_v9, %v3880_v22 }
0x3898   :  { %v3898_v23 = vpack.c.bf16 %v3897_v28, %v3897_v28 }
0x389a   :  { %3911 = vrot.lane.b32.xlu1 %v3898_v23, %s6997_s30 }
0x38a6   :  { %v3979_v3 = vpop.permute.xlu0 (!%p5677_p11), %3978 }
0x38a7   :  { %vm3980_vm9 = vcmp.eq.s32.totalorder (!%p5677_p11), %v7153_v7, %v3979_v3 }
0x38a8   :  { %v5679_v45 = vsel (!%p5677_p11), %vm3980_vm9, 1.0, %v7008_v44 }
0x38a9   :  { %3983 = vst [vmem:[#allocation2] sm:$0xff] (!%p5677_p11), %v5679_v45 }
0x390c   :  { %v8163_v26 = vpop.permute.xlu1 %3911 }
0x390d   :  { %6487 = vmatmul.mubr.msk.bf16.vlgmr.msra.gmra.mrb[108].mxu0 %vm99_vm6, %v8163_v26 }
0x39dd   :  { %3974 = sbr.rel (%p5677_p11) target bundleno = 14820 (0x39e4), region = 105 }
0x39e0   :  { %v3962_v39 = vpop.f32.mrb[108].mxu0 }
0x39e1   :  { %v3963_v29 = vadd.f32 %v5672_v41, %v3962_v39  ;;  %v6488_v43 = vpop.f32.mrb[109].mxu0 }
0x39e2   :  { %v3965_v18 = vpop.f32.mrb[110].mxu0 }
0x39e3   :  { %3969 = vst [vmem:[#allocation6 + $0x20] sm:$0xff] %v3963_v29  ;;  %v6489_v0 = vpop.f32.mrb[111].mxu0 }
0x39e4 PF:  { %p5680_p12 = scmp.ne.s32.totalorder %s5676_s19, 0 }
0x39e5   :  { %v3988_v50 = vsel (!%p5680_p12), %vm79_vm2, %v3963_v29, -1e+30  ;;  %v7009_v13 = vmov (!%p5680_p12), 0.0  }
0x39e6   :  { %3987 = sbr.rel (%p5680_p12) target bundleno = 15263 (0x3b9f), region = 109  ;;  %3989 = vmax.xlane.f32.xlu0 (!%p5680_p12), %v3988_v50 }
0x3a73   :  { %v3990_v33 = vpop.xlane.xlu0 %3989 }
0x3a74   :  { %vm3991_vm10 = vcmp.eq.f32.partialorder %v3988_v50, %v3990_v33 }
0x3a75   :  { %v3992_v47 = vsel %vm3991_vm10, %v7153_v7, 128 }
0x3a76   :  { %v3994_v49 = vshra.s32 %v3992_v47, 16  ;;  %v3993_v27 = vand.u32 65535, %v3992_v47 }
0x3a78   :  { %v3996_v32 = vcvt.s32.f32 %v3994_v49  ;;  %v3995_v53 = vcvt.s32.f32 %v3993_v27 }
0x3a7a   :  { %3997 = vmin.xlane.f32.xlu0 %v3996_v32 }
0x3b07   :  { %v3998_v52 = vpop.xlane.xlu0 %3997 }
0x3b08   :  { %vm3999_vm11 = vcmp.eq.f32.partialorder %v3996_v32, %v3998_v52  ;;  %v4004_v55 = vcvt.f32.s32 %v3998_v52 }
0x3b09   :  { %v4000_v54 = vsel %vm3999_vm11, %v3995_v53, inf }
0x3b0a   :  { %4001 = vmin.xlane.f32.xlu1 %v4000_v54  ;;  %v4005_v57 = vshll.u32 %v4004_v55, 16 }
0x3b97   :  { %v4002_v34 = vpop.xlane.xlu1 %4001 }
0x3b98   :  { %v4003_v58 = vcvt.f32.s32 %v4002_v34 }
0x3b9a   :  { %v4006_v14 = vadd.s32 %v4005_v57, %v4003_v58 }
0x3b9c   :  { %vm4007_vm12 = vcmp.eq.s32.totalorder %v7153_v7, %v4006_v14 }
0x3b9d   :  { %v5681_v59 = vsel %vm4007_vm12, 1.0, %v7009_v13 }
0x3b9e   :  { %4010 = vst [vmem:[#allocation2] sm:$0xff] %v5681_v59 }
0x3b9f PF:  { %6490 = vmatprep.subr.bf16.mxu1 %v6993_v1  ;;  %v6877_v61 = vld [vmem:[%s8587_s15] sm:$0xff]   ;;  %6506 = vmatprep.mubr.msk.bf16.mxu1 %vm6994_vm0, %v6993_v1  ;;  %v6878_v46 = vld [vmem:[%s8587_s15 + $0x8] sm:$0xff]   ;;  %v6879_v63 = vld [vmem:[%s8587_s15 + $0x10] sm:$0xff]   ;;  %s5707_s21 = sld [smem:[#allocation3 + $0x5]] }
0x3ba0   :  { %6510 = vmatprep.subr.bf16.mxu0 %v6993_v1  ;;  %6514 = vmatprep.mubr.msk.bf16.mxu0 %vm6994_vm0, %v6993_v1  ;;  %v6885_v4 = vld [vmem:[%s8583_s11] sm:$0xff]   ;;  %v6880_v5 = vld [vmem:[%s8587_s15 + $0x18] sm:$0xff]   ;;  %v6886_v6 = vld [vmem:[%s8583_s11 + $0x8] sm:$0xff]  }
0x3ba1   :  { %6491 = vmatpush3.bf16.msra.mxu1 %v6877_v61  ;;  %6511 = vmatpush3.bf16.msra.mxu0 %v6885_v4  ;;  %v6881_v48 = vld [vmem:[%s8587_s15 + $0x20] sm:$0xff]   ;;  %v6882_v11 = vld [vmem:[%s8587_s15 + $0x28] sm:$0xff]   ;;  %v6883_v15 = vld [vmem:[%s8587_s15 + $0x30] sm:$0xff]  }
0x3ba2   :  { %6492 = vmatprep.subr.bf16.mxu1 %v6993_v1  ;;  %6512 = vmatprep.subr.bf16.mxu0 %v6993_v1  ;;  %v6887_v10 = vld [vmem:[%s8581_s9] sm:$0xff]   ;;  %v6889_v45 = vld [vmem:[%s8584_s12 + $0x8] sm:$0xff]  }
0x3ba3   :  { %v5695_v25 = vld [vmem:[%s8585_s13] ss:$0 sm:$0xff]  ;;  %v6891_v33 = vld [vmem:[%s8582_s10 + $0x8] sm:$0xff]  }
0x3ba4   :  { %v6888_v44 = vld [vmem:[%s8584_s12] sm:$0xff]  }
0x3ba5   :  { %6493 = vmatpush3.bf16.msra.mxu1 %v6878_v46  ;;  %6513 = vmatpush3.bf16.msra.mxu0 %v6886_v6  ;;  %v4011_v12 = vld [vmem:[#allocation2] sm:$0xff]  ;;  %p5708_p13 = scmp.le.s32.totalorder %s5707_s21, 0 }
0x3ba6   :  { %6494 = vmatprep.subr.bf16.mxu1 %v6993_v1  ;;  %6518 = vmatprep.subr.bf16.mxu0 %v6993_v1  ;;  %v4012_v24 = vpack.c.bf16 %v4011_v12, %v4011_v12  ;;  %v5702_v34 = vld [vmem:[%s8586_s14] ss:$0 sm:$0xff]  ;;  %s8604_s25 = sld [smem:[#allocation11_spill]] (!%p5708_p13) }
0x3ba7   :  { %v6892_v12 = vld [vmem:[%s8588_s16] sm:$0xff]  }
0x3ba8   :  { %6515 = vmatmul.mubr.msk.bf16.vlgmr.msra.gmra.mrb[112].mxu0 %vm99_vm6, %v8137_v8  ;;  %v6884_v8 = vld [vmem:[%s8587_s15 + $0x38] sm:$0xff]  }
0x3ba9   :  { %6495 = vmatpush3.bf16.msra.mxu1 %v6879_v63  ;;  %6519 = vmatpush3.bf16.msra.mxu0 %v6887_v10 }
0x3baa   :  { %6496 = vmatprep.subr.bf16.mxu1 %v6993_v1  ;;  %6520 = vmatprep.mubr.msk.bf16.mxu0 %vm6994_vm0, %v6993_v1 }
0x3bab   :  { %6524 = vmatprep.subr.bf16.mxu0 %v6993_v1 }
0x3bad   :  { %6497 = vmatpush3.bf16.msra.mxu1 %v6880_v5 }
0x3bae   :  { %6498 = vmatprep.subr.bf16.mxu1 %v6993_v1 }
0x3bb1   :  { %6499 = vmatpush3.bf16.msra.mxu1 %v6881_v48 }
0x3bb2   :  { %6500 = vmatprep.subr.bf16.mxu1 %v6993_v1 }
0x3bb5   :  { %6501 = vmatpush3.bf16.msra.mxu1 %v6882_v11 }
0x3bb6   :  { %6502 = vmatprep.subr.bf16.mxu1 %v6993_v1 }
0x3bb9   :  { %6503 = vmatpush3.bf16.msra.mxu1 %v6883_v15 }
0x3bba   :  { %6504 = vmatprep.subr.bf16.mxu1 %v6993_v1 }
0x3bbd   :  { %6505 = vmatpush3.bf16.msra.mxu1 %v6884_v8 }
0x3bbe   :  { %6540 = vmatprep.subr.bf16.mxu1 %v6993_v1 }
0x3bc0   :  { %6507 = vmatmul.mubr.bf16.vlgmr.msra.gmra.mrb[112].mxu1 %v4012_v24  ;;  %v6893_v24 = vld [vmem:[%s8588_s16 + $0x8] sm:$0xff]  }
0x3bc1   :  { %6544 = vmatprep.mubr.msk.bf16.mxu1 %vm6994_vm0, %v6993_v1  ;;  %6541 = vmatpush3.bf16.msra.mxu1 %v6892_v12 }
0x3bc2   :  { %6542 = vmatprep.subr.bf16.mxu1 %v6993_v1 }
0x3bc5   :  { %6543 = vmatpush3.bf16.msra.mxu1 %v6893_v24 }
0x3c7b   :  { %v4170_v51 = vpop.f32.mrb[112].mxu0 }
0x3c7c   :  { %v6516_v16 = vpop.f32.mrb[113].mxu0 }
0x3c7d   :  { %v4173_v17 = vpop.f32.mrb[114].mxu0 }
0x3c7e   :  { %v6517_v20 = vpop.f32.mrb[115].mxu0 }
0x3c93   :  { %v4111_v42 = vpop.f32.mrb[112].mxu1 }
0x3c94   :  { %v4117_v21 = vpack.c.bf16 %v4111_v42, %v4111_v42  ;;  %v6508_v60 = vpop.f32.mrb[113].mxu1  ;;  %v5703_v42 = vld [vmem:[%s8589_s17] ss:$0 sm:$0xff] }
0x3c95   :  { %v4114_v22 = vpop.f32.mrb[114].mxu1 }
0x3c96   :  { %v6509_v62 = vpop.f32.mrb[115].mxu1  ;;  %6521 = vmatmul.mubr.msk.bf16.vlgmr.msra.gmra.mrb[116].mxu0 %vm149_vm1, %v4117_v21 }
0x3c97   :  { %6528 = vmatprep.mubr.msk.bf16.mxu0 %vm6994_vm0, %v6993_v1  ;;  %6525 = vmatpush3.bf16.msra.mxu0 %v6888_v44 }
0x3c98   :  { %6526 = vmatprep.subr.bf16.mxu0 %v6993_v1 }
0x3c9b   :  { %6527 = vmatpush3.bf16.msra.mxu0 %v6889_v45 }
0x3c9c   :  { %6532 = vmatprep.subr.bf16.mxu0 %v6993_v1 }
0x3c9e   :  { %6529 = vmatmul.mubr.msk.bf16.vlgmr.msra.gmra.mrb[120].mxu0 %vm99_vm6, %v8163_v26 }
0x3c9f   :  { %6536 = vmatprep.mubr.msk.bf16.mxu0 %vm6994_vm0, %v6993_v1 }
0x3d69   :  { %v4219_v38 = vpop.f32.mrb[116].mxu0 }
0x3d6a   :  { %v4220_v30 = vadd.f32 %v4219_v38, %v4170_v51  ;;  %v6522_v36 = vpop.f32.mrb[117].mxu0 }
0x3d6b   :  { %v4222_v37 = vpop.f32.mrb[118].mxu0 }
0x3d6c   :  { %v4232_v40 = vadd.f32 %v5695_v25, %v4220_v30  ;;  %v6523_v9 = vpop.f32.mrb[119].mxu0  ;;  %v5709_v25 = vld [vmem:[%s8604_s25 + $0x28] sm:$0xff] (!%p5708_p13)  ;;  %v7010_v30 = vmov (!%p5708_p13), 0   ;;  %v7011_v37 = vmov (!%p5708_p13), 0.0  }
0x3d6d   :  { %6902 = vset.pattern.permute.xlu0 (!%p5708_p13), %v7010_v30 }
0x3d6e   :  { %v4233_v28 = vmul.f32 0.5, %v4232_v40 }
0x3d70   :  { %v4234_v23 = vsel %vm7164_vm5, %v4232_v40, %v4233_v28 }
0x3d71   :  { %6894 = vtanh.f32 %v4234_v23  ;;  %v4311_v27 = vpop.f32.mrb[120].mxu0 }
0x3d72   :  { %v6530_v52 = vpop.f32.mrb[121].mxu0 }
0x3d73   :  { %v4314_v53 = vpop.f32.mrb[122].mxu0 }
0x3d74   :  { %v6531_v26 = vpop.f32.mrb[123].mxu0 }
0x3d7b   :  { %v6895_v41 = vpop.eup %6894 }
0x3d7c   :  { %v4236_v39 = vmul.f32 0.5, %v6895_v41 }
0x3d7e   :  { %v4237_v29 = vadd.f32 0.5, %v4236_v39 }
0x3d80   :  { %v4238_v43 = vsel %vm7164_vm5, %v6895_v41, %v4237_v29 }
0x3d81   :  { %4241 = vrot.lane.b32.xlu0 %v4238_v43, %s6996_s29  ;;  %v4239_v2 = vmul.f32 %v4238_v43, %v8113_v56  ;;  %v6890_v56 = vld [vmem:[%s8582_s10] sm:$0xff]  }
0x3d82   :  { %6533 = vmatpush3.bf16.msra.mxu0 %v6890_v56 }
0x3d83   :  { %6534 = vmatprep.subr.bf16.mxu0 %v6993_v1 }
0x3d86   :  { %6535 = vmatpush3.bf16.msra.mxu0 %v6891_v33 }
0x3df3   :  { %v4242_v18 = vpop.permute.xlu0 %4241 }
0x3df4   :  { %v4244_v0 = vmul.f32 %v4242_v18, %v4238_v43 }
0x3df6   :  { %4246 = vrot.lane.b32.xlu0 %v4244_v0, %s6997_s30 }
0x3e68   :  { %v4247_v31 = vpop.permute.xlu0 %4246 }
0x3e69   :  { %v8247_v3 = vadd.f32 %v4247_v31, %v4239_v2 }
0x3e6b   :  { %6896 = vtanh.f32 %v8247_v3 }
0x3e75   :  { %v6897_v50 = vpop.eup %6896 }
0x3e76   :  { %4252 = vrot.lane.b32.xlu1 %v6897_v50, %s6996_s29 }
0x3ee8   :  { %v4253_v47 = vpop.permute.xlu1 %4252 }
0x3ee9   :  { %v4255_v49 = vmul.f32 %v4253_v47, %v4238_v43 }
0x3eeb   :  { %v4256_v32 = vpack.c.bf16 %v4255_v49, %v4255_v49 }
0x3eed   :  { %4318 = vrot.lane.b32.xlu1 %v4256_v32, %s6997_s30 }
0x3f5f   :  { %v8271_v54 = vpop.permute.xlu1 %4318 }
0x3f60   :  { %6537 = vmatmul.mubr.msk.bf16.vlgmr.msra.gmra.mrb[124].mxu0 %vm99_vm6, %v8271_v54 }
0x4033   :  { %v4369_v55 = vpop.f32.mrb[124].mxu0 }
0x4034   :  { %v4370_v57 = vadd.f32 %v4369_v55, %v4311_v27  ;;  %v6538_v58 = vpop.f32.mrb[125].mxu0 }
0x4035   :  { %v4372_v14 = vpop.f32.mrb[126].mxu0 }
0x4036   :  { %v4382_v13 = vadd.f32 %v5702_v34, %v4370_v57  ;;  %v6539_v59 = vpop.f32.mrb[127].mxu0 }
0x4038   :  { %v4383_v61 = vmul.f32 0.5, %v4382_v13 }
0x403a   :  { %v4384_v46 = vsel %vm7164_vm5, %v4382_v13, %v4383_v61 }
0x403b   :  { %6898 = vtanh.f32 %v4384_v46 }
0x4045   :  { %v6899_v63 = vpop.eup %6898 }
0x4046   :  { %v4386_v4 = vmul.f32 0.5, %v6899_v63 }
0x4048   :  { %v4387_v5 = vadd.f32 0.5, %v4386_v4 }
0x404a   :  { %v4388_v6 = vsel %vm7164_vm5, %v6899_v63, %v4387_v5 }
0x404b   :  { %4391 = vrot.lane.b32.xlu0 %v4388_v6, %s6996_s29  ;;  %v4389_v11 = vmul.f32 %v4388_v6, %v8151_v35 }
0x40bd   :  { %v4392_v48 = vpop.permute.xlu0 %4391 }
0x40be   :  { %v4394_v10 = vmul.f32 %v4392_v48, %v4388_v6 }
0x40c0   :  { %4396 = vrot.lane.b32.xlu1 %v4394_v10, %s6997_s30 }
0x4132   :  { %v4397_v15 = vpop.permute.xlu1 %4396 }
0x4133   :  { %v8285_v8 = vadd.f32 %v4397_v15, %v4389_v11 }
0x4135   :  { %6900 = vtanh.f32 %v8285_v8 }
0x413f   :  { %v6901_v51 = vpop.eup %6900 }
0x4140   :  { %4402 = vrot.lane.b32.xlu0 %v6901_v51, %s6996_s29 }
0x4144   :  { %4486 = vperm.xlu0 (!%p5708_p13), %6902, %v5709_v25  }
0x41b2   :  { %v4403_v35 = vpop.permute.xlu0 %4402 }
0x41b3   :  { %v4405_v16 = vmul.f32 %v4403_v35, %v4388_v6 }
0x41b5   :  { %v4406_v17 = vpack.c.bf16 %v4405_v16, %v4405_v16 }
0x41b7   :  { %4419 = vrot.lane.b32.xlu1 %v4406_v17, %s6997_s30 }
0x41c3   :  { %v4487_v36 = vpop.permute.xlu0 (!%p5708_p13), %4486 }
0x41c4   :  { %vm4488_vm13 = vcmp.eq.s32.totalorder (!%p5708_p13), %v7153_v7, %v4487_v36 }
0x41c5   :  { %v5710_v40 = vsel (!%p5708_p13), %vm4488_vm13, 1.0, %v7011_v37 }
0x41c6   :  { %4491 = vst [vmem:[#allocation2] sm:$0xff] (!%p5708_p13), %v5710_v40 }
0x4229   :  { %v8297_v20 = vpop.permute.xlu1 %4419 }
0x422a   :  { %6545 = vmatmul.mubr.msk.bf16.vlgmr.msra.gmra.mrb[116].mxu1 %vm99_vm6, %v8297_v20 }
0x42fa   :  { %4482 = sbr.rel (%p5708_p13) target bundleno = 17153 (0x4301), region = 113 }
0x42fd   :  { %v4470_v21 = vpop.f32.mrb[116].mxu1 }
0x42fe   :  { %v4471_v60 = vadd.f32 %v5703_v42, %v4470_v21  ;;  %v6546_v22 = vpop.f32.mrb[117].mxu1 }
0x42ff   :  { %v4473_v62 = vpop.f32.mrb[118].mxu1 }
0x4300   :  { %4477 = vst [vmem:[#allocation6 + $0x28] sm:$0xff] %v4471_v60  ;;  %v6547_v38 = vpop.f32.mrb[119].mxu1 }
0x4301 PF:  { %p5711_p0 = scmp.ne.s32.totalorder %s5707_s21, 0 }
0x4302   :  { %v4496_v9 = vsel (!%p5711_p0), %vm79_vm2, %v4471_v60, -1e+30  ;;  %v7012_v50 = vmov (!%p5711_p0), 0.0  }
0x4303   :  { %4495 = sbr.rel (%p5711_p0) target bundleno = 17596 (0x44bc), region = 117  ;;  %4497 = vmax.xlane.f32.xlu0 (!%p5711_p0), %v4496_v9 }
0x4390   :  { %v4498_v28 = vpop.xlane.xlu0 %4497 }
0x4391   :  { %vm4499_vm14 = vcmp.eq.f32.partialorder %v4496_v9, %v4498_v28 }
0x4392   :  { %v4500_v23 = vsel %vm4499_vm14, %v7153_v7, 128 }
0x4393   :  { %v4502_v41 = vshra.s32 %v4500_v23, 16  ;;  %v4501_v29 = vand.u32 65535, %v4500_v23 }
0x4395   :  { %v4504_v39 = vcvt.s32.f32 %v4502_v41  ;;  %v4503_v18 = vcvt.s32.f32 %v4501_v29 }
0x4397   :  { %4505 = vmin.xlane.f32.xlu0 %v4504_v39 }
0x4424   :  { %v4506_v43 = vpop.xlane.xlu0 %4505 }
0x4425   :  { %vm4507_vm15 = vcmp.eq.f32.partialorder %v4504_v39, %v4506_v43  ;;  %v4512_v2 = vcvt.f32.s32 %v4506_v43 }
0x4426   :  { %v4508_v0 = vsel %vm4507_vm15, %v4503_v18, inf }
0x4427   :  { %4509 = vmin.xlane.f32.xlu1 %v4508_v0  ;;  %v4513_v44 = vshll.u32 %v4512_v2, 16 }
0x44b4   :  { %v4510_v31 = vpop.xlane.xlu1 %4509 }
0x44b5   :  { %v4511_v45 = vcvt.f32.s32 %v4510_v31 }
0x44b7   :  { %v4514_v56 = vadd.s32 %v4513_v44, %v4511_v45 }
0x44b9   :  { %vm4515_vm3 = vcmp.eq.s32.totalorder %v7153_v7, %v4514_v56 }
0x44ba   :  { %v5712_v33 = vsel %vm4515_vm3, 1.0, %v7012_v50 }
0x44bb   :  { %4518 = vst [vmem:[#allocation2] sm:$0xff] %v5712_v33 }
0x44bc PF:  { %6548 = vmatprep.subr.bf16.mxu0 %v6993_v1  ;;  %v6903_v47 = vld [vmem:[%s8587_s15] sm:$0xff]   ;;  %6564 = vmatprep.mubr.msk.bf16.mxu0 %vm6994_vm0, %v6993_v1  ;;  %v6904_v49 = vld [vmem:[%s8587_s15 + $0x8] sm:$0xff]   ;;  %v6905_v32 = vld [vmem:[%s8587_s15 + $0x10] sm:$0xff]   ;;  %s5738_s27 = sld [smem:[#allocation3 + $0x6]] }
0x44bd   :  { %6568 = vmatprep.subr.bf16.mxu1 %v6993_v1  ;;  %6572 = vmatprep.mubr.msk.bf16.mxu1 %vm6994_vm0, %v6993_v1  ;;  %v6911_v27 = vld [vmem:[%s8583_s11] sm:$0xff]   ;;  %v6906_v52 = vld [vmem:[%s8587_s15 + $0x18] sm:$0xff]   ;;  %v6912_v53 = vld [vmem:[%s8583_s11 + $0x8] sm:$0xff]  }
0x44be   :  { %6549 = vmatpush3.bf16.msra.mxu0 %v6903_v47  ;;  %6569 = vmatpush3.bf16.msra.mxu1 %v6911_v27  ;;  %v6907_v26 = vld [vmem:[%s8587_s15 + $0x20] sm:$0xff]   ;;  %v6908_v34 = vld [vmem:[%s8587_s15 + $0x28] sm:$0xff]   ;;  %v6909_v57 = vld [vmem:[%s8587_s15 + $0x30] sm:$0xff]  }
0x44bf   :  { %6550 = vmatprep.subr.bf16.mxu0 %v6993_v1  ;;  %6570 = vmatprep.subr.bf16.mxu1 %v6993_v1  ;;  %v6913_v55 = vld [vmem:[%s8581_s9] sm:$0xff]   ;;  %v6915_v40 = vld [vmem:[%s8584_s12 + $0x8] sm:$0xff]  }
0x44c0   :  { %v5726_v11 = vld [vmem:[%s8585_s13] ss:$0 sm:$0xff]  ;;  %v6917_v28 = vld [vmem:[%s8582_s10 + $0x8] sm:$0xff]  }
0x44c1   :  { %v6914_v37 = vld [vmem:[%s8584_s12] sm:$0xff]  }
0x44c2   :  { %6551 = vmatpush3.bf16.msra.mxu0 %v6904_v49  ;;  %6571 = vmatpush3.bf16.msra.mxu1 %v6912_v53  ;;  %v4519_v58 = vld [vmem:[#allocation2] sm:$0xff]  ;;  %p5739_p1 = scmp.le.s32.totalorder %s5738_s27, 0 }
0x44c3   :  { %6552 = vmatprep.subr.bf16.mxu0 %v6993_v1  ;;  %6576 = vmatprep.subr.bf16.mxu1 %v6993_v1  ;;  %v4520_v14 = vpack.c.bf16 %v4519_v58, %v4519_v58  ;;  %v5733_v31 = vld [vmem:[%s8586_s14] ss:$0 sm:$0xff]  ;;  %s8605_s4 = sld [smem:[#allocation11_spill]] (!%p5739_p1) }
0x44c4   :  { %v6918_v58 = vld [vmem:[%s8588_s16] sm:$0xff]  }
0x44c5   :  { %6573 = vmatmul.mubr.msk.bf16.vlgmr.msra.gmra.mrb[120].mxu1 %vm99_vm6, %v8271_v54  ;;  %v6910_v54 = vld [vmem:[%s8587_s15 + $0x38] sm:$0xff]  }
0x44c6   :  { %6553 = vmatpush3.bf16.msra.mxu0 %v6905_v32  ;;  %6577 = vmatpush3.bf16.msra.mxu1 %v6913_v55 }
0x44c7   :  { %6554 = vmatprep.subr.bf16.mxu0 %v6993_v1  ;;  %6578 = vmatprep.mubr.msk.bf16.mxu1 %vm6994_vm0, %v6993_v1 }
0x44c8   :  { %6582 = vmatprep.subr.bf16.mxu1 %v6993_v1 }
0x44ca   :  { %6555 = vmatpush3.bf16.msra.mxu0 %v6906_v52 }
0x44cb   :  { %6556 = vmatprep.subr.bf16.mxu0 %v6993_v1 }
0x44ce   :  { %6557 = vmatpush3.bf16.msra.mxu0 %v6907_v26 }
0x44cf   :  { %6558 = vmatprep.subr.bf16.mxu0 %v6993_v1 }
0x44d2   :  { %6559 = vmatpush3.bf16.msra.mxu0 %v6908_v34 }
0x44d3   :  { %6560 = vmatprep.subr.bf16.mxu0 %v6993_v1 }
0x44d6   :  { %6561 = vmatpush3.bf16.msra.mxu0 %v6909_v57 }
0x44d7   :  { %6562 = vmatprep.subr.bf16.mxu0 %v6993_v1 }
0x44da   :  { %6563 = vmatpush3.bf16.msra.mxu0 %v6910_v54 }
0x44db   :  { %6598 = vmatprep.subr.bf16.mxu0 %v6993_v1 }
0x44dd   :  { %6565 = vmatmul.mubr.bf16.vlgmr.msra.gmra.mrb[128].mxu0 %v4520_v14  ;;  %v6919_v14 = vld [vmem:[%s8588_s16 + $0x8] sm:$0xff]  }
0x44de   :  { %6602 = vmatprep.mubr.msk.bf16.mxu0 %vm6994_vm0, %v6993_v1  ;;  %6599 = vmatpush3.bf16.msra.mxu0 %v6918_v58 }
0x44df   :  { %6600 = vmatprep.subr.bf16.mxu0 %v6993_v1 }
0x44e2   :  { %6601 = vmatpush3.bf16.msra.mxu0 %v6919_v14 }
0x4598   :  { %v4678_v13 = vpop.f32.mrb[120].mxu1 }
0x4599   :  { %v6574_v59 = vpop.f32.mrb[121].mxu1 }
0x459a   :  { %v4681_v61 = vpop.f32.mrb[122].mxu1 }
0x459b   :  { %v6575_v46 = vpop.f32.mrb[123].mxu1 }
0x45b0   :  { %v4619_v63 = vpop.f32.mrb[128].mxu0 }
0x45b1   :  { %v4625_v4 = vpack.c.bf16 %v4619_v63, %v4619_v63  ;;  %v6566_v5 = vpop.f32.mrb[129].mxu0  ;;  %v5734_v63 = vld [vmem:[%s8589_s17] ss:$0 sm:$0xff] }
0x45b2   :  { %v4622_v6 = vpop.f32.mrb[130].mxu0 }
0x45b3   :  { %v6567_v48 = vpop.f32.mrb[131].mxu0  ;;  %6579 = vmatmul.mubr.msk.bf16.vlgmr.msra.gmra.mrb[124].mxu1 %vm149_vm1, %v4625_v4 }
0x45b4   :  { %6586 = vmatprep.mubr.msk.bf16.mxu1 %vm6994_vm0, %v6993_v1  ;;  %6583 = vmatpush3.bf16.msra.mxu1 %v6914_v37 }
0x45b5   :  { %6584 = vmatprep.subr.bf16.mxu1 %v6993_v1 }
0x45b8   :  { %6585 = vmatpush3.bf16.msra.mxu1 %v6915_v40 }
0x45b9   :  { %6590 = vmatprep.subr.bf16.mxu1 %v6993_v1 }
0x45bb   :  { %6587 = vmatmul.mubr.msk.bf16.vlgmr.msra.gmra.mrb[128].mxu1 %vm99_vm6, %v8297_v20 }
0x45bc   :  { %6594 = vmatprep.mubr.msk.bf16.mxu1 %vm6994_vm0, %v6993_v1 }
0x4686   :  { %v4727_v10 = vpop.f32.mrb[124].mxu1 }
0x4687   :  { %v4728_v15 = vadd.f32 %v4727_v10, %v4678_v13  ;;  %v6580_v12 = vpop.f32.mrb[125].mxu1 }
0x4688   :  { %v4730_v24 = vpop.f32.mrb[126].mxu1 }
0x4689   :  { %v4740_v51 = vadd.f32 %v5726_v11, %v4728_v15  ;;  %v6581_v35 = vpop.f32.mrb[127].mxu1  ;;  %v5740_v11 = vld [vmem:[%s8605_s4 + $0x30] sm:$0xff] (!%p5739_p1)  ;;  %v7013_v15 = vmov (!%p5739_p1), 0   ;;  %v7014_v24 = vmov (!%p5739_p1), 0.0  }
0x468a   :  { %6928 = vset.pattern.permute.xlu0 (!%p5739_p1), %v7013_v15 }
0x468b   :  { %v4741_v16 = vmul.f32 0.5, %v4740_v51 }
0x468d   :  { %v4742_v17 = vsel %vm7164_vm5, %v4740_v51, %v4741_v16 }
0x468e   :  { %6920 = vtanh.f32 %v4742_v17  ;;  %v4819_v29 = vpop.f32.mrb[128].mxu1 }
0x468f   :  { %v6588_v43 = vpop.f32.mrb[129].mxu1 }
0x4690   :  { %v4822_v18 = vpop.f32.mrb[130].mxu1 }
0x4691   :  { %v6589_v20 = vpop.f32.mrb[131].mxu1 }
0x4698   :  { %v6921_v42 = vpop.eup %6920 }
0x4699   :  { %v4744_v21 = vmul.f32 0.5, %v6921_v42 }
0x469b   :  { %v4745_v60 = vadd.f32 0.5, %v4744_v21 }
0x469d   :  { %v4746_v22 = vsel %vm7164_vm5, %v6921_v42, %v4745_v60 }
0x469e   :  { %4749 = vrot.lane.b32.xlu0 %v4746_v22, %s6996_s29  ;;  %v4747_v25 = vmul.f32 %v4746_v22, %v8247_v3  ;;  %v6916_v3 = vld [vmem:[%s8582_s10] sm:$0xff]  }
0x469f   :  { %6591 = vmatpush3.bf16.msra.mxu1 %v6916_v3 }
0x46a0   :  { %6592 = vmatprep.subr.bf16.mxu1 %v6993_v1 }
0x46a3   :  { %6593 = vmatpush3.bf16.msra.mxu1 %v6917_v28 }
0x4710   :  { %v4750_v62 = vpop.permute.xlu0 %4749 }
0x4711   :  { %v4752_v38 = vmul.f32 %v4750_v62, %v4746_v22 }
0x4713   :  { %4754 = vrot.lane.b32.xlu0 %v4752_v38, %s6997_s30 }
0x4785   :  { %v4755_v30 = vpop.permute.xlu0 %4754 }
0x4786   :  { %v8381_v36 = vadd.f32 %v4755_v30, %v4747_v25 }
0x4788   :  { %6922 = vtanh.f32 %v8381_v36 }
0x4792   :  { %v6923_v9 = vpop.eup %6922 }
0x4793   :  { %4760 = vrot.lane.b32.xlu1 %v6923_v9, %s6996_s29 }
0x4805   :  { %v4761_v23 = vpop.permute.xlu1 %4760 }
0x4806   :  { %v4763_v41 = vmul.f32 %v4761_v23, %v4746_v22 }
0x4808   :  { %v4764_v39 = vpack.c.bf16 %v4763_v41, %v4763_v41 }
0x480a   :  { %4826 = vrot.lane.b32.xlu1 %v4764_v39, %s6997_s30 }
0x487c   :  { %v8405_v0 = vpop.permute.xlu1 %4826 }
0x487d   :  { %6595 = vmatmul.mubr.msk.bf16.vlgmr.msra.gmra.mrb[132].mxu1 %vm99_vm6, %v8405_v0 }
0x4950   :  { %v4877_v2 = vpop.f32.mrb[132].mxu1 }
0x4951   :  { %v4878_v44 = vadd.f32 %v4877_v2, %v4819_v29  ;;  %v6596_v45 = vpop.f32.mrb[133].mxu1 }
0x4952   :  { %v4880_v56 = vpop.f32.mrb[134].mxu1 }
0x4953   :  { %v4890_v50 = vadd.f32 %v5733_v31, %v4878_v44  ;;  %v6597_v33 = vpop.f32.mrb[135].mxu1 }
0x4955   :  { %v4891_v47 = vmul.f32 0.5, %v4890_v50 }
0x4957   :  { %v4892_v49 = vsel %vm7164_vm5, %v4890_v50, %v4891_v47 }
0x4958   :  { %6924 = vtanh.f32 %v4892_v49 }
0x4962   :  { %v6925_v32 = vpop.eup %6924 }
0x4963   :  { %v4894_v27 = vmul.f32 0.5, %v6925_v32 }
0x4965   :  { %v4895_v52 = vadd.f32 0.5, %v4894_v27 }
0x4967   :  { %v4896_v53 = vsel %vm7164_vm5, %v6925_v32, %v4895_v52 }
0x4968   :  { %4899 = vrot.lane.b32.xlu0 %v4896_v53, %s6996_s29  ;;  %v4897_v34 = vmul.f32 %v4896_v53, %v8285_v8 }
0x49da   :  { %v4900_v26 = vpop.permute.xlu0 %4899 }
0x49db   :  { %v4902_v55 = vmul.f32 %v4900_v26, %v4896_v53 }
0x49dd   :  { %4904 = vrot.lane.b32.xlu1 %v4902_v55, %s6997_s30 }
0x4a4f   :  { %v4905_v57 = vpop.permute.xlu1 %4904 }
0x4a50   :  { %v8419_v54 = vadd.f32 %v4905_v57, %v4897_v34 }
0x4a52   :  { %6926 = vtanh.f32 %v8419_v54 }
0x4a5c   :  { %v6927_v13 = vpop.eup %6926 }
0x4a5d   :  { %4910 = vrot.lane.b32.xlu0 %v6927_v13, %s6996_s29 }
0x4a61   :  { %4994 = vperm.xlu0 (!%p5739_p1), %6928, %v5740_v11  }
0x4acf   :  { %v4911_v8 = vpop.permute.xlu0 %4910 }
0x4ad0   :  { %v4913_v59 = vmul.f32 %v4911_v8, %v4896_v53 }
0x4ad2   :  { %v4914_v61 = vpack.c.bf16 %v4913_v59, %v4913_v59 }
0x4ad4   :  { %4927 = vrot.lane.b32.xlu1 %v4914_v61, %s6997_s30 }
0x4ae0   :  { %v4995_v12 = vpop.permute.xlu0 (!%p5739_p1), %4994 }
0x4ae1   :  { %vm4996_vm4 = vcmp.eq.s32.totalorder (!%p5739_p1), %v7153_v7, %v4995_v12 }
0x4ae2   :  { %v5741_v51 = vsel (!%p5739_p1), %vm4996_vm4, 1.0, %v7014_v24 }
0x4ae3   :  { %4999 = vst [vmem:[#allocation2] sm:$0xff] (!%p5739_p1), %v5741_v51 }
0x4b46   :  { %v8431_v46 = vpop.permute.xlu1 %4927 }
0x4b47   :  { %6603 = vmatmul.mubr.msk.bf16.vlgmr.msra.gmra.mrb[132].mxu0 %vm99_vm6, %v8431_v46 }
0x4c17   :  { %4990 = sbr.rel (%p5739_p1) target bundleno = 19486 (0x4c1e), region = 121 }
0x4c1a   :  { %v4978_v4 = vpop.f32.mrb[132].mxu0 }
0x4c1b   :  { %v4979_v5 = vadd.f32 %v5734_v63, %v4978_v4  ;;  %v6604_v6 = vpop.f32.mrb[133].mxu0 }
0x4c1c   :  { %v4981_v48 = vpop.f32.mrb[134].mxu0 }
0x4c1d   :  { %4985 = vst [vmem:[#allocation6 + $0x30] sm:$0xff] %v4979_v5  ;;  %v6605_v10 = vpop.f32.mrb[135].mxu0 }
0x4c1e PF:  { %p5742_p2 = scmp.ne.s32.totalorder %s5738_s27, 0 }
0x4c1f   :  { %v5004_v35 = vsel (!%p5742_p2), %vm79_vm2, %v4979_v5, -1e+30  ;;  %v7015_v9 = vmov (!%p5742_p2), 0.0  }
0x4c20   :  { %5003 = sbr.rel (%p5742_p2) target bundleno = 19929 (0x4dd9), region = 125  ;;  %5005 = vmax.xlane.f32.xlu0 (!%p5742_p2), %v5004_v35 }
0x4cad   :  { %v5006_v16 = vpop.xlane.xlu0 %5005 }
0x4cae   :  { %vm5007_vm7 = vcmp.eq.f32.partialorder %v5004_v35, %v5006_v16 }
0x4caf   :  { %v5008_v17 = vsel %vm5007_vm7, %v7153_v7, 128 }
0x4cb0   :  { %v5010_v42 = vshra.s32 %v5008_v17, 16  ;;  %v5009_v60 = vand.u32 65535, %v5008_v17 }
0x4cb2   :  { %v5012_v21 = vcvt.s32.f32 %v5010_v42  ;;  %v5011_v62 = vcvt.s32.f32 %v5009_v60 }
0x4cb4   :  { %5013 = vmin.xlane.f32.xlu0 %v5012_v21 }
0x4d41   :  { %v5014_v22 = vpop.xlane.xlu0 %5013 }
0x4d42   :  { %vm5015_vm8 = vcmp.eq.f32.partialorder %v5012_v21, %v5014_v22  ;;  %v5020_v25 = vcvt.f32.s32 %v5014_v22 }
0x4d43   :  { %v5016_v38 = vsel %vm5015_vm8, %v5011_v62, inf }
0x4d44   :  { %5017 = vmin.xlane.f32.xlu1 %v5016_v38  ;;  %v5021_v37 = vshll.u32 %v5020_v25, 16 }
0x4dd1   :  { %v5018_v30 = vpop.xlane.xlu1 %5017 }
0x4dd2   :  { %v5019_v40 = vcvt.f32.s32 %v5018_v30 }
0x4dd4   :  { %v5022_v3 = vadd.s32 %v5021_v37, %v5019_v40 }
0x4dd6   :  { %vm5023_vm2 = vcmp.eq.s32.totalorder %v7153_v7, %v5022_v3 }
0x4dd7   :  { %v5743_v28 = vsel %vm5023_vm2, 1.0, %v7015_v9 }
0x4dd8   :  { %5026 = vst [vmem:[#allocation2] sm:$0xff] %v5743_v28 }
0x4dd9 PF:  { %6606 = vmatprep.subr.bf16.mxu1 %v6993_v1  ;;  %v6929_v23 = vld [vmem:[%s8587_s15] sm:$0xff]   ;;  %6622 = vmatprep.mubr.msk.bf16.mxu1 %vm6994_vm0, %v6993_v1  ;;  %v6930_v7 = vld [vmem:[%s8587_s15 + $0x8] sm:$0xff]   ;;  %v6931_v41 = vld [vmem:[%s8587_s15 + $0x10] sm:$0xff]   ;;  %s7016_s25 = smov [#allocation6]  }
0x4dda   :  { %6626 = vmatprep.subr.bf16.mxu0 %v6993_v1  ;;  %6630 = vmatprep.mubr.msk.bf16.mxu0 %vm6994_vm0, %v6993_v1  ;;  %v6937_v39 = vld [vmem:[%s8583_s11] sm:$0xff]   ;;  %v6932_v29 = vld [vmem:[%s8587_s15 + $0x18] sm:$0xff]   ;;  %v6938_v43 = vld [vmem:[%s8583_s11 + $0x8] sm:$0xff]   ;;  %s5499_s27 = sshll.u32 %s7016_s25, 4  ;;  %s5500_s27 = int_to_ptr.vmem [resolvable:$true] %s5499_s27 }
0x4ddb   :  { %6607 = vmatpush3.bf16.msra.mxu1 %v6929_v23  ;;  %6627 = vmatpush3.bf16.msra.mxu0 %v6937_v39  ;;  %v6933_v18 = vld [vmem:[%s8587_s15 + $0x20] sm:$0xff]   ;;  %v6934_v2 = vld [vmem:[%s8587_s15 + $0x28] sm:$0xff]   ;;  %v6935_v31 = vld [vmem:[%s8587_s15 + $0x30] sm:$0xff]   ;;  %p6971_p4 = scmp.lt.s32.totalorder %s5500_s27, %s5500_s27 }
0x4ddc   :  { %6608 = vmatprep.subr.bf16.mxu1 %v6993_v1  ;;  %6628 = vmatprep.subr.bf16.mxu0 %v6993_v1  ;;  %v6939_v20 = vld [vmem:[%s8581_s9] sm:$0xff]   ;;  %v6941_v24 = vld [vmem:[%s8584_s12 + $0x8] sm:$0xff]  }
0x4ddd   :  { %v5757_v55 = vld [vmem:[%s8585_s13] ss:$0 sm:$0xff]  ;;  %v6943_v35 = vld [vmem:[%s8582_s10 + $0x8] sm:$0xff]  }
0x4dde   :  { %v6940_v12 = vld [vmem:[%s8584_s12] sm:$0xff]   ;;  %v6945_v19 = vld [vmem:[%s8588_s16 + $0x8] sm:$0xff]  }
0x4ddf   :  { %6609 = vmatpush3.bf16.msra.mxu1 %v6930_v7  ;;  %6629 = vmatpush3.bf16.msra.mxu0 %v6938_v43  ;;  %v5027_v44 = vld [vmem:[#allocation2] sm:$0xff] }
0x4de0   :  { %6610 = vmatprep.subr.bf16.mxu1 %v6993_v1  ;;  %6634 = vmatprep.subr.bf16.mxu0 %v6993_v1  ;;  %v5028_v45 = vpack.c.bf16 %v5027_v44, %v5027_v44  ;;  %v6942_v51 = vld [vmem:[%s8582_s10] sm:$0xff]  }
0x4de1   :  { %v5764_v25 = vld [vmem:[%s8586_s14] ss:$0 sm:$0xff] }
0x4de2   :  { %6631 = vmatmul.mubr.msk.bf16.vlgmr.msra.gmra.mrb[136].mxu0 %vm99_vm6, %v8405_v0  ;;  %v6936_v0 = vld [vmem:[%s8587_s15 + $0x38] sm:$0xff]  }
0x4de3   :  { %6611 = vmatpush3.bf16.msra.mxu1 %v6931_v41  ;;  %6635 = vmatpush3.bf16.msra.mxu0 %v6939_v20 }
0x4de4   :  { %6612 = vmatprep.subr.bf16.mxu1 %v6993_v1  ;;  %6636 = vmatprep.mubr.msk.bf16.mxu0 %vm6994_vm0, %v6993_v1 }
0x4de5   :  { %6640 = vmatprep.subr.bf16.mxu0 %v6993_v1 }
0x4de7   :  { %6613 = vmatpush3.bf16.msra.mxu1 %v6932_v29 }
0x4de8   :  { %6614 = vmatprep.subr.bf16.mxu1 %v6993_v1 }
0x4deb   :  { %6615 = vmatpush3.bf16.msra.mxu1 %v6933_v18 }
0x4dec   :  { %6616 = vmatprep.subr.bf16.mxu1 %v6993_v1 }
0x4def   :  { %6617 = vmatpush3.bf16.msra.mxu1 %v6934_v2 }
0x4df0   :  { %6618 = vmatprep.subr.bf16.mxu1 %v6993_v1 }
0x4df3   :  { %6619 = vmatpush3.bf16.msra.mxu1 %v6935_v31 }
0x4df4   :  { %6620 = vmatprep.subr.bf16.mxu1 %v6993_v1 }
0x4df7   :  { %6621 = vmatpush3.bf16.msra.mxu1 %v6936_v0  ;;  %v6944_v0 = vld [vmem:[%s8588_s16] sm:$0xff]   ;;  %s6966_s16 = scalar_lea.vmem %s5500_s27, 1024 }
0x4df8   :  { %6656 = vmatprep.subr.bf16.mxu1 %v6993_v1  ;;  %p6967_p3 = scmp.ne.s32.totalorder %s5500_s27, %s6966_s16  ;;  %p6972_p5 = scmp.lt.s32.totalorder %s6966_s16, %s6966_s16 }
0x4dfa   :  { %6623 = vmatmul.mubr.bf16.vlgmr.msra.gmra.mrb[136].mxu1 %v5028_v45  ;;  %p6973_p6 = por %p6972_p5, %p6971_p4 }
0x4dfb   :  { %6660 = vmatprep.mubr.msk.bf16.mxu1 %vm6994_vm0, %v6993_v1  ;;  %6657 = vmatpush3.bf16.msra.mxu1 %v6944_v0 }
0x4dfc   :  { %6658 = vmatprep.subr.bf16.mxu1 %v6993_v1  ;;  %p6974_p7 = pnand %p6973_p6, %p6967_p3 }
0x4dff   :  { %6659 = vmatpush3.bf16.msra.mxu1 %v6945_v19 }
0x4eb5   :  { %v5186_v56 = vpop.f32.mrb[136].mxu0 }
0x4eb6   :  { %v6632_v50 = vpop.f32.mrb[137].mxu0 }
0x4eb7   :  { %v5189_v33 = vpop.f32.mrb[138].mxu0 }
0x4eb8   :  { %v6633_v47 = vpop.f32.mrb[139].mxu0  ;;  %v5765_v33 = vld [vmem:[%s8589_s17] ss:$0 sm:$0xff] }
0x4ecd   :  { %v5127_v49 = vpop.f32.mrb[136].mxu1 }
0x4ece   :  { %v5133_v32 = vpack.c.bf16 %v5127_v49, %v5127_v49  ;;  %v6624_v27 = vpop.f32.mrb[137].mxu1 }
0x4ecf   :  { %v5130_v52 = vpop.f32.mrb[138].mxu1 }
0x4ed0   :  { %v6625_v53 = vpop.f32.mrb[139].mxu1  ;;  %6637 = vmatmul.mubr.msk.bf16.vlgmr.msra.gmra.mrb[140].mxu0 %vm149_vm1, %v5133_v32 }
0x4ed1   :  { %6644 = vmatprep.mubr.msk.bf16.mxu0 %vm6994_vm0, %v6993_v1  ;;  %6641 = vmatpush3.bf16.msra.mxu0 %v6940_v12 }
0x4ed2   :  { %6642 = vmatprep.subr.bf16.mxu0 %v6993_v1 }
0x4ed5   :  { %6643 = vmatpush3.bf16.msra.mxu0 %v6941_v24 }
0x4ed6   :  { %6648 = vmatprep.subr.bf16.mxu0 %v6993_v1 }
0x4ed8   :  { %6645 = vmatmul.mubr.msk.bf16.vlgmr.msra.gmra.mrb[144].mxu0 %vm99_vm6, %v8431_v46 }
0x4ed9   :  { %6649 = vmatpush3.bf16.msra.mxu0 %v6942_v51  ;;  %6652 = vmatprep.mubr.msk.bf16.mxu0 %vm6994_vm0, %v6993_v1 }
0x4eda   :  { %6650 = vmatprep.subr.bf16.mxu0 %v6993_v1 }
0x4edd   :  { %6651 = vmatpush3.bf16.msra.mxu0 %v6943_v35 }
0x4fa3   :  { %v5235_v26 = vpop.f32.mrb[140].mxu0 }
0x4fa4   :  { %v5236_v34 = vadd.f32 %v5235_v26, %v5186_v56  ;;  %v6638_v57 = vpop.f32.mrb[141].mxu0 }
0x4fa5   :  { %v5238_v58 = vpop.f32.mrb[142].mxu0 }
0x4fa6   :  { %v5248_v14 = vadd.f32 %v5757_v55, %v5236_v34  ;;  %v6639_v13 = vpop.f32.mrb[143].mxu0 }
0x4fa8   :  { %v5249_v8 = vmul.f32 0.5, %v5248_v14 }
0x4faa   :  { %v5250_v59 = vsel %vm7164_vm5, %v5248_v14, %v5249_v8 }
0x4fab   :  { %6946 = vtanh.f32 %v5250_v59  ;;  %v5327_v21 = vpop.f32.mrb[144].mxu0 }
0x4fac   :  { %v6646_v60 = vpop.f32.mrb[145].mxu0 }
0x4fad   :  { %v5330_v22 = vpop.f32.mrb[146].mxu0 }
0x4fae   :  { %v6647_v46 = vpop.f32.mrb[147].mxu0 }
0x4fb5   :  { %v6947_v61 = vpop.eup %6946 }
0x4fb6   :  { %v5252_v63 = vmul.f32 0.5, %v6947_v61 }
0x4fb8   :  { %v5253_v4 = vadd.f32 0.5, %v5252_v63 }
0x4fba   :  { %v5254_v5 = vsel %vm7164_vm5, %v6947_v61, %v5253_v4 }
0x4fbb   :  { %5257 = vrot.lane.b32.xlu0 %v5254_v5, %s6996_s29  ;;  %v5255_v10 = vmul.f32 %v5254_v5, %v8381_v36 }
0x502d   :  { %v5258_v6 = vpop.permute.xlu0 %5257 }
0x502e   :  { %v5260_v48 = vmul.f32 %v5258_v6, %v5254_v5 }
0x5030   :  { %5262 = vrot.lane.b32.xlu0 %v5260_v48, %s6997_s30 }
0x50a2   :  { %v5263_v11 = vpop.permute.xlu0 %5262 }
0x50a3   :  { %v5265_v15 = vadd.f32 %v5263_v11, %v5255_v10 }
0x50a5   :  { %6948 = vtanh.f32 %v5265_v15 }
0x50af   :  { %v6949_v36 = vpop.eup %6948 }
0x50b0   :  { %5268 = vrot.lane.b32.xlu1 %v6949_v36, %s6996_s29 }
0x5122   :  { %v5269_v16 = vpop.permute.xlu1 %5268 }
0x5123   :  { %v5271_v17 = vmul.f32 %v5269_v16, %v5254_v5 }
0x5125   :  { %v5272_v42 = vpack.c.bf16 %v5271_v17, %v5271_v17 }
0x5127   :  { %5334 = vrot.lane.b32.xlu1 %v5272_v42, %s6997_s30 }
0x5199   :  { %v5335_v62 = vpop.permute.xlu1 %5334 }
0x519a   :  { %6653 = vmatmul.mubr.msk.bf16.vlgmr.msra.gmra.mrb[148].mxu0 %vm99_vm6, %v5335_v62 }
0x526d   :  { %v5385_v38 = vpop.f32.mrb[148].mxu0 }
0x526e   :  { %v5386_v30 = vadd.f32 %v5385_v38, %v5327_v21  ;;  %v6654_v37 = vpop.f32.mrb[149].mxu0 }
0x526f   :  { %v5388_v40 = vpop.f32.mrb[150].mxu0 }
0x5270   :  { %v5398_v3 = vadd.f32 %v5764_v25, %v5386_v30  ;;  %v6655_v9 = vpop.f32.mrb[151].mxu0 }
0x5272   :  { %v5399_v28 = vmul.f32 0.5, %v5398_v3 }
0x5274   :  { %v5400_v23 = vsel %vm7164_vm5, %v5398_v3, %v5399_v28 }
0x5275   :  { %6950 = vtanh.f32 %v5400_v23 }
0x527f   :  { %v6951_v7 = vpop.eup %6950 }
0x5280   :  { %v5402_v41 = vmul.f32 0.5, %v6951_v7 }
0x5282   :  { %v5403_v39 = vadd.f32 0.5, %v5402_v41 }
0x5284   :  { %v5404_v29 = vsel %vm7164_vm5, %v6951_v7, %v5403_v39 }
0x5285   :  { %5407 = vrot.lane.b32.xlu0 %v5404_v29, %s6996_s29  ;;  %v5405_v20 = vmul.f32 %v5404_v29, %v8419_v54 }
0x52f7   :  { %v5408_v43 = vpop.permute.xlu0 %5407 }
0x52f8   :  { %v5410_v18 = vmul.f32 %v5408_v43, %v5404_v29 }
0x52fa   :  { %5412 = vrot.lane.b32.xlu1 %v5410_v18, %s6997_s30 }
0x536c   :  { %v5413_v2 = vpop.permute.xlu1 %5412 }
0x536d   :  { %v5415_v31 = vadd.f32 %v5413_v2, %v5405_v20 }
0x536f   :  { %6952 = vtanh.f32 %v5415_v31 }
0x5379   :  { %v6953_v44 = vpop.eup %6952 }
0x537a   :  { %5418 = vrot.lane.b32.xlu0 %v6953_v44, %s6996_s29 }
0x53ec   :  { %v5419_v45 = vpop.permute.xlu0 %5418 }
0x53ed   :  { %v5421_v54 = vmul.f32 %v5419_v45, %v5404_v29 }
0x53ef   :  { %v5422_v56 = vpack.c.bf16 %v5421_v54, %v5421_v54 }
0x53f1   :  { %5435 = vrot.lane.b32.xlu1 %v5422_v56, %s6997_s30 }
0x5463   :  { %v5436_v50 = vpop.permute.xlu1 %5435 }
0x5464   :  { %6661 = vmatmul.mubr.msk.bf16.vlgmr.msra.gmra.mrb[140].mxu1 %vm99_vm6, %v5436_v50 }
0x5537   :  { %v5486_v47 = vpop.f32.mrb[140].mxu1 }
0x5538   :  { %v5487_v1 = vadd.f32 %v5765_v33, %v5486_v47  ;;  %v6662_v49 = vpop.f32.mrb[141].mxu1 }
0x5539   :  { %v5489_v32 = vpop.f32.mrb[142].mxu1 }
0x553a   :  { %5493 = vst [vmem:[#allocation6 + $0x38] sm:$0xff] %v5487_v1  ;;  %v6663_v27 = vpop.f32.mrb[143].mxu1 }
0x553b   :  { %6977 = shalt.err (!%p6974_p7)
}
0x553c   :  { %s6978_s6 = scalar_lea.hbm %s8590_s18, 1024 }
0x553d   :  { %p6979_p8 = scmp.ne.s32.totalorder %s8590_s18, %s6978_s6  ;;  %p6982_p9 = scmp.lt.u32.totalorder %s6978_s6, %s8590_s18 }
0x553f   :  { %p6984_p10 = pnand %p6982_p9, %p6979_p8 }
0x5541   :  { %6987 = shalt.err (!%p6984_p10)
}
0x5542   :  { %s7017_s4 = smov 128   ;;  %s7018_s8 = smov 8  }
0x5543   :  { %5505 = dma.vmem_to_hbm [thread:$0]  %s5500_s27, 1024, %s8590_s18, [#allocation4], %s7017_s4, %s7017_s4, %s7018_s8  }
0x5544   :  { %6990 = dma.done.wait [#allocation4], 1024  }
0x5545   :  { %6991 = vsyncadd [#allocation4], 4294966272 }
0x5546   :  { %5509 = vsyncpa [#allocation4], 1 }
0x5547   :  { %5510 = vsyncpa [#allocation5], 1 }

</bundles_post_ra>
